<compile_context>
chip_gen: v7x
topology: tpu7x:2x2x1
jax: 0.10.0
libtpu: 0.0.40
codegen_flags: <defaults>
</compile_context>

<pallas_src>
from functools import partial

import numpy as np
import jax
import jax.numpy as jnp
from jax import lax
from jax.experimental import pallas as pl
from jax.experimental.pallas import tpu as pltpu

LN_EPS = 1e-5
BN_EPS = 1e-5


def kan_block_kernel(x_ref, mask_ref, fc1_w_ref, fc1_b_ref, dw1_w_ref, dw1_b_ref,
                     fc2_w_ref, fc2_b_ref, dw2_w_ref, dw2_b_ref,
                     out_ref, *, W):
    TR, C = x_ref.shape                       # TR = (#images in this tile) * N
    x = x_ref[...].astype(jnp.float32)        # bf16 -> f32 for LN stats / residual

    # ---- LayerNorm statistics (gamma/beta are folded into fc1 on the host) ----
    mean = jnp.mean(x, axis=-1, keepdims=True)
    xc = x - mean
    var = jnp.mean(xc * xc, axis=-1, keepdims=True)
    xn = xc * lax.rsqrt(var + LN_EPS)

    # ---- host-precomputed 3x3 boundary masks, shared by both depthwise convs ----
    masks = mask_ref[...]                     # (TR, 9) f32 {0,1}

    def dw_bn_relu(t, wt_ref, b_ref):
        # Depthwise 3x3 conv (pad=1) via XLU rolls * host masks.  BN scale is
        # pre-folded into the taps; conv bias + BN shift into b_ref.  Two
        # partial accumulators break the serial mul->add chain across taps.
        acc0 = t * wt_ref[4:5, :]             # centre tap, always valid
        acc1 = jnp.zeros_like(t)
        for k in range(9):
            if k == 4:
                continue
            dh, dw = k // 3 - 1, k % 3 - 1
            s = dh * W + dw
            # shifted[n] = t[n + s]; masks zero everything that wraps across an
            # image edge or across neighbouring images in the flattened axis.
            shifted = pltpu.roll(t, shift=(-s) % TR, axis=0)
            term = shifted * masks[:, k:k + 1] * wt_ref[k:k + 1, :]
            if k % 2 == 0:
                acc0 = acc0 + term
            else:
                acc1 = acc1 + term
        return jnp.maximum(acc0 + acc1 + b_ref[...], 0.0)

    # ---- fc1 (LN affine folded in), bf16 MXU matmul with f32 accumulation ----
    h = jnp.dot(xn.astype(jnp.bfloat16), fc1_w_ref[...],
                preferred_element_type=jnp.float32) + fc1_b_ref[...]
    h = dw_bn_relu(h, dw1_w_ref, dw1_b_ref)

    # ---- fc2 ----
    h = jnp.dot(h.astype(jnp.bfloat16), fc2_w_ref[...],
                preferred_element_type=jnp.float32) + fc2_b_ref[...]
    h = dw_bn_relu(h, dw2_w_ref, dw2_b_ref)

    # ---- residual (f32 add, bf16 store) ----
    out_ref[...] = (x + h).astype(out_ref.dtype)


def _pick_batch_tile(B, N, target_rows):
    """Pick #images per grid step: rows multiple of 8, divides B, >=2 grid
    steps when B allows (v7x megacore), and close to target_rows."""
    divs = [d for d in range(1, B + 1) if B % d == 0]
    valid = [d for d in divs if (d * N) % 8 == 0]
    if not valid:
        return B                                  # full-array block is always legal
    pref = [d for d in valid if B // d >= 2] or valid
    under = [d for d in pref if d * N <= target_rows]
    return max(under) if under else min(pref)


def kan_block_forward(x, params, H, W, *, batch_tile=None, target_rows=1024):
    """x: (B, N, C) with N = H*W.  params: host-folded tuple (see __main__).
    Returns bf16 tokens of shape (B, N, C)."""
    B, N, C = x.shape
    assert N == H * W

    # ---- VMEM budget: v7x has 64 MiB/TC physical, v5e/v6e 128 MiB ----
    try:
        vmem_phys = int(pltpu.get_tpu_info().vmem_capacity_bytes)
    except Exception:
        vmem_phys = 64 * 1024 * 1024              # conservative (v7x)
    vmem_limit = int(min(vmem_phys * 3 // 4, 96 * 1024 * 1024))

    # Crude live-bytes model: double-buffered bf16 in+out token blocks (~8*TR*C)
    # plus ~5 live f32 temps (x, xn, h, acc0, acc1) (~20*TR*C).
    rows_budget = max(N, vmem_limit // (28 * C))
    target = min(target_rows, rows_budget)

    bb = _pick_batch_tile(B, N, target) if batch_tile is None else batch_tile
    assert B % bb == 0
    TR = bb * N                                   # rows (tokens) per grid step
    grid = (B // bb,)

    # ---- host-precomputed 3x3 validity masks for the flattened token axis ----
    n_idx = np.arange(TR, dtype=np.int64) % N
    h_idx = n_idx // W
    w_idx = n_idx % W
    masks_np = np.empty((TR, 9), np.float32)
    for k in range(9):
        dh, dw = k // 3 - 1, k % 3 - 1
        masks_np[:, k] = (((h_idx + dh) >= 0) & ((h_idx + dh) < H) &
                          ((w_idx + dw) >= 0) & ((w_idx + dw) < W))
    masks = jnp.asarray(masks_np)

    # bf16 token I/O (this kernel is HBM-bound; halves the dominant traffic).
    x2 = x.reshape(B * N, C).astype(jnp.bfloat16)

    tok_spec = pl.BlockSpec((TR, C), lambda g: (g, 0))

    cost = pl.CostEstimate(
        flops=int(4 * B * N * C * C + 40 * B * N * C),      # 2 GEMMs + 2 dw convs
        transcendentals=int(B * N),                         # rsqrt per token
        bytes_accessed=int(2 * B * N * C * 2                # x in + out (bf16)
                           + TR * 9 * 4                     # boundary masks
                           + 2 * C * C * 2                  # fc weights (bf16)
                           + (2 * 9 + 4) * C * 4),          # taps + biases (f32)
    )

    def _call(single_buffer_invariants):
        def inv_spec(shape):
            r = len(shape)
            idx = lambda g, r=r: (0,) * r
            if single_buffer_invariants:
                # Grid-invariant operands: 1 buffer instead of 2 (VMEM headroom,
                # matters under v7x's 64 MiB budget at production C).
                return pl.BlockSpec(shape, idx, pipeline_mode=pl.Buffered(1))
            return pl.BlockSpec(shape, idx)

        in_specs = [tok_spec, inv_spec(masks.shape)] + [inv_spec(p.shape) for p in params]
        return pl.pallas_call(
            partial(kan_block_kernel, W=W),
            out_shape=jax.ShapeDtypeStruct((B * N, C), jnp.bfloat16),
            grid_spec=pltpu.PrefetchScalarGridSpec(
                num_scalar_prefetch=0,
                grid=grid,
                in_specs=in_specs,
                out_specs=tok_spec,
            ),
            compiler_params=pltpu.CompilerParams(
                dimension_semantics=("parallel",),
                vmem_limit_bytes=vmem_limit),
            cost_estimate=cost,
        )(x2, masks, *params)

    try:
        out = _call(True)
    except Exception:
        # TODO(synk): pl.Buffered(1) rejected by this jax build -> fall back to
        # default double-buffered grid-invariant operands.
        out = _call(False)

    return out.reshape(B, N, C)


# ---------------------------------------------------------------------------
# Pure-JAX f32 reference (unfused) for correctness checking.
# ---------------------------------------------------------------------------
def _dw_bn_relu_ref(tok, w_hwio, conv_b, g, b, m, v, H, W):
    B, N, C = tok.shape
    img = tok.reshape(B, H, W, C)
    out = lax.conv_general_dilated(
        img, w_hwio, window_strides=(1, 1), padding="SAME",
        dimension_numbers=("NHWC", "HWIO", "NHWC"),
        feature_group_count=C, precision=lax.Precision.HIGHEST)
    out = out + conv_b
    out = (out - m) / jnp.sqrt(v + BN_EPS) * g + b
    out = jnp.maximum(out, 0.0)
    return out.reshape(B, N, C)


def reference_forward(x, p, H, W):
    B, N, C = x.shape
    xf = x.astype(jnp.float32)
    mean = xf.mean(-1, keepdims=True)
    var = ((xf - mean) ** 2).mean(-1, keepdims=True)
    xn = (xf - mean) / jnp.sqrt(var + LN_EPS) * p["ln_g"] + p["ln_b"]

    h = jnp.dot(xn.reshape(B * N, C), p["fc1_w"],
                precision=lax.Precision.HIGHEST) + p["fc1_b"]
    h = h.reshape(B, N, C)
    h = _dw_bn_relu_ref(h, p["dw1_w"].reshape(3, 3, 1, C), p["dw1_cb"],
                        p["bn1_g"], p["bn1_b"], p["bn1_m"], p["bn1_v"], H, W)

    h = jnp.dot(h.reshape(B * N, C), p["fc2_w"],
                precision=lax.Precision.HIGHEST) + p["fc2_b"]
    h = h.reshape(B, N, C)
    h = _dw_bn_relu_ref(h, p["dw2_w"].reshape(3, 3, 1, C), p["dw2_cb"],
                        p["bn2_g"], p["bn2_b"], p["bn2_m"], p["bn2_v"], H, W)
    return x + h


if __name__ == "__main__":
    B, H, W = 2, 8, 8
    C = 32              # dim   (TODO(synk): production C should be a multiple of 128
    N = H * W           #        for lane-dense stores / full MXU K-N fill)

    keys = jax.random.split(jax.random.PRNGKey(0), 20)

    def g(k, shape, scale=0.1):
        return scale * jax.random.normal(k, shape, jnp.float32)

    p = dict(
        ln_g=1.0 + g(keys[0], (C,)),
        ln_b=g(keys[1], (C,)),
        fc1_w=jax.random.normal(keys[2], (C, C), jnp.float32) / jnp.sqrt(C),
        fc1_b=g(keys[3], (C,)),
        dw1_w=0.3 * jax.random.normal(keys[4], (3, 3, C), jnp.float32),
        dw1_cb=g(keys[5], (C,)),
        bn1_g=1.0 + g(keys[6], (C,)),
        bn1_b=g(keys[7], (C,)),
        bn1_m=g(keys[8], (C,)),
        bn1_v=0.5 + jax.random.uniform(keys[9], (C,), jnp.float32),
        fc2_w=jax.random.normal(keys[10], (C, C), jnp.float32) / jnp.sqrt(C),
        fc2_b=g(keys[11], (C,)),
        dw2_w=0.3 * jax.random.normal(keys[12], (3, 3, C), jnp.float32),
        dw2_cb=g(keys[13], (C,)),
        bn2_g=1.0 + g(keys[14], (C,)),
        bn2_b=g(keys[15], (C,)),
        bn2_m=g(keys[16], (C,)),
        bn2_v=0.5 + jax.random.uniform(keys[17], (C,), jnp.float32),
    )

    # --- host-side folding -------------------------------------------------
    # LayerNorm affine into fc1:  (xn*g + b) @ W + c = xn @ (g[:,None]*W) + (b@W + c)
    fc1_w_f = p["ln_g"][:, None] * p["fc1_w"]
    fc1_b_f = p["ln_b"] @ p["fc1_w"] + p["fc1_b"]

    # BatchNorm (inference) + conv bias into taps / per-channel bias.
    scale1 = p["bn1_g"] / jnp.sqrt(p["bn1_v"] + BN_EPS)
    dw1_w_f = p["dw1_w"].reshape(9, C) * scale1
    dw1_b_f = (p["dw1_cb"] - p["bn1_m"]) * scale1 + p["bn1_b"]
    scale2 = p["bn2_g"] / jnp.sqrt(p["bn2_v"] + BN_EPS)
    dw2_w_f = p["dw2_w"].reshape(9, C) * scale2
    dw2_b_f = (p["dw2_cb"] - p["bn2_m"]) * scale2 + p["bn2_b"]

    kernel_params = (
        fc1_w_f.astype(jnp.bfloat16), fc1_b_f.reshape(1, C),
        dw1_w_f, dw1_b_f.reshape(1, C),
        p["fc2_w"].astype(jnp.bfloat16), p["fc2_b"].reshape(1, C),
        dw2_w_f, dw2_b_f.reshape(1, C),
    )

    x = jax.random.normal(keys[18], (B, N, C), jnp.float32)

    out = kan_block_forward(x, kernel_params, H, W)
    out = jax.block_until_ready(out)

    ref = reference_forward(x, p, H, W)
    # bf16 token I/O + bf16 MXU matmuls (f32 accumulate) vs f32 reference.
    np.testing.assert_allclose(np.asarray(out.astype(jnp.float32)),
                               np.asarray(ref), rtol=5e-2, atol=5e-2)
    print("KERNEL_OK")
</pallas_src>

<mosaic_0001>
module attributes {stable_mosaic.version = 11 : i64} {
  func.func @kan_block_kernel(%arg0: i32, %arg1: memref<64x32xbf16, #tpu.memory_space<vmem>>, %arg2: memref<64x9xf32, #tpu.memory_space<vmem>>, %arg3: memref<32x32xbf16, #tpu.memory_space<vmem>>, %arg4: memref<1x32xf32, #tpu.memory_space<vmem>>, %arg5: memref<9x32xf32, #tpu.memory_space<vmem>>, %arg6: memref<1x32xf32, #tpu.memory_space<vmem>>, %arg7: memref<32x32xbf16, #tpu.memory_space<vmem>>, %arg8: memref<1x32xf32, #tpu.memory_space<vmem>>, %arg9: memref<9x32xf32, #tpu.memory_space<vmem>>, %arg10: memref<1x32xf32, #tpu.memory_space<vmem>>, %arg11: memref<64x32xbf16, #tpu.memory_space<vmem>>) attributes {dimension_semantics = [#tpu.dimension_semantics<parallel>], iteration_bounds = array<i64: 2>, scalar_prefetch = 0 : i64, scratch_operands = 0 : i64, tpu.core_type = #tpu.core_type<tc>, window_params = [{transform_indices = @transform_0, window_bounds = array<i64: 64, 32>}, {pipeline_mode = #tpu.pipeline_mode<synchronous>, transform_indices = @transform_1, window_bounds = array<i64: 64, 9>}, {pipeline_mode = #tpu.pipeline_mode<synchronous>, transform_indices = @transform_2, window_bounds = array<i64: 32, 32>}, {pipeline_mode = #tpu.pipeline_mode<synchronous>, transform_indices = @transform_3, window_bounds = array<i64: 1, 32>}, {pipeline_mode = #tpu.pipeline_mode<synchronous>, transform_indices = @transform_4, window_bounds = array<i64: 9, 32>}, {pipeline_mode = #tpu.pipeline_mode<synchronous>, transform_indices = @transform_5, window_bounds = array<i64: 1, 32>}, {pipeline_mode = #tpu.pipeline_mode<synchronous>, transform_indices = @transform_6, window_bounds = array<i64: 32, 32>}, {pipeline_mode = #tpu.pipeline_mode<synchronous>, transform_indices = @transform_7, window_bounds = array<i64: 1, 32>}, {pipeline_mode = #tpu.pipeline_mode<synchronous>, transform_indices = @transform_8, window_bounds = array<i64: 9, 32>}, {pipeline_mode = #tpu.pipeline_mode<synchronous>, transform_indices = @transform_9, window_bounds = array<i64: 1, 32>}, {transform_indices = @transform_10, window_bounds = array<i64: 64, 32>}]} {
    %c0 = arith.constant 0 : index
    %c0_0 = arith.constant 0 : index
    %0 = vector.load %arg1[%c0, %c0_0] : memref<64x32xbf16, #tpu.memory_space<vmem>>, vector<64x32xbf16>
    %1 = arith.extf %0 : vector<64x32xbf16> to vector<64x32xf32>
    %cst = arith.constant dense<0.000000e+00> : vector<64xf32>
    %2 = vector.multi_reduction <add>, %1, %cst [1] : vector<64x32xf32> to vector<64xf32>
    %3 = vector.shape_cast %2 : vector<64xf32> to vector<64x1xf32>
    %cst_1 = arith.constant 3.200000e+01 : f32
    %4 = vector.broadcast %cst_1 : f32 to vector<64x1xf32>
    %5 = arith.divf %3, %4 : vector<64x1xf32>
    %6 = vector.broadcast %5 : vector<64x1xf32> to vector<64x32xf32>
    %7 = arith.subf %1, %6 : vector<64x32xf32>
    %8 = arith.mulf %7, %7 : vector<64x32xf32>
    %cst_2 = arith.constant dense<0.000000e+00> : vector<64xf32>
    %9 = vector.multi_reduction <add>, %8, %cst_2 [1] : vector<64x32xf32> to vector<64xf32>
    %10 = vector.shape_cast %9 : vector<64xf32> to vector<64x1xf32>
    %cst_3 = arith.constant 3.200000e+01 : f32
    %11 = vector.broadcast %cst_3 : f32 to vector<64x1xf32>
    %12 = arith.divf %10, %11 : vector<64x1xf32>
    %cst_4 = arith.constant 9.99999974E-6 : f32
    %13 = vector.broadcast %cst_4 : f32 to vector<64x1xf32>
    %14 = arith.addf %12, %13 : vector<64x1xf32>
    %15 = math.rsqrt %14 : vector<64x1xf32>
    %16 = vector.broadcast %15 : vector<64x1xf32> to vector<64x32xf32>
    %17 = arith.mulf %7, %16 : vector<64x32xf32>
    %c0_5 = arith.constant 0 : index
    %c0_6 = arith.constant 0 : index
    %18 = vector.load %arg2[%c0_5, %c0_6] : memref<64x9xf32, #tpu.memory_space<vmem>>, vector<64x9xf32>
    %19 = arith.truncf %17 : vector<64x32xf32> to vector<64x32xbf16>
    %c0_7 = arith.constant 0 : index
    %c0_8 = arith.constant 0 : index
    %20 = vector.load %arg3[%c0_7, %c0_8] : memref<32x32xbf16, #tpu.memory_space<vmem>>, vector<32x32xbf16>
    %cst_9 = arith.constant dense<0.000000e+00> : vector<64x32xf32>
    %21 = tpu.matmul %19, %20, %cst_9 {dimension_numbers = #tpu.dot_dimension_numbers<[1], [0], [0], [1], [0, 0, 1, 1], [], []>} : vector<64x32xbf16>, vector<32x32xbf16>, vector<64x32xf32> -> vector<64x32xf32>
    %c0_10 = arith.constant 0 : index
    %c0_11 = arith.constant 0 : index
    %22 = vector.load %arg4[%c0_10, %c0_11] : memref<1x32xf32, #tpu.memory_space<vmem>>, vector<1x32xf32>
    %23 = vector.broadcast %22 : vector<1x32xf32> to vector<64x32xf32>
    %24 = arith.addf %21, %23 : vector<64x32xf32>
    %c4 = arith.constant 4 : index
    %c0_12 = arith.constant 0 : index
    %25 = vector.load %arg5[%c4, %c0_12] : memref<9x32xf32, #tpu.memory_space<vmem>>, vector<1x32xf32>
    %26 = vector.broadcast %25 : vector<1x32xf32> to vector<64x32xf32>
    %27 = arith.mulf %24, %26 : vector<64x32xf32>
    %cst_13 = arith.constant 0.000000e+00 : f32
    %28 = vector.broadcast %cst_13 : f32 to vector<64x32xf32>
    %c9_i32 = arith.constant 9 : i32
    %29 = tpu.dynamic_rotate %24 by %c9_i32 dim 0 : vector<64x32xf32>, i32 -> vector<64x32xf32>
    %30 = vector.extract_strided_slice %18 {offsets = [0, 0], sizes = [64, 1], strides = [1, 1]} : vector<64x9xf32> to vector<64x1xf32>
    %31 = vector.broadcast %30 : vector<64x1xf32> to vector<64x32xf32>
    %32 = arith.mulf %29, %31 : vector<64x32xf32>
    %c0_14 = arith.constant 0 : index
    %c0_15 = arith.constant 0 : index
    %33 = vector.load %arg5[%c0_14, %c0_15] : memref<9x32xf32, #tpu.memory_space<vmem>>, vector<1x32xf32>
    %34 = vector.broadcast %33 : vector<1x32xf32> to vector<64x32xf32>
    %35 = arith.mulf %32, %34 : vector<64x32xf32>
    %36 = arith.addf %27, %35 : vector<64x32xf32>
    %c8_i32 = arith.constant 8 : i32
    %37 = tpu.dynamic_rotate %24 by %c8_i32 dim 0 : vector<64x32xf32>, i32 -> vector<64x32xf32>
    %38 = vector.extract_strided_slice %18 {offsets = [0, 1], sizes = [64, 1], strides = [1, 1]} : vector<64x9xf32> to vector<64x1xf32>
    %39 = vector.broadcast %38 : vector<64x1xf32> to vector<64x32xf32>
    %40 = arith.mulf %37, %39 : vector<64x32xf32>
    %c1 = arith.constant 1 : index
    %c0_16 = arith.constant 0 : index
    %41 = vector.load %arg5[%c1, %c0_16] : memref<9x32xf32, #tpu.memory_space<vmem>>, vector<1x32xf32>
    %42 = vector.broadcast %41 : vector<1x32xf32> to vector<64x32xf32>
    %43 = arith.mulf %40, %42 : vector<64x32xf32>
    %44 = arith.addf %28, %43 : vector<64x32xf32>
    %c7_i32 = arith.constant 7 : i32
    %45 = tpu.dynamic_rotate %24 by %c7_i32 dim 0 : vector<64x32xf32>, i32 -> vector<64x32xf32>
    %46 = vector.extract_strided_slice %18 {offsets = [0, 2], sizes = [64, 1], strides = [1, 1]} : vector<64x9xf32> to vector<64x1xf32>
    %47 = vector.broadcast %46 : vector<64x1xf32> to vector<64x32xf32>
    %48 = arith.mulf %45, %47 : vector<64x32xf32>
    %c2 = arith.constant 2 : index
    %c0_17 = arith.constant 0 : index
    %49 = vector.load %arg5[%c2, %c0_17] : memref<9x32xf32, #tpu.memory_space<vmem>>, vector<1x32xf32>
    %50 = vector.broadcast %49 : vector<1x32xf32> to vector<64x32xf32>
    %51 = arith.mulf %48, %50 : vector<64x32xf32>
    %52 = arith.addf %36, %51 : vector<64x32xf32>
    %c1_i32 = arith.constant 1 : i32
    %53 = tpu.dynamic_rotate %24 by %c1_i32 dim 0 : vector<64x32xf32>, i32 -> vector<64x32xf32>
    %54 = vector.extract_strided_slice %18 {offsets = [0, 3], sizes = [64, 1], strides = [1, 1]} : vector<64x9xf32> to vector<64x1xf32>
    %55 = vector.broadcast %54 : vector<64x1xf32> to vector<64x32xf32>
    %56 = arith.mulf %53, %55 : vector<64x32xf32>
    %c3 = arith.constant 3 : index
    %c0_18 = arith.constant 0 : index
    %57 = vector.load %arg5[%c3, %c0_18] : memref<9x32xf32, #tpu.memory_space<vmem>>, vector<1x32xf32>
    %58 = vector.broadcast %57 : vector<1x32xf32> to vector<64x32xf32>
    %59 = arith.mulf %56, %58 : vector<64x32xf32>
    %60 = arith.addf %44, %59 : vector<64x32xf32>
    %c63_i32 = arith.constant 63 : i32
    %61 = tpu.dynamic_rotate %24 by %c63_i32 dim 0 : vector<64x32xf32>, i32 -> vector<64x32xf32>
    %62 = vector.extract_strided_slice %18 {offsets = [0, 5], sizes = [64, 1], strides = [1, 1]} : vector<64x9xf32> to vector<64x1xf32>
    %63 = vector.broadcast %62 : vector<64x1xf32> to vector<64x32xf32>
    %64 = arith.mulf %61, %63 : vector<64x32xf32>
    %c5 = arith.constant 5 : index
    %c0_19 = arith.constant 0 : index
    %65 = vector.load %arg5[%c5, %c0_19] : memref<9x32xf32, #tpu.memory_space<vmem>>, vector<1x32xf32>
    %66 = vector.broadcast %65 : vector<1x32xf32> to vector<64x32xf32>
    %67 = arith.mulf %64, %66 : vector<64x32xf32>
    %68 = arith.addf %60, %67 : vector<64x32xf32>
    %c57_i32 = arith.constant 57 : i32
    %69 = tpu.dynamic_rotate %24 by %c57_i32 dim 0 : vector<64x32xf32>, i32 -> vector<64x32xf32>
    %70 = vector.extract_strided_slice %18 {offsets = [0, 6], sizes = [64, 1], strides = [1, 1]} : vector<64x9xf32> to vector<64x1xf32>
    %71 = vector.broadcast %70 : vector<64x1xf32> to vector<64x32xf32>
    %72 = arith.mulf %69, %71 : vector<64x32xf32>
    %c6 = arith.constant 6 : index
    %c0_20 = arith.constant 0 : index
    %73 = vector.load %arg5[%c6, %c0_20] : memref<9x32xf32, #tpu.memory_space<vmem>>, vector<1x32xf32>
    %74 = vector.broadcast %73 : vector<1x32xf32> to vector<64x32xf32>
    %75 = arith.mulf %72, %74 : vector<64x32xf32>
    %76 = arith.addf %52, %75 : vector<64x32xf32>
    %c56_i32 = arith.constant 56 : i32
    %77 = tpu.dynamic_rotate %24 by %c56_i32 dim 0 : vector<64x32xf32>, i32 -> vector<64x32xf32>
    %78 = vector.extract_strided_slice %18 {offsets = [0, 7], sizes = [64, 1], strides = [1, 1]} : vector<64x9xf32> to vector<64x1xf32>
    %79 = vector.broadcast %78 : vector<64x1xf32> to vector<64x32xf32>
    %80 = arith.mulf %77, %79 : vector<64x32xf32>
    %c7 = arith.constant 7 : index
    %c0_21 = arith.constant 0 : index
    %81 = vector.load %arg5[%c7, %c0_21] : memref<9x32xf32, #tpu.memory_space<vmem>>, vector<1x32xf32>
    %82 = vector.broadcast %81 : vector<1x32xf32> to vector<64x32xf32>
    %83 = arith.mulf %80, %82 : vector<64x32xf32>
    %84 = arith.addf %68, %83 : vector<64x32xf32>
    %c55_i32 = arith.constant 55 : i32
    %85 = tpu.dynamic_rotate %24 by %c55_i32 dim 0 : vector<64x32xf32>, i32 -> vector<64x32xf32>
    %86 = vector.extract_strided_slice %18 {offsets = [0, 8], sizes = [64, 1], strides = [1, 1]} : vector<64x9xf32> to vector<64x1xf32>
    %87 = vector.broadcast %86 : vector<64x1xf32> to vector<64x32xf32>
    %88 = arith.mulf %85, %87 : vector<64x32xf32>
    %c8 = arith.constant 8 : index
    %c0_22 = arith.constant 0 : index
    %89 = vector.load %arg5[%c8, %c0_22] : memref<9x32xf32, #tpu.memory_space<vmem>>, vector<1x32xf32>
    %90 = vector.broadcast %89 : vector<1x32xf32> to vector<64x32xf32>
    %91 = arith.mulf %88, %90 : vector<64x32xf32>
    %92 = arith.addf %76, %91 : vector<64x32xf32>
    %93 = arith.addf %92, %84 : vector<64x32xf32>
    %c0_23 = arith.constant 0 : index
    %c0_24 = arith.constant 0 : index
    %94 = vector.load %arg6[%c0_23, %c0_24] : memref<1x32xf32, #tpu.memory_space<vmem>>, vector<1x32xf32>
    %95 = vector.broadcast %94 : vector<1x32xf32> to vector<64x32xf32>
    %96 = arith.addf %93, %95 : vector<64x32xf32>
    %cst_25 = arith.constant 0.000000e+00 : f32
    %97 = vector.broadcast %cst_25 : f32 to vector<64x32xf32>
    %98 = arith.maximumf %96, %97 : vector<64x32xf32>
    %99 = arith.truncf %98 : vector<64x32xf32> to vector<64x32xbf16>
    %c0_26 = arith.constant 0 : index
    %c0_27 = arith.constant 0 : index
    %100 = vector.load %arg7[%c0_26, %c0_27] : memref<32x32xbf16, #tpu.memory_space<vmem>>, vector<32x32xbf16>
    %cst_28 = arith.constant dense<0.000000e+00> : vector<64x32xf32>
    %101 = tpu.matmul %99, %100, %cst_28 {dimension_numbers = #tpu.dot_dimension_numbers<[1], [0], [0], [1], [0, 0, 1, 1], [], []>} : vector<64x32xbf16>, vector<32x32xbf16>, vector<64x32xf32> -> vector<64x32xf32>
    %c0_29 = arith.constant 0 : index
    %c0_30 = arith.constant 0 : index
    %102 = vector.load %arg8[%c0_29, %c0_30] : memref<1x32xf32, #tpu.memory_space<vmem>>, vector<1x32xf32>
    %103 = vector.broadcast %102 : vector<1x32xf32> to vector<64x32xf32>
    %104 = arith.addf %101, %103 : vector<64x32xf32>
    %c4_31 = arith.constant 4 : index
    %c0_32 = arith.constant 0 : index
    %105 = vector.load %arg9[%c4_31, %c0_32] : memref<9x32xf32, #tpu.memory_space<vmem>>, vector<1x32xf32>
    %106 = vector.broadcast %105 : vector<1x32xf32> to vector<64x32xf32>
    %107 = arith.mulf %104, %106 : vector<64x32xf32>
    %cst_33 = arith.constant 0.000000e+00 : f32
    %108 = vector.broadcast %cst_33 : f32 to vector<64x32xf32>
    %c9_i32_34 = arith.constant 9 : i32
    %109 = tpu.dynamic_rotate %104 by %c9_i32_34 dim 0 : vector<64x32xf32>, i32 -> vector<64x32xf32>
    %110 = vector.extract_strided_slice %18 {offsets = [0, 0], sizes = [64, 1], strides = [1, 1]} : vector<64x9xf32> to vector<64x1xf32>
    %111 = vector.broadcast %110 : vector<64x1xf32> to vector<64x32xf32>
    %112 = arith.mulf %109, %111 : vector<64x32xf32>
    %c0_35 = arith.constant 0 : index
    %c0_36 = arith.constant 0 : index
    %113 = vector.load %arg9[%c0_35, %c0_36] : memref<9x32xf32, #tpu.memory_space<vmem>>, vector<1x32xf32>
    %114 = vector.broadcast %113 : vector<1x32xf32> to vector<64x32xf32>
    %115 = arith.mulf %112, %114 : vector<64x32xf32>
    %116 = arith.addf %107, %115 : vector<64x32xf32>
    %c8_i32_37 = arith.constant 8 : i32
    %117 = tpu.dynamic_rotate %104 by %c8_i32_37 dim 0 : vector<64x32xf32>, i32 -> vector<64x32xf32>
    %118 = vector.extract_strided_slice %18 {offsets = [0, 1], sizes = [64, 1], strides = [1, 1]} : vector<64x9xf32> to vector<64x1xf32>
    %119 = vector.broadcast %118 : vector<64x1xf32> to vector<64x32xf32>
    %120 = arith.mulf %117, %119 : vector<64x32xf32>
    %c1_38 = arith.constant 1 : index
    %c0_39 = arith.constant 0 : index
    %121 = vector.load %arg9[%c1_38, %c0_39] : memref<9x32xf32, #tpu.memory_space<vmem>>, vector<1x32xf32>
    %122 = vector.broadcast %121 : vector<1x32xf32> to vector<64x32xf32>
    %123 = arith.mulf %120, %122 : vector<64x32xf32>
    %124 = arith.addf %108, %123 : vector<64x32xf32>
    %c7_i32_40 = arith.constant 7 : i32
    %125 = tpu.dynamic_rotate %104 by %c7_i32_40 dim 0 : vector<64x32xf32>, i32 -> vector<64x32xf32>
    %126 = vector.extract_strided_slice %18 {offsets = [0, 2], sizes = [64, 1], strides = [1, 1]} : vector<64x9xf32> to vector<64x1xf32>
    %127 = vector.broadcast %126 : vector<64x1xf32> to vector<64x32xf32>
    %128 = arith.mulf %125, %127 : vector<64x32xf32>
    %c2_41 = arith.constant 2 : index
    %c0_42 = arith.constant 0 : index
    %129 = vector.load %arg9[%c2_41, %c0_42] : memref<9x32xf32, #tpu.memory_space<vmem>>, vector<1x32xf32>
    %130 = vector.broadcast %129 : vector<1x32xf32> to vector<64x32xf32>
    %131 = arith.mulf %128, %130 : vector<64x32xf32>
    %132 = arith.addf %116, %131 : vector<64x32xf32>
    %c1_i32_43 = arith.constant 1 : i32
    %133 = tpu.dynamic_rotate %104 by %c1_i32_43 dim 0 : vector<64x32xf32>, i32 -> vector<64x32xf32>
    %134 = vector.extract_strided_slice %18 {offsets = [0, 3], sizes = [64, 1], strides = [1, 1]} : vector<64x9xf32> to vector<64x1xf32>
    %135 = vector.broadcast %134 : vector<64x1xf32> to vector<64x32xf32>
    %136 = arith.mulf %133, %135 : vector<64x32xf32>
    %c3_44 = arith.constant 3 : index
    %c0_45 = arith.constant 0 : index
    %137 = vector.load %arg9[%c3_44, %c0_45] : memref<9x32xf32, #tpu.memory_space<vmem>>, vector<1x32xf32>
    %138 = vector.broadcast %137 : vector<1x32xf32> to vector<64x32xf32>
    %139 = arith.mulf %136, %138 : vector<64x32xf32>
    %140 = arith.addf %124, %139 : vector<64x32xf32>
    %c63_i32_46 = arith.constant 63 : i32
    %141 = tpu.dynamic_rotate %104 by %c63_i32_46 dim 0 : vector<64x32xf32>, i32 -> vector<64x32xf32>
    %142 = vector.extract_strided_slice %18 {offsets = [0, 5], sizes = [64, 1], strides = [1, 1]} : vector<64x9xf32> to vector<64x1xf32>
    %143 = vector.broadcast %142 : vector<64x1xf32> to vector<64x32xf32>
    %144 = arith.mulf %141, %143 : vector<64x32xf32>
    %c5_47 = arith.constant 5 : index
    %c0_48 = arith.constant 0 : index
    %145 = vector.load %arg9[%c5_47, %c0_48] : memref<9x32xf32, #tpu.memory_space<vmem>>, vector<1x32xf32>
    %146 = vector.broadcast %145 : vector<1x32xf32> to vector<64x32xf32>
    %147 = arith.mulf %144, %146 : vector<64x32xf32>
    %148 = arith.addf %140, %147 : vector<64x32xf32>
    %c57_i32_49 = arith.constant 57 : i32
    %149 = tpu.dynamic_rotate %104 by %c57_i32_49 dim 0 : vector<64x32xf32>, i32 -> vector<64x32xf32>
    %150 = vector.extract_strided_slice %18 {offsets = [0, 6], sizes = [64, 1], strides = [1, 1]} : vector<64x9xf32> to vector<64x1xf32>
    %151 = vector.broadcast %150 : vector<64x1xf32> to vector<64x32xf32>
    %152 = arith.mulf %149, %151 : vector<64x32xf32>
    %c6_50 = arith.constant 6 : index
    %c0_51 = arith.constant 0 : index
    %153 = vector.load %arg9[%c6_50, %c0_51] : memref<9x32xf32, #tpu.memory_space<vmem>>, vector<1x32xf32>
    %154 = vector.broadcast %153 : vector<1x32xf32> to vector<64x32xf32>
    %155 = arith.mulf %152, %154 : vector<64x32xf32>
    %156 = arith.addf %132, %155 : vector<64x32xf32>
    %c56_i32_52 = arith.constant 56 : i32
    %157 = tpu.dynamic_rotate %104 by %c56_i32_52 dim 0 : vector<64x32xf32>, i32 -> vector<64x32xf32>
    %158 = vector.extract_strided_slice %18 {offsets = [0, 7], sizes = [64, 1], strides = [1, 1]} : vector<64x9xf32> to vector<64x1xf32>
    %159 = vector.broadcast %158 : vector<64x1xf32> to vector<64x32xf32>
    %160 = arith.mulf %157, %159 : vector<64x32xf32>
    %c7_53 = arith.constant 7 : index
    %c0_54 = arith.constant 0 : index
    %161 = vector.load %arg9[%c7_53, %c0_54] : memref<9x32xf32, #tpu.memory_space<vmem>>, vector<1x32xf32>
    %162 = vector.broadcast %161 : vector<1x32xf32> to vector<64x32xf32>
    %163 = arith.mulf %160, %162 : vector<64x32xf32>
    %164 = arith.addf %148, %163 : vector<64x32xf32>
    %c55_i32_55 = arith.constant 55 : i32
    %165 = tpu.dynamic_rotate %104 by %c55_i32_55 dim 0 : vector<64x32xf32>, i32 -> vector<64x32xf32>
    %166 = vector.extract_strided_slice %18 {offsets = [0, 8], sizes = [64, 1], strides = [1, 1]} : vector<64x9xf32> to vector<64x1xf32>
    %167 = vector.broadcast %166 : vector<64x1xf32> to vector<64x32xf32>
    %168 = arith.mulf %165, %167 : vector<64x32xf32>
    %c8_56 = arith.constant 8 : index
    %c0_57 = arith.constant 0 : index
    %169 = vector.load %arg9[%c8_56, %c0_57] : memref<9x32xf32, #tpu.memory_space<vmem>>, vector<1x32xf32>
    %170 = vector.broadcast %169 : vector<1x32xf32> to vector<64x32xf32>
    %171 = arith.mulf %168, %170 : vector<64x32xf32>
    %172 = arith.addf %156, %171 : vector<64x32xf32>
    %173 = arith.addf %172, %164 : vector<64x32xf32>
    %c0_58 = arith.constant 0 : index
    %c0_59 = arith.constant 0 : index
    %174 = vector.load %arg10[%c0_58, %c0_59] : memref<1x32xf32, #tpu.memory_space<vmem>>, vector<1x32xf32>
    %175 = vector.broadcast %174 : vector<1x32xf32> to vector<64x32xf32>
    %176 = arith.addf %173, %175 : vector<64x32xf32>
    %cst_60 = arith.constant 0.000000e+00 : f32
    %177 = vector.broadcast %cst_60 : f32 to vector<64x32xf32>
    %178 = arith.maximumf %176, %177 : vector<64x32xf32>
    %179 = arith.addf %1, %178 : vector<64x32xf32>
    %180 = arith.truncf %179 : vector<64x32xf32> to vector<64x32xbf16>
    %c0_61 = arith.constant 0 : index
    %c0_62 = arith.constant 0 : index
    %181 = vector.load %arg11[%c0_61, %c0_62] : memref<64x32xbf16, #tpu.memory_space<vmem>>, vector<64x32xbf16>
    tpu.vector_store %arg11[%c0_61, %c0_62], %180 {strides = array<i32>} : memref<64x32xbf16, #tpu.memory_space<vmem>>, vector<64x32xbf16>,
    return
  }
  func.func @transform_0(%arg0: i32) -> (i32, i32) {
    %c0_i32 = arith.constant 0 : i32
    %c0_i32_0 = arith.constant 0 : i32
    return %arg0, %c0_i32 : i32, i32
  }
  func.func @transform_1(%arg0: i32) -> (i32, i32) {
    %c0_i32 = arith.constant 0 : i32
    %c0_i32_0 = arith.constant 0 : i32
    %c0_i32_1 = arith.constant 0 : i32
    return %c0_i32, %c0_i32_0 : i32, i32
  }
  func.func @transform_2(%arg0: i32) -> (i32, i32) {
    %c0_i32 = arith.constant 0 : i32
    %c0_i32_0 = arith.constant 0 : i32
    %c0_i32_1 = arith.constant 0 : i32
    return %c0_i32, %c0_i32_0 : i32, i32
  }
  func.func @transform_3(%arg0: i32) -> (i32, i32) {
    %c0_i32 = arith.constant 0 : i32
    %c0_i32_0 = arith.constant 0 : i32
    %c0_i32_1 = arith.constant 0 : i32
    return %c0_i32, %c0_i32_0 : i32, i32
  }
  func.func @transform_4(%arg0: i32) -> (i32, i32) {
    %c0_i32 = arith.constant 0 : i32
    %c0_i32_0 = arith.constant 0 : i32
    %c0_i32_1 = arith.constant 0 : i32
    return %c0_i32, %c0_i32_0 : i32, i32
  }
  func.func @transform_5(%arg0: i32) -> (i32, i32) {
    %c0_i32 = arith.constant 0 : i32
    %c0_i32_0 = arith.constant 0 : i32
    %c0_i32_1 = arith.constant 0 : i32
    return %c0_i32, %c0_i32_0 : i32, i32
  }
  func.func @transform_6(%arg0: i32) -> (i32, i32) {
    %c0_i32 = arith.constant 0 : i32
    %c0_i32_0 = arith.constant 0 : i32
    %c0_i32_1 = arith.constant 0 : i32
    return %c0_i32, %c0_i32_0 : i32, i32
  }
  func.func @transform_7(%arg0: i32) -> (i32, i32) {
    %c0_i32 = arith.constant 0 : i32
    %c0_i32_0 = arith.constant 0 : i32
    %c0_i32_1 = arith.constant 0 : i32
    return %c0_i32, %c0_i32_0 : i32, i32
  }
  func.func @transform_8(%arg0: i32) -> (i32, i32) {
    %c0_i32 = arith.constant 0 : i32
    %c0_i32_0 = arith.constant 0 : i32
    %c0_i32_1 = arith.constant 0 : i32
    return %c0_i32, %c0_i32_0 : i32, i32
  }
  func.func @transform_9(%arg0: i32) -> (i32, i32) {
    %c0_i32 = arith.constant 0 : i32
    %c0_i32_0 = arith.constant 0 : i32
    %c0_i32_1 = arith.constant 0 : i32
    return %c0_i32, %c0_i32_0 : i32, i32
  }
  func.func @transform_10(%arg0: i32) -> (i32, i32) {
    %c0_i32 = arith.constant 0 : i32
    %c0_i32_0 = arith.constant 0 : i32
    return %arg0, %c0_i32 : i32, i32
  }
}

module attributes {stable_mosaic.version = 11 : i64} {
  func.func @kan_block_kernel(%arg0: i32, %arg1: memref<64x32xbf16, #tpu.memory_space<vmem>>, %arg2: memref<64x9xf32, #tpu.memory_space<vmem>>, %arg3: memref<32x32xbf16, #tpu.memory_space<vmem>>, %arg4: memref<1x32xf32, #tpu.memory_space<vmem>>, %arg5: memref<9x32xf32, #tpu.memory_space<vmem>>, %arg6: memref<1x32xf32, #tpu.memory_space<vmem>>, %arg7: memref<32x32xbf16, #tpu.memory_space<vmem>>, %arg8: memref<1x32xf32, #tpu.memory_space<vmem>>, %arg9: memref<9x32xf32, #tpu.memory_space<vmem>>, %arg10: memref<1x32xf32, #tpu.memory_space<vmem>>, %arg11: memref<64x32xbf16, #tpu.memory_space<vmem>>) attributes {dimension_semantics = [#tpu.dimension_semantics<parallel>], iteration_bounds = array<i64: 2>, scalar_prefetch = 0 : i64, scratch_operands = 0 : i64, tpu.core_type = #tpu.core_type<tc>, window_params = [{transform_indices = @transform_0, window_bounds = array<i64: 64, 32>}, {pipeline_mode = #tpu.pipeline_mode<synchronous>, transform_indices = @transform_1, window_bounds = array<i64: 64, 9>}, {pipeline_mode = #tpu.pipeline_mode<synchronous>, transform_indices = @transform_2, window_bounds = array<i64: 32, 32>}, {pipeline_mode = #tpu.pipeline_mode<synchronous>, transform_indices = @transform_3, window_bounds = array<i64: 1, 32>}, {pipeline_mode = #tpu.pipeline_mode<synchronous>, transform_indices = @transform_4, window_bounds = array<i64: 9, 32>}, {pipeline_mode = #tpu.pipeline_mode<synchronous>, transform_indices = @transform_5, window_bounds = array<i64: 1, 32>}, {pipeline_mode = #tpu.pipeline_mode<synchronous>, transform_indices = @transform_6, window_bounds = array<i64: 32, 32>}, {pipeline_mode = #tpu.pipeline_mode<synchronous>, transform_indices = @transform_7, window_bounds = array<i64: 1, 32>}, {pipeline_mode = #tpu.pipeline_mode<synchronous>, transform_indices = @transform_8, window_bounds = array<i64: 9, 32>}, {pipeline_mode = #tpu.pipeline_mode<synchronous>, transform_indices = @transform_9, window_bounds = array<i64: 1, 32>}, {transform_indices = @transform_10, window_bounds = array<i64: 64, 32>}]} {
    %c0 = arith.constant 0 : index
    %c0_0 = arith.constant 0 : index
    %0 = vector.load %arg1[%c0, %c0_0] : memref<64x32xbf16, #tpu.memory_space<vmem>>, vector<64x32xbf16>
    %1 = arith.extf %0 : vector<64x32xbf16> to vector<64x32xf32>
    %cst = arith.constant dense<0.000000e+00> : vector<64xf32>
    %2 = vector.multi_reduction <add>, %1, %cst [1] : vector<64x32xf32> to vector<64xf32>
    %3 = vector.shape_cast %2 : vector<64xf32> to vector<64x1xf32>
    %cst_1 = arith.constant 3.200000e+01 : f32
    %4 = vector.broadcast %cst_1 : f32 to vector<64x1xf32>
    %5 = arith.divf %3, %4 : vector<64x1xf32>
    %6 = vector.broadcast %5 : vector<64x1xf32> to vector<64x32xf32>
    %7 = arith.subf %1, %6 : vector<64x32xf32>
    %8 = arith.mulf %7, %7 : vector<64x32xf32>
    %cst_2 = arith.constant dense<0.000000e+00> : vector<64xf32>
    %9 = vector.multi_reduction <add>, %8, %cst_2 [1] : vector<64x32xf32> to vector<64xf32>
    %10 = vector.shape_cast %9 : vector<64xf32> to vector<64x1xf32>
    %cst_3 = arith.constant 3.200000e+01 : f32
    %11 = vector.broadcast %cst_3 : f32 to vector<64x1xf32>
    %12 = arith.divf %10, %11 : vector<64x1xf32>
    %cst_4 = arith.constant 9.99999974E-6 : f32
    %13 = vector.broadcast %cst_4 : f32 to vector<64x1xf32>
    %14 = arith.addf %12, %13 : vector<64x1xf32>
    %15 = math.rsqrt %14 : vector<64x1xf32>
    %16 = vector.broadcast %15 : vector<64x1xf32> to vector<64x32xf32>
    %17 = arith.mulf %7, %16 : vector<64x32xf32>
    %c0_5 = arith.constant 0 : index
    %c0_6 = arith.constant 0 : index
    %18 = vector.load %arg2[%c0_5, %c0_6] : memref<64x9xf32, #tpu.memory_space<vmem>>, vector<64x9xf32>
    %19 = arith.truncf %17 : vector<64x32xf32> to vector<64x32xbf16>
    %c0_7 = arith.constant 0 : index
    %c0_8 = arith.constant 0 : index
    %20 = vector.load %arg3[%c0_7, %c0_8] : memref<32x32xbf16, #tpu.memory_space<vmem>>, vector<32x32xbf16>
    %cst_9 = arith.constant dense<0.000000e+00> : vector<64x32xf32>
    %21 = tpu.matmul %19, %20, %cst_9 {dimension_numbers = #tpu.dot_dimension_numbers<[1], [0], [0], [1], [0, 0, 1, 1], [], []>} : vector<64x32xbf16>, vector<32x32xbf16>, vector<64x32xf32> -> vector<64x32xf32>
    %c0_10 = arith.constant 0 : index
    %c0_11 = arith.constant 0 : index
    %22 = vector.load %arg4[%c0_10, %c0_11] : memref<1x32xf32, #tpu.memory_space<vmem>>, vector<1x32xf32>
    %23 = vector.broadcast %22 : vector<1x32xf32> to vector<64x32xf32>
    %24 = arith.addf %21, %23 : vector<64x32xf32>
    %c4 = arith.constant 4 : index
    %c0_12 = arith.constant 0 : index
    %25 = vector.load %arg5[%c4, %c0_12] : memref<9x32xf32, #tpu.memory_space<vmem>>, vector<1x32xf32>
    %26 = vector.broadcast %25 : vector<1x32xf32> to vector<64x32xf32>
    %27 = arith.mulf %24, %26 : vector<64x32xf32>
    %cst_13 = arith.constant 0.000000e+00 : f32
    %28 = vector.broadcast %cst_13 : f32 to vector<64x32xf32>
    %c9_i32 = arith.constant 9 : i32
    %29 = tpu.dynamic_rotate %24 by %c9_i32 dim 0 : vector<64x32xf32>, i32 -> vector<64x32xf32>
    %30 = vector.extract_strided_slice %18 {offsets = [0, 0], sizes = [64, 1], strides = [1, 1]} : vector<64x9xf32> to vector<64x1xf32>
    %31 = vector.broadcast %30 : vector<64x1xf32> to vector<64x32xf32>
    %32 = arith.mulf %29, %31 : vector<64x32xf32>
    %c0_14 = arith.constant 0 : index
    %c0_15 = arith.constant 0 : index
    %33 = vector.load %arg5[%c0_14, %c0_15] : memref<9x32xf32, #tpu.memory_space<vmem>>, vector<1x32xf32>
    %34 = vector.broadcast %33 : vector<1x32xf32> to vector<64x32xf32>
    %35 = arith.mulf %32, %34 : vector<64x32xf32>
    %36 = arith.addf %27, %35 : vector<64x32xf32>
    %c8_i32 = arith.constant 8 : i32
    %37 = tpu.dynamic_rotate %24 by %c8_i32 dim 0 : vector<64x32xf32>, i32 -> vector<64x32xf32>
    %38 = vector.extract_strided_slice %18 {offsets = [0, 1], sizes = [64, 1], strides = [1, 1]} : vector<64x9xf32> to vector<64x1xf32>
    %39 = vector.broadcast %38 : vector<64x1xf32> to vector<64x32xf32>
    %40 = arith.mulf %37, %39 : vector<64x32xf32>
    %c1 = arith.constant 1 : index
    %c0_16 = arith.constant 0 : index
    %41 = vector.load %arg5[%c1, %c0_16] : memref<9x32xf32, #tpu.memory_space<vmem>>, vector<1x32xf32>
    %42 = vector.broadcast %41 : vector<1x32xf32> to vector<64x32xf32>
    %43 = arith.mulf %40, %42 : vector<64x32xf32>
    %44 = arith.addf %28, %43 : vector<64x32xf32>
    %c7_i32 = arith.constant 7 : i32
    %45 = tpu.dynamic_rotate %24 by %c7_i32 dim 0 : vector<64x32xf32>, i32 -> vector<64x32xf32>
    %46 = vector.extract_strided_slice %18 {offsets = [0, 2], sizes = [64, 1], strides = [1, 1]} : vector<64x9xf32> to vector<64x1xf32>
    %47 = vector.broadcast %46 : vector<64x1xf32> to vector<64x32xf32>
    %48 = arith.mulf %45, %47 : vector<64x32xf32>
    %c2 = arith.constant 2 : index
    %c0_17 = arith.constant 0 : index
    %49 = vector.load %arg5[%c2, %c0_17] : memref<9x32xf32, #tpu.memory_space<vmem>>, vector<1x32xf32>
    %50 = vector.broadcast %49 : vector<1x32xf32> to vector<64x32xf32>
    %51 = arith.mulf %48, %50 : vector<64x32xf32>
    %52 = arith.addf %36, %51 : vector<64x32xf32>
    %c1_i32 = arith.constant 1 : i32
    %53 = tpu.dynamic_rotate %24 by %c1_i32 dim 0 : vector<64x32xf32>, i32 -> vector<64x32xf32>
    %54 = vector.extract_strided_slice %18 {offsets = [0, 3], sizes = [64, 1], strides = [1, 1]} : vector<64x9xf32> to vector<64x1xf32>
    %55 = vector.broadcast %54 : vector<64x1xf32> to vector<64x32xf32>
    %56 = arith.mulf %53, %55 : vector<64x32xf32>
    %c3 = arith.constant 3 : index
    %c0_18 = arith.constant 0 : index
    %57 = vector.load %arg5[%c3, %c0_18] : memref<9x32xf32, #tpu.memory_space<vmem>>, vector<1x32xf32>
    %58 = vector.broadcast %57 : vector<1x32xf32> to vector<64x32xf32>
    %59 = arith.mulf %56, %58 : vector<64x32xf32>
    %60 = arith.addf %44, %59 : vector<64x32xf32>
    %c63_i32 = arith.constant 63 : i32
    %61 = tpu.dynamic_rotate %24 by %c63_i32 dim 0 : vector<64x32xf32>, i32 -> vector<64x32xf32>
    %62 = vector.extract_strided_slice %18 {offsets = [0, 5], sizes = [64, 1], strides = [1, 1]} : vector<64x9xf32> to vector<64x1xf32>
    %63 = vector.broadcast %62 : vector<64x1xf32> to vector<64x32xf32>
    %64 = arith.mulf %61, %63 : vector<64x32xf32>
    %c5 = arith.constant 5 : index
    %c0_19 = arith.constant 0 : index
    %65 = vector.load %arg5[%c5, %c0_19] : memref<9x32xf32, #tpu.memory_space<vmem>>, vector<1x32xf32>
    %66 = vector.broadcast %65 : vector<1x32xf32> to vector<64x32xf32>
    %67 = arith.mulf %64, %66 : vector<64x32xf32>
    %68 = arith.addf %60, %67 : vector<64x32xf32>
    %c57_i32 = arith.constant 57 : i32
    %69 = tpu.dynamic_rotate %24 by %c57_i32 dim 0 : vector<64x32xf32>, i32 -> vector<64x32xf32>
    %70 = vector.extract_strided_slice %18 {offsets = [0, 6], sizes = [64, 1], strides = [1, 1]} : vector<64x9xf32> to vector<64x1xf32>
    %71 = vector.broadcast %70 : vector<64x1xf32> to vector<64x32xf32>
    %72 = arith.mulf %69, %71 : vector<64x32xf32>
    %c6 = arith.constant 6 : index
    %c0_20 = arith.constant 0 : index
    %73 = vector.load %arg5[%c6, %c0_20] : memref<9x32xf32, #tpu.memory_space<vmem>>, vector<1x32xf32>
    %74 = vector.broadcast %73 : vector<1x32xf32> to vector<64x32xf32>
    %75 = arith.mulf %72, %74 : vector<64x32xf32>
    %76 = arith.addf %52, %75 : vector<64x32xf32>
    %c56_i32 = arith.constant 56 : i32
    %77 = tpu.dynamic_rotate %24 by %c56_i32 dim 0 : vector<64x32xf32>, i32 -> vector<64x32xf32>
    %78 = vector.extract_strided_slice %18 {offsets = [0, 7], sizes = [64, 1], strides = [1, 1]} : vector<64x9xf32> to vector<64x1xf32>
    %79 = vector.broadcast %78 : vector<64x1xf32> to vector<64x32xf32>
    %80 = arith.mulf %77, %79 : vector<64x32xf32>
    %c7 = arith.constant 7 : index
    %c0_21 = arith.constant 0 : index
    %81 = vector.load %arg5[%c7, %c0_21] : memref<9x32xf32, #tpu.memory_space<vmem>>, vector<1x32xf32>
    %82 = vector.broadcast %81 : vector<1x32xf32> to vector<64x32xf32>
    %83 = arith.mulf %80, %82 : vector<64x32xf32>
    %84 = arith.addf %68, %83 : vector<64x32xf32>
    %c55_i32 = arith.constant 55 : i32
    %85 = tpu.dynamic_rotate %24 by %c55_i32 dim 0 : vector<64x32xf32>, i32 -> vector<64x32xf32>
    %86 = vector.extract_strided_slice %18 {offsets = [0, 8], sizes = [64, 1], strides = [1, 1]} : vector<64x9xf32> to vector<64x1xf32>
    %87 = vector.broadcast %86 : vector<64x1xf32> to vector<64x32xf32>
    %88 = arith.mulf %85, %87 : vector<64x32xf32>
    %c8 = arith.constant 8 : index
    %c0_22 = arith.constant 0 : index
    %89 = vector.load %arg5[%c8, %c0_22] : memref<9x32xf32, #tpu.memory_space<vmem>>, vector<1x32xf32>
    %90 = vector.broadcast %89 : vector<1x32xf32> to vector<64x32xf32>
    %91 = arith.mulf %88, %90 : vector<64x32xf32>
    %92 = arith.addf %76, %91 : vector<64x32xf32>
    %93 = arith.addf %92, %84 : vector<64x32xf32>
    %c0_23 = arith.constant 0 : index
    %c0_24 = arith.constant 0 : index
    %94 = vector.load %arg6[%c0_23, %c0_24] : memref<1x32xf32, #tpu.memory_space<vmem>>, vector<1x32xf32>
    %95 = vector.broadcast %94 : vector<1x32xf32> to vector<64x32xf32>
    %96 = arith.addf %93, %95 : vector<64x32xf32>
    %cst_25 = arith.constant 0.000000e+00 : f32
    %97 = vector.broadcast %cst_25 : f32 to vector<64x32xf32>
    %98 = arith.maximumf %96, %97 : vector<64x32xf32>
    %99 = arith.truncf %98 : vector<64x32xf32> to vector<64x32xbf16>
    %c0_26 = arith.constant 0 : index
    %c0_27 = arith.constant 0 : index
    %100 = vector.load %arg7[%c0_26, %c0_27] : memref<32x32xbf16, #tpu.memory_space<vmem>>, vector<32x32xbf16>
    %cst_28 = arith.constant dense<0.000000e+00> : vector<64x32xf32>
    %101 = tpu.matmul %99, %100, %cst_28 {dimension_numbers = #tpu.dot_dimension_numbers<[1], [0], [0], [1], [0, 0, 1, 1], [], []>} : vector<64x32xbf16>, vector<32x32xbf16>, vector<64x32xf32> -> vector<64x32xf32>
    %c0_29 = arith.constant 0 : index
    %c0_30 = arith.constant 0 : index
    %102 = vector.load %arg8[%c0_29, %c0_30] : memref<1x32xf32, #tpu.memory_space<vmem>>, vector<1x32xf32>
    %103 = vector.broadcast %102 : vector<1x32xf32> to vector<64x32xf32>
    %104 = arith.addf %101, %103 : vector<64x32xf32>
    %c4_31 = arith.constant 4 : index
    %c0_32 = arith.constant 0 : index
    %105 = vector.load %arg9[%c4_31, %c0_32] : memref<9x32xf32, #tpu.memory_space<vmem>>, vector<1x32xf32>
    %106 = vector.broadcast %105 : vector<1x32xf32> to vector<64x32xf32>
    %107 = arith.mulf %104, %106 : vector<64x32xf32>
    %cst_33 = arith.constant 0.000000e+00 : f32
    %108 = vector.broadcast %cst_33 : f32 to vector<64x32xf32>
    %c9_i32_34 = arith.constant 9 : i32
    %109 = tpu.dynamic_rotate %104 by %c9_i32_34 dim 0 : vector<64x32xf32>, i32 -> vector<64x32xf32>
    %110 = vector.extract_strided_slice %18 {offsets = [0, 0], sizes = [64, 1], strides = [1, 1]} : vector<64x9xf32> to vector<64x1xf32>
    %111 = vector.broadcast %110 : vector<64x1xf32> to vector<64x32xf32>
    %112 = arith.mulf %109, %111 : vector<64x32xf32>
    %c0_35 = arith.constant 0 : index
    %c0_36 = arith.constant 0 : index
    %113 = vector.load %arg9[%c0_35, %c0_36] : memref<9x32xf32, #tpu.memory_space<vmem>>, vector<1x32xf32>
    %114 = vector.broadcast %113 : vector<1x32xf32> to vector<64x32xf32>
    %115 = arith.mulf %112, %114 : vector<64x32xf32>
    %116 = arith.addf %107, %115 : vector<64x32xf32>
    %c8_i32_37 = arith.constant 8 : i32
    %117 = tpu.dynamic_rotate %104 by %c8_i32_37 dim 0 : vector<64x32xf32>, i32 -> vector<64x32xf32>
    %118 = vector.extract_strided_slice %18 {offsets = [0, 1], sizes = [64, 1], strides = [1, 1]} : vector<64x9xf32> to vector<64x1xf32>
    %119 = vector.broadcast %118 : vector<64x1xf32> to vector<64x32xf32>
    %120 = arith.mulf %117, %119 : vector<64x32xf32>
    %c1_38 = arith.constant 1 : index
    %c0_39 = arith.constant 0 : index
    %121 = vector.load %arg9[%c1_38, %c0_39] : memref<9x32xf32, #tpu.memory_space<vmem>>, vector<1x32xf32>
    %122 = vector.broadcast %121 : vector<1x32xf32> to vector<64x32xf32>
    %123 = arith.mulf %120, %122 : vector<64x32xf32>
    %124 = arith.addf %108, %123 : vector<64x32xf32>
    %c7_i32_40 = arith.constant 7 : i32
    %125 = tpu.dynamic_rotate %104 by %c7_i32_40 dim 0 : vector<64x32xf32>, i32 -> vector<64x32xf32>
    %126 = vector.extract_strided_slice %18 {offsets = [0, 2], sizes = [64, 1], strides = [1, 1]} : vector<64x9xf32> to vector<64x1xf32>
    %127 = vector.broadcast %126 : vector<64x1xf32> to vector<64x32xf32>
    %128 = arith.mulf %125, %127 : vector<64x32xf32>
    %c2_41 = arith.constant 2 : index
    %c0_42 = arith.constant 0 : index
    %129 = vector.load %arg9[%c2_41, %c0_42] : memref<9x32xf32, #tpu.memory_space<vmem>>, vector<1x32xf32>
    %130 = vector.broadcast %129 : vector<1x32xf32> to vector<64x32xf32>
    %131 = arith.mulf %128, %130 : vector<64x32xf32>
    %132 = arith.addf %116, %131 : vector<64x32xf32>
    %c1_i32_43 = arith.constant 1 : i32
    %133 = tpu.dynamic_rotate %104 by %c1_i32_43 dim 0 : vector<64x32xf32>, i32 -> vector<64x32xf32>
    %134 = vector.extract_strided_slice %18 {offsets = [0, 3], sizes = [64, 1], strides = [1, 1]} : vector<64x9xf32> to vector<64x1xf32>
    %135 = vector.broadcast %134 : vector<64x1xf32> to vector<64x32xf32>
    %136 = arith.mulf %133, %135 : vector<64x32xf32>
    %c3_44 = arith.constant 3 : index
    %c0_45 = arith.constant 0 : index
    %137 = vector.load %arg9[%c3_44, %c0_45] : memref<9x32xf32, #tpu.memory_space<vmem>>, vector<1x32xf32>
    %138 = vector.broadcast %137 : vector<1x32xf32> to vector<64x32xf32>
    %139 = arith.mulf %136, %138 : vector<64x32xf32>
    %140 = arith.addf %124, %139 : vector<64x32xf32>
    %c63_i32_46 = arith.constant 63 : i32
    %141 = tpu.dynamic_rotate %104 by %c63_i32_46 dim 0 : vector<64x32xf32>, i32 -> vector<64x32xf32>
    %142 = vector.extract_strided_slice %18 {offsets = [0, 5], sizes = [64, 1], strides = [1, 1]} : vector<64x9xf32> to vector<64x1xf32>
    %143 = vector.broadcast %142 : vector<64x1xf32> to vector<64x32xf32>
    %144 = arith.mulf %141, %143 : vector<64x32xf32>
    %c5_47 = arith.constant 5 : index
    %c0_48 = arith.constant 0 : index
    %145 = vector.load %arg9[%c5_47, %c0_48] : memref<9x32xf32, #tpu.memory_space<vmem>>, vector<1x32xf32>
    %146 = vector.broadcast %145 : vector<1x32xf32> to vector<64x32xf32>
    %147 = arith.mulf %144, %146 : vector<64x32xf32>
    %148 = arith.addf %140, %147 : vector<64x32xf32>
    %c57_i32_49 = arith.constant 57 : i32
    %149 = tpu.dynamic_rotate %104 by %c57_i32_49 dim 0 : vector<64x32xf32>, i32 -> vector<64x32xf32>
    %150 = vector.extract_strided_slice %18 {offsets = [0, 6], sizes = [64, 1], strides = [1, 1]} : vector<64x9xf32> to vector<64x1xf32>
    %151 = vector.broadcast %150 : vector<64x1xf32> to vector<64x32xf32>
    %152 = arith.mulf %149, %151 : vector<64x32xf32>
    %c6_50 = arith.constant 6 : index
    %c0_51 = arith.constant 0 : index
    %153 = vector.load %arg9[%c6_50, %c0_51] : memref<9x32xf32, #tpu.memory_space<vmem>>, vector<1x32xf32>
    %154 = vector.broadcast %153 : vector<1x32xf32> to vector<64x32xf32>
    %155 = arith.mulf %152, %154 : vector<64x32xf32>
    %156 = arith.addf %132, %155 : vector<64x32xf32>
    %c56_i32_52 = arith.constant 56 : i32
    %157 = tpu.dynamic_rotate %104 by %c56_i32_52 dim 0 : vector<64x32xf32>, i32 -> vector<64x32xf32>
    %158 = vector.extract_strided_slice %18 {offsets = [0, 7], sizes = [64, 1], strides = [1, 1]} : vector<64x9xf32> to vector<64x1xf32>
    %159 = vector.broadcast %158 : vector<64x1xf32> to vector<64x32xf32>
    %160 = arith.mulf %157, %159 : vector<64x32xf32>
    %c7_53 = arith.constant 7 : index
    %c0_54 = arith.constant 0 : index
    %161 = vector.load %arg9[%c7_53, %c0_54] : memref<9x32xf32, #tpu.memory_space<vmem>>, vector<1x32xf32>
    %162 = vector.broadcast %161 : vector<1x32xf32> to vector<64x32xf32>
    %163 = arith.mulf %160, %162 : vector<64x32xf32>
    %164 = arith.addf %148, %163 : vector<64x32xf32>
    %c55_i32_55 = arith.constant 55 : i32
    %165 = tpu.dynamic_rotate %104 by %c55_i32_55 dim 0 : vector<64x32xf32>, i32 -> vector<64x32xf32>
    %166 = vector.extract_strided_slice %18 {offsets = [0, 8], sizes = [64, 1], strides = [1, 1]} : vector<64x9xf32> to vector<64x1xf32>
    %167 = vector.broadcast %166 : vector<64x1xf32> to vector<64x32xf32>
    %168 = arith.mulf %165, %167 : vector<64x32xf32>
    %c8_56 = arith.constant 8 : index
    %c0_57 = arith.constant 0 : index
    %169 = vector.load %arg9[%c8_56, %c0_57] : memref<9x32xf32, #tpu.memory_space<vmem>>, vector<1x32xf32>
    %170 = vector.broadcast %169 : vector<1x32xf32> to vector<64x32xf32>
    %171 = arith.mulf %168, %170 : vector<64x32xf32>
    %172 = arith.addf %156, %171 : vector<64x32xf32>
    %173 = arith.addf %172, %164 : vector<64x32xf32>
    %c0_58 = arith.constant 0 : index
    %c0_59 = arith.constant 0 : index
    %174 = vector.load %arg10[%c0_58, %c0_59] : memref<1x32xf32, #tpu.memory_space<vmem>>, vector<1x32xf32>
    %175 = vector.broadcast %174 : vector<1x32xf32> to vector<64x32xf32>
    %176 = arith.addf %173, %175 : vector<64x32xf32>
    %cst_60 = arith.constant 0.000000e+00 : f32
    %177 = vector.broadcast %cst_60 : f32 to vector<64x32xf32>
    %178 = arith.maximumf %176, %177 : vector<64x32xf32>
    %179 = arith.addf %1, %178 : vector<64x32xf32>
    %180 = arith.truncf %179 : vector<64x32xf32> to vector<64x32xbf16>
    %c0_61 = arith.constant 0 : index
    %c0_62 = arith.constant 0 : index
    %181 = vector.load %arg11[%c0_61, %c0_62] : memref<64x32xbf16, #tpu.memory_space<vmem>>, vector<64x32xbf16>
    tpu.vector_store %arg11[%c0_61, %c0_62], %180 {strides = array<i32>} : memref<64x32xbf16, #tpu.memory_space<vmem>>, vector<64x32xbf16>,
    return
  }
  func.func @transform_0(%arg0: i32) -> (i32, i32) {
    %c0_i32 = arith.constant 0 : i32
    %c0_i32_0 = arith.constant 0 : i32
    return %arg0, %c0_i32 : i32, i32
  }
  func.func @transform_1(%arg0: i32) -> (i32, i32) {
    %c0_i32 = arith.constant 0 : i32
    %c0_i32_0 = arith.constant 0 : i32
    %c0_i32_1 = arith.constant 0 : i32
    return %c0_i32, %c0_i32_0 : i32, i32
  }
  func.func @transform_2(%arg0: i32) -> (i32, i32) {
    %c0_i32 = arith.constant 0 : i32
    %c0_i32_0 = arith.constant 0 : i32
    %c0_i32_1 = arith.constant 0 : i32
    return %c0_i32, %c0_i32_0 : i32, i32
  }
  func.func @transform_3(%arg0: i32) -> (i32, i32) {
    %c0_i32 = arith.constant 0 : i32
    %c0_i32_0 = arith.constant 0 : i32
    %c0_i32_1 = arith.constant 0 : i32
    return %c0_i32, %c0_i32_0 : i32, i32
  }
  func.func @transform_4(%arg0: i32) -> (i32, i32) {
    %c0_i32 = arith.constant 0 : i32
    %c0_i32_0 = arith.constant 0 : i32
    %c0_i32_1 = arith.constant 0 : i32
    return %c0_i32, %c0_i32_0 : i32, i32
  }
  func.func @transform_5(%arg0: i32) -> (i32, i32) {
    %c0_i32 = arith.constant 0 : i32
    %c0_i32_0 = arith.constant 0 : i32
    %c0_i32_1 = arith.constant 0 : i32
    return %c0_i32, %c0_i32_0 : i32, i32
  }
  func.func @transform_6(%arg0: i32) -> (i32, i32) {
    %c0_i32 = arith.constant 0 : i32
    %c0_i32_0 = arith.constant 0 : i32
    %c0_i32_1 = arith.constant 0 : i32
    return %c0_i32, %c0_i32_0 : i32, i32
  }
  func.func @transform_7(%arg0: i32) -> (i32, i32) {
    %c0_i32 = arith.constant 0 : i32
    %c0_i32_0 = arith.constant 0 : i32
    %c0_i32_1 = arith.constant 0 : i32
    return %c0_i32, %c0_i32_0 : i32, i32
  }
  func.func @transform_8(%arg0: i32) -> (i32, i32) {
    %c0_i32 = arith.constant 0 : i32
    %c0_i32_0 = arith.constant 0 : i32
    %c0_i32_1 = arith.constant 0 : i32
    return %c0_i32, %c0_i32_0 : i32, i32
  }
  func.func @transform_9(%arg0: i32) -> (i32, i32) {
    %c0_i32 = arith.constant 0 : i32
    %c0_i32_0 = arith.constant 0 : i32
    %c0_i32_1 = arith.constant 0 : i32
    return %c0_i32, %c0_i32_0 : i32, i32
  }
  func.func @transform_10(%arg0: i32) -> (i32, i32) {
    %c0_i32 = arith.constant 0 : i32
    %c0_i32_0 = arith.constant 0 : i32
    return %arg0, %c0_i32 : i32, i32
  }
}

</mosaic_0001>

<bundles_post_ra>
// kernel: tpu_custom_call.1
= control target key start
LH: loop header
LB: loop body
LE: loop exit
PB: predicated region body
PF: predicated region fallthrough
CT: control target
= control target key end

     0   :  { %s1953_s13 = smov 0   ;;  %s3256_s0 = inlined_call_operand.vmem [shape: bf16[128,32], index: 0, kind: input, shape index: {}]   ;;  %s3257_s1 = inlined_call_operand.vmem [shape: f32[64,9], index: 1, kind: input, shape index: {}]   ;;  %s3258_s2 = inlined_call_operand.vmem [shape: bf16[32,32], index: 2, kind: input, shape index: {}]   ;;  %s3259_s3 = inlined_call_operand.vmem [shape: f32[1,32], index: 3, kind: input, shape index: {}]   ;;  %s3260_s4 = inlined_call_operand.vmem [shape: f32[9,32], index: 4, kind: input, shape index: {}]   ;;  %s3261_s5 = inlined_call_operand.vmem [shape: f32[1,32], index: 5, kind: input, shape index: {}]   ;;  %s3262_s6 = inlined_call_operand.vmem [shape: bf16[32,32], index: 6, kind: input, shape index: {}]   ;;  %s3263_s7 = inlined_call_operand.vmem [shape: f32[1,32], index: 7, kind: input, shape index: {}]   ;;  %s3264_s8 = inlined_call_operand.vmem [shape: f32[9,32], index: 8, kind: input, shape index: {}]   ;;  %s3265_s9 = inlined_call_operand.vmem [shape: f32[1,32], index: 9, kind: input, shape index: {}]   ;;  %s3266_s10 = inlined_call_operand.vmem [shape: bf16[128,32], index: 10, kind: output, shape index: {}]  }
   0x1 LB: > { %s1691_s14 = sadd.s32 4294967295, %s1888_s13   ;;  %p1695_p0 = scmp.ge.s32.totalorder %s1888_s13, 1  ;;  %s1888_s13 = sphi %s1953_s13, %s20_s13  }
   0x2   : > { %p313_p1 = scmp.lt.s32.totalorder %s1888_s13, 3 }
   0x4   : > { %p314_p2 = pnand %p1695_p0, %p313_p1 }
   0x6   : > { %317 = sbr.rel (%p314_p2) target bundleno = 913 (0x391), region = 60 }
   0xd   : > { %s1696_s15 = sshll.u32 %s1691_s14, 3  ;;  %vm380_vm0 = vcmask 261120   ;;  %v1890_v20 = vmov 0   ;;  %v1891_v21 = vmov 2   ;;  %v2054_v62 = vld [vmem:[%s3257_s1 + $0x8] sm:$0xff]  ;;  %v1862_v63 = vld [vmem:[%s3258_s2] sm:$0xff]  }
   0xe   : > { %p352_p3 = scmp.lt.s32.totalorder %s1696_s15, 15  ;;  %1823 = vset.pattern.permute.xlu1 %v1890_v20  ;;  %1828 = vset.pattern.permute.xlu0 %v1891_v21  ;;  %vm1626_vm3 = vcmask 257024  }
   0xf   : > { %1783 = vmatprep.subr.bf16.mxu0 %v1862_v63 }
  0x10   : > { %s3565_s15 = smov (!%p352_p3, %s1696_s15), 15  ;;  %1784 = vmatpush3.bf16.msra.mxu0 %v1862_v63 }
  0x11   : > { %s1697_s16 = sshll.u32 %s3565_s15, 2 }
  0x12   : > { %s355_s19 = scalar_lea.vmem %s3256_s0, %s1697_s16  ;;  %s3125_s22 = scalar_lea.vmem %s3266_s10, %s1697_s16 }
  0x13   : > { %v1753_v0 = vld [vmem:[%s355_s19] sm:$0xff]   ;;  %v1768_v1 = vld [vmem:[%s355_s19 + $0x8] sm:$0xff]   ;;  %v1769_v6 = vld [vmem:[%s355_s19 + $0x10] sm:$0xff]  }
  0x14   : > { %v1969_v2 = vunpack.c.l.bf16 %v1753_v0  ;;  %v1971_v3 = vunpack.c.l.bf16 %v1768_v1  ;;  %v1973_v4 = vunpack.c.h.bf16 %v1753_v0  ;;  %v1975_v5 = vunpack.c.h.bf16 %v1768_v1  ;;  %v1770_v13 = vld [vmem:[%s355_s19 + $0x18] sm:$0xff]   ;;  %v2063_v0 = vld [vmem:[%s3257_s1 + $0x10] sm:$0xff]  ;;  %v1863_v1 = vld [vmem:[%s3258_s2 + $0x8] sm:$0xff]  }
  0x15   : > { %v1985_v11 = vunpack.c.l.bf16 %v1769_v6  ;;  %v1987_v12 = vunpack.c.h.bf16 %v1769_v6  ;;  %v1993_v16 = vunpack.c.l.bf16 %v1770_v13  ;;  %v1995_v17 = vunpack.c.h.bf16 %v1770_v13  ;;  %1785 = vmatprep.subr.bf16.mxu0 %v1863_v1  ;;  %v2073_v6 = vld [vmem:[%s3257_s1 + $0x18] sm:$0xff] }
  0x16   : > { %3347 = vst [vmem:[#allocation2_spill] sm:$0xff] %v1969_v2  ;;  %3348 = vst [vmem:[#allocation3_spill] sm:$0xff] %v1971_v3  ;;  %v381_v7 = vsel %vm380_vm0, %v1969_v2, 0.0  ;;  %v387_v8 = vsel %vm380_vm0, %v1971_v3, 0.0  ;;  %v384_v9 = vsel %vm380_vm0, %v1973_v4, 0.0  ;;  %v390_v10 = vsel %vm380_vm0, %v1975_v5, 0.0  ;;  %1786 = vmatpush3.bf16.msra.mxu0 %v1863_v1 }
  0x17   : > { %3349 = vst [vmem:[#allocation4_spill] sm:$0xff] %v1973_v4  ;;  %3350 = vst [vmem:[#allocation5_spill] sm:$0xff] %v1975_v5  ;;  %382 = vadd.xlane.f32.xlu0 %v381_v7  ;;  %388 = vadd.xlane.f32.xlu1 %v387_v8  ;;  %v393_v14 = vsel %vm380_vm0, %v1985_v11, 0.0  ;;  %v396_v15 = vsel %vm380_vm0, %v1987_v12, 0.0  ;;  %v399_v18 = vsel %vm380_vm0, %v1993_v16, 0.0  ;;  %v402_v19 = vsel %vm380_vm0, %v1995_v17, 0.0 }
  0x18   : > { %3351 = vst [vmem:[#allocation6_spill] sm:$0xff] %v1985_v11  ;;  %3352 = vst [vmem:[#allocation7_spill] sm:$0xff] %v1987_v12  ;;  %v1892_v7 = vmov 8   ;;  %v486_v8 = vld [vmem:[%s3257_s1] sm:$0xff]  ;;  %v2094_v13 = vld [vmem:[%s3257_s1 + $0x38] sm:$0xff] }
  0x19   : > { %3353 = vst [vmem:[#allocation8_spill] sm:$0xff] %v1993_v16  ;;  %3354 = vst [vmem:[#allocation9_spill] sm:$0xff] %v1995_v17 }
  0x1b   : > { %385 = vadd.xlane.f32.xlu0 %v384_v9  ;;  %391 = vadd.xlane.f32.xlu1 %v390_v10  ;;  %v1893_v9 = vmov 1   ;;  %v2088_v10 = vld [vmem:[%s3257_s1 + $0x20] sm:$0xff] }
  0x1f   : > { %394 = vadd.xlane.f32.xlu0 %v393_v14  ;;  %397 = vadd.xlane.f32.xlu1 %v396_v15  ;;  %v2102_v14 = vld [vmem:[%s3257_s1 + $0x28] sm:$0xff]  ;;  %v1894_v15 = vmov 3  }
  0x23   : > { %400 = vadd.xlane.f32.xlu0 %v399_v18  ;;  %403 = vadd.xlane.f32.xlu1 %v402_v19  ;;  %v2120_v18 = vld [vmem:[%s3257_s1 + $0x30] sm:$0xff]  ;;  %v1895_v19 = vmov 5  }
  0xa4   : > { %v383_v22 = vpop.xlane.xlu0 %382  ;;  %v389_v23 = vpop.xlane.xlu1 %388 }
  0xa5   : > { %v406_v24 = vmul.f32 0.03125, %v383_v22  ;;  %v408_v25 = vmul.f32 0.03125, %v389_v23  ;;  %v1896_v22 = vmov 6   ;;  %v1897_v23 = vmov 7  }
  0xa7   : > { %v2004_v26 = vsub.f32 %v1969_v2, %v406_v24  ;;  %v2007_v27 = vsub.f32 %v1971_v3, %v408_v25  ;;  %v2335_v3 = vld [vmem:[%s3260_s4 + $0x4] ss:$0 sm:$0xff] }
  0xa8   : > { %v386_v28 = vpop.xlane.xlu0 %385  ;;  %v392_v29 = vpop.xlane.xlu1 %391 }
  0xa9   : > { %v407_v30 = vmul.f32 0.03125, %v386_v28  ;;  %v409_v31 = vmul.f32 0.03125, %v392_v29  ;;  %v422_v32 = vmul.f32 %v2004_v26, %v2004_v26  ;;  %v424_v33 = vmul.f32 %v2007_v27, %v2007_v27 }
  0xab   : > { %v2014_v34 = vsub.f32 %v1973_v4, %v407_v30  ;;  %v2017_v35 = vsub.f32 %v1975_v5, %v409_v31  ;;  %v430_v36 = vsel %vm380_vm0, %v422_v32, 0.0  ;;  %v436_v39 = vsel %vm380_vm0, %v424_v33, 0.0  ;;  %v2323_v5 = vld [vmem:[%s3259_s3] ss:$0 sm:$0xff] }
  0xac   : > { %431 = vadd.xlane.f32.xlu0 %v430_v36  ;;  %v395_v37 = vpop.xlane.xlu0 %394  ;;  %v398_v38 = vpop.xlane.xlu1 %397 }
  0xad   : > { %v410_v40 = vmul.f32 0.03125, %v395_v37  ;;  %v411_v41 = vmul.f32 0.03125, %v398_v38  ;;  %v423_v42 = vmul.f32 %v2014_v34, %v2014_v34  ;;  %v425_v43 = vmul.f32 %v2017_v35, %v2017_v35 }
  0xaf   : > { %v2026_v44 = vsub.f32 %v1985_v11, %v410_v40  ;;  %v2029_v45 = vsub.f32 %v1987_v12, %v411_v41  ;;  %v433_v46 = vsel %vm380_vm0, %v423_v42, 0.0  ;;  %v439_v49 = vsel %vm380_vm0, %v425_v43, 0.0 }
  0xb0   : > { %437 = vadd.xlane.f32.xlu0 %v436_v39  ;;  %434 = vadd.xlane.f32.xlu1 %v433_v46  ;;  %v401_v47 = vpop.xlane.xlu0 %400  ;;  %v404_v48 = vpop.xlane.xlu1 %403  ;;  %v619_v12 = vlaneseq }
  0xb1   : > { %v412_v50 = vmul.f32 0.03125, %v401_v47  ;;  %v413_v51 = vmul.f32 0.03125, %v404_v48  ;;  %v426_v52 = vmul.f32 %v2026_v44, %v2026_v44  ;;  %v427_v53 = vmul.f32 %v2029_v45, %v2029_v45 }
  0xb3   : > { %v2038_v54 = vsub.f32 %v1993_v16, %v412_v50  ;;  %v2041_v55 = vsub.f32 %v1995_v17, %v413_v51  ;;  %v442_v56 = vsel %vm380_vm0, %v426_v52, 0.0  ;;  %v445_v57 = vsel %vm380_vm0, %v427_v53, 0.0 }
  0xb4   : > { %440 = vadd.xlane.f32.xlu1 %v439_v49  ;;  %443 = vadd.xlane.f32.xlu0 %v442_v56  ;;  %v2325_v17 = vshrl.u32 %v619_v12, 7 }
  0xb5   : > { %v428_v58 = vmul.f32 %v2038_v54, %v2038_v54  ;;  %v429_v59 = vmul.f32 %v2041_v55, %v2041_v55 }
  0xb6   : > { %vm621_vm1 = vcmp.lt.s32.totalorder %v2325_v17, 1  ;;  %vm768_vm2 = vcmp.lt.s32.totalorder %v2325_v17, 7 }
  0xb7   : > { %v448_v60 = vsel %vm380_vm0, %v428_v58, 0.0  ;;  %v451_v61 = vsel %vm380_vm0, %v429_v59, 0.0 }
  0xb8   : > { %446 = vadd.xlane.f32.xlu1 %v445_v57  ;;  %449 = vadd.xlane.f32.xlu0 %v448_v60 }
  0xbc   : > { %452 = vadd.xlane.f32.xlu1 %v451_v61 }
  0xcd   : > { %637 = vperm.xlu1 %1823, %v2054_v62  }
  0xce   : > { %786 = vperm.xlu0 %1828, %v2063_v0  }
  0xd1   : > { %642 = vperm.xlu1 %1823, %v2063_v0  }
  0xd2   : > { %1837 = vset.pattern.permute.xlu0 %v1892_v7 }
  0xd3   : > { %1087 = vperm.xlu0 %1837, %v2054_v62  }
  0xd5   : > { %647 = vperm.xlu1 %1823, %v2073_v6  }
  0xd7   : > { %1091 = vperm.xlu0 %1837, %v2063_v0  }
  0xd9   : > { %1824 = vset.pattern.permute.xlu1 %v1893_v9 }
  0xda   : > { %700 = vperm.xlu1 %1824, %v486_v8  }
  0xdb   : > { %1839 = vset.pattern.permute.xlu0 %v1890_v20 }
  0xdc   : > { %632 = vperm.xlu0 %1839, %v486_v8  }
  0xde   : > { %704 = vperm.xlu1 %1824, %v2054_v62  }
  0xe0   : > { %652 = vperm.xlu0 %1839, %v2088_v10  }
  0xe2   : > { %1825 = vset.pattern.permute.xlu1 %v1891_v21 }
  0xe3   : > { %778 = vperm.xlu1 %1825, %v486_v8  }
  0xe4   : > { %667 = vperm.xlu0 %1839, %v2094_v13  }
  0xe7   : > { %782 = vperm.xlu1 %1825, %v2054_v62  }
  0xe8   : > { %1843 = vset.pattern.permute.xlu0 %v1893_v9 }
  0xe9   : > { %720 = vperm.xlu0 %1843, %v2102_v14  }
  0xeb   : > { %1826 = vset.pattern.permute.xlu1 %v1894_v15 }
  0xec   : > { %839 = vperm.xlu1 %1826, %v486_v8  }
  0xed   : > { %728 = vperm.xlu0 %1843, %v2094_v13  }
  0xf0   : > { %1827 = vset.pattern.permute.xlu1 %v1893_v9 }
  0xf1   : > { %708 = vperm.xlu1 %1827, %v2063_v0   ;;  %1847 = vset.pattern.permute.xlu0 %v1894_v15 }
  0xf2   : > { %843 = vperm.xlu0 %1847, %v2054_v62  }
  0xf5   : > { %712 = vperm.xlu1 %1827, %v2073_v6  }
  0xf6   : > { %851 = vperm.xlu0 %1847, %v2073_v6  }
  0xf9   : > { %1829 = vset.pattern.permute.xlu1 %v1891_v21 }
  0xfa   : > { %790 = vperm.xlu1 %1829, %v2073_v6   ;;  %855 = vperm.xlu0 %1847, %v2088_v10  }
  0xfe   : > { %1830 = vset.pattern.permute.xlu1 %v1894_v15  ;;  %863 = vperm.xlu0 %1847, %v2120_v18  }
  0xff   : > { %847 = vperm.xlu1 %1830, %v2063_v0  }
 0x102   : > { %1849 = vset.pattern.permute.xlu0 %v1895_v19 }
 0x103   : > { %1831 = vset.pattern.permute.xlu1 %v1895_v19  ;;  %912 = vperm.xlu0 %1849, %v2073_v6  }
 0x104   : > { %900 = vperm.xlu1 %1831, %v486_v8  }
 0x107   : > { %920 = vperm.xlu0 %1849, %v2102_v14  }
 0x108   : > { %904 = vperm.xlu1 %1831, %v2054_v62  }
 0x10b   : > { %924 = vperm.xlu0 %1849, %v2120_v18  }
 0x10c   : > { %1832 = vset.pattern.permute.xlu1 %v1896_v22 }
 0x10d   : > { %965 = vperm.xlu1 %1832, %v2054_v62  }
 0x10f   : > { %1853 = vset.pattern.permute.xlu0 %v1896_v22 }
 0x110   : > { %961 = vperm.xlu0 %1853, %v486_v8  }
 0x111   : > { %1833 = vset.pattern.permute.xlu1 %v1895_v19 }
 0x112   : > { %908 = vperm.xlu1 %1833, %v2063_v0  }
 0x114   : > { %985 = vperm.xlu0 %1853, %v2120_v18  }
 0x116   : > { %1834 = vset.pattern.permute.xlu1 %v1896_v22 }
 0x117   : > { %969 = vperm.xlu1 %1834, %v2063_v0  }
 0x118   : > { %1855 = vset.pattern.permute.xlu0 %v1897_v23 }
 0x119   : > { %1022 = vperm.xlu0 %1855, %v486_v8  }
 0x11b   : > { %973 = vperm.xlu1 %1834, %v2073_v6  }
 0x11d   : > { %1042 = vperm.xlu0 %1855, %v2102_v14  }
 0x11f   : > { %1835 = vset.pattern.permute.xlu1 %v1897_v23 }
 0x120   : > { %1026 = vperm.xlu1 %1835, %v2054_v62  }
 0x121   : > { %1046 = vperm.xlu0 %1855, %v2120_v18  }
 0x124   : > { %1836 = vset.pattern.permute.xlu1 %v1892_v7 }
 0x125   : > { %1083 = vperm.xlu1 %1836, %v486_v8   ;;  %1860 = vset.pattern.permute.xlu0 %v1892_v7 }
 0x126   : > { %1107 = vperm.xlu0 %1860, %v2120_v18  }
 0x129   : > { %1838 = vset.pattern.permute.xlu1 %v1897_v23 }
 0x12a   : > { %1030 = vperm.xlu1 %1838, %v2063_v0  }
 0x12e   : > { %1034 = vperm.xlu1 %1838, %v2073_v6  }
 0x132   : > { %1840 = vset.pattern.permute.xlu1 %v1892_v7 }
 0x133   : > { %1095 = vperm.xlu1 %1840, %v2073_v6  }
 0x137   : > { %1841 = vset.pattern.permute.xlu1 %v1890_v20 }
 0x138   : > { %657 = vperm.xlu1 %1841, %v2102_v14  }
 0x139   : > { %v432_v24 = vpop.xlane.xlu0 %431 }
 0x13a   : > { %v454_v25 = vmul.f32 0.03125, %v432_v24 }
 0x13c   : > { %v462_v28 = vadd.f32 1e-05, %v454_v25  ;;  %662 = vperm.xlu1 %1841, %v2120_v18  }
 0x13d   : > { %v435_v29 = vpop.xlane.xlu1 %434  ;;  %v438_v30 = vpop.xlane.xlu0 %437 }
 0x13e   : > { %v455_v31 = vmul.f32 0.03125, %v435_v29  ;;  %v456_v32 = vmul.f32 0.03125, %v438_v30  ;;  %1866 = vrsqrt.f32 %v462_v28 }
 0x140   : > { %v463_v33 = vadd.f32 1e-05, %v455_v31  ;;  %v464_v36 = vadd.f32 1e-05, %v456_v32  ;;  %1842 = vset.pattern.permute.xlu1 %v1893_v9 }
 0x141   : > { %v441_v37 = vpop.xlane.xlu1 %440  ;;  %v444_v38 = vpop.xlane.xlu0 %443  ;;  %716 = vperm.xlu1 %1842, %v2088_v10  }
 0x142   : > { %1868 = vrsqrt.f32 %v463_v33  ;;  %v457_v20 = vmul.f32 0.03125, %v441_v37  ;;  %v458_v39 = vmul.f32 0.03125, %v444_v38 }
 0x143   : > { %1870 = vrsqrt.f32 %v464_v36 }
 0x144   : > { %v465_v40 = vadd.f32 1e-05, %v457_v20  ;;  %v466_v41 = vadd.f32 1e-05, %v458_v39 }
 0x145   : > { %v447_v42 = vpop.xlane.xlu1 %446  ;;  %v450_v43 = vpop.xlane.xlu0 %449  ;;  %1844 = vset.pattern.permute.xlu1 %v1891_v21 }
 0x146   : > { %1872 = vrsqrt.f32 %v465_v40  ;;  %v459_v46 = vmul.f32 0.03125, %v447_v42  ;;  %v460_v47 = vmul.f32 0.03125, %v450_v43  ;;  %794 = vperm.xlu1 %1844, %v2088_v10  }
 0x147   : > { %1874 = vrsqrt.f32 %v466_v41 }
 0x148   : > { %v467_v48 = vadd.f32 1e-05, %v459_v46  ;;  %v468_v49 = vadd.f32 1e-05, %v460_v47  ;;  %v1867_v51 = vpop.eup %1866 }
 0x149   : > { %v453_v50 = vpop.xlane.xlu1 %452  ;;  %v478_v57 = vmul.f32 %v1867_v51, %v2004_v26 }
 0x14a   : > { %1876 = vrsqrt.f32 %v467_v48  ;;  %v461_v52 = vmul.f32 0.03125, %v453_v50  ;;  %798 = vperm.xlu1 %1844, %v2102_v14   ;;  %v1864_v48 = vld [vmem:[%s3262_s6] sm:$0xff]  }
 0x14b   : > { %1878 = vrsqrt.f32 %v468_v49  ;;  %v1865_v49 = vld [vmem:[%s3262_s6 + $0x8] sm:$0xff]   ;;  %1795 = vmatprep.subr.bf16.mxu1 %v1864_v48 }
 0x14c   : > { %v1869_v53 = vpop.eup %1868  ;;  %v469_v56 = vadd.f32 1e-05, %v461_v52  ;;  %1796 = vmatpush3.bf16.msra.mxu1 %v1864_v48 }
 0x14d   : > { %v479_v58 = vmul.f32 %v1869_v53, %v2014_v34  ;;  %v2163_v59 = vpop.permute.xlu1 %637  ;;  %v1871_v60 = vpop.eup %1870  ;;  %1797 = vmatprep.subr.bf16.mxu1 %v1865_v49 }
 0x14e   : > { %3355 = vst [vmem:[#allocation10_spill] sm:$0xff] %v2163_v59  ;;  %1880 = vrsqrt.f32 %v469_v56  ;;  %1845 = vset.pattern.permute.xlu1 %v1894_v15  ;;  %v480_v63 = vmul.f32 %v1871_v60, %v2007_v27  ;;  %v2250_v41 = vpop.permute.xlu0 %786 }
 0x14f   : > { %v494_v61 = vpack.c.bf16 %v479_v58, %v478_v57  ;;  %859 = vperm.xlu1 %1845, %v2102_v14   ;;  %3380 = vst [vmem:[#allocation35_spill] sm:$0xff] %v2250_v41 }
 0x150   : > { %v1873_v62 = vpop.eup %1872  ;;  %1798 = vmatpush3.bf16.msra.mxu1 %v1865_v49 }
 0x151   : > { %1787 = vmatprep.mubr.msk.bf16.mxu0 %vm380_vm0, %v494_v61  ;;  %v481_v0 = vmul.f32 %v1873_v62, %v2017_v35  ;;  %v2170_v1 = vpop.permute.xlu1 %642  ;;  %v1875_v26 = vpop.eup %1874 }
 0x152   : > { %3356 = vst [vmem:[#allocation11_spill] sm:$0xff] %v2170_v1  ;;  %v482_v8 = vmul.f32 %v1875_v26, %v2026_v44  ;;  %v2254_v42 = vpop.permute.xlu0 %1087 }
 0x153   : > { %v495_v34 = vpack.c.bf16 %v481_v0, %v480_v63  ;;  %1846 = vset.pattern.permute.xlu1 %v1893_v9  ;;  %3382 = vst [vmem:[#allocation37_spill] sm:$0xff] %v2254_v42 }
 0x154   : > { %v1877_v6 = vpop.eup %1876  ;;  %724 = vperm.xlu1 %1846, %v2120_v18  }
 0x155   : > { %1788 = vmatmul.mubr.msk.bf16.vlgmr.msra.gmra.mrb[0].mxu0 %vm380_vm0, %v495_v34  ;;  %v483_v24 = vmul.f32 %v1877_v6, %v2029_v45  ;;  %v2177_v25 = vpop.permute.xlu1 %647  ;;  %v1879_v27 = vpop.eup %1878 }
 0x156   : > { %3357 = vst [vmem:[#allocation12_spill] sm:$0xff] %v2177_v25  ;;  %v484_v9 = vmul.f32 %v1879_v27, %v2038_v54  ;;  %v2258_v46 = vpop.permute.xlu0 %1091 }
 0x157   : > { %v496_v28 = vpack.c.bf16 %v483_v24, %v482_v8  ;;  %3384 = vst [vmem:[#allocation39_spill] sm:$0xff] %v2258_v46 }
 0x158   : > { %v1881_v35 = vpop.eup %1880  ;;  %1848 = vset.pattern.permute.xlu1 %v1891_v21 }
 0x159   : > { %1791 = vmatprep.mubr.msk.bf16.mxu0 %vm380_vm0, %v496_v28  ;;  %v485_v29 = vmul.f32 %v1881_v35, %v2041_v55  ;;  %802 = vperm.xlu1 %1848, %v2120_v18   ;;  %v2184_v30 = vpop.permute.xlu1 %700 }
 0x15a   : > { %3358 = vst [vmem:[#allocation13_spill] sm:$0xff] %v2184_v30 }
 0x15b   : > { %v497_v44 = vpack.c.bf16 %v485_v29, %v484_v9  ;;  %v2268_v50 = vpop.permute.xlu0 %632 }
 0x15c   : > { %3386 = vst [vmem:[#allocation41_spill] sm:$0xff] %v2268_v50 }
 0x15d   : > { %1792 = vmatmul.mubr.msk.bf16.gmra.mrb[4].mxu0 %vm380_vm0, %v497_v44  ;;  %806 = vperm.xlu1 %1848, %v2094_v13   ;;  %v2188_v45 = vpop.permute.xlu1 %704 }
 0x15e   : > { %3359 = vst [vmem:[#allocation14_spill] sm:$0xff] %v2188_v45 }
 0x15f   : > { %v2272_v52 = vpop.permute.xlu0 %652 }
 0x160   : > { %3388 = vst [vmem:[#allocation43_spill] sm:$0xff] %v2272_v52 }
 0x161   : > { %1850 = vset.pattern.permute.xlu1 %v1894_v15 }
 0x162   : > { %867 = vperm.xlu1 %1850, %v2094_v13   ;;  %v2192_v21 = vpop.permute.xlu1 %778 }
 0x163   : > { %3360 = vst [vmem:[#allocation15_spill] sm:$0xff] %v2192_v21  ;;  %v2276_v56 = vpop.permute.xlu0 %667 }
 0x164   : > { %3390 = vst [vmem:[#allocation45_spill] sm:$0xff] %v2276_v56 }
 0x166   : > { %1851 = vset.pattern.permute.xlu1 %v1895_v19  ;;  %v2196_v54 = vpop.permute.xlu1 %782 }
 0x167   : > { %916 = vperm.xlu1 %1851, %v2088_v10   ;;  %3361 = vst [vmem:[#allocation16_spill] sm:$0xff] %v2196_v54 }
 0x168   : > { %v2280_v58 = vpop.permute.xlu0 %720 }
 0x169   : > { %3392 = vst [vmem:[#allocation47_spill] sm:$0xff] %v2280_v58 }
 0x16b   : > { %1852 = vset.pattern.permute.xlu1 %v1896_v22  ;;  %v2199_v55 = vpop.permute.xlu1 %839 }
 0x16c   : > { %3362 = vst [vmem:[#allocation17_spill] sm:$0xff] %v2199_v55  ;;  %977 = vperm.xlu1 %1852, %v2088_v10   ;;  %v2284_v61 = vpop.permute.xlu0 %728 }
 0x16d   : > { %3394 = vst [vmem:[#allocation49_spill] sm:$0xff] %v2284_v61 }
 0x170   : > { %981 = vperm.xlu1 %1852, %v2102_v14   ;;  %v2203_v18 = vpop.permute.xlu1 %708 }
 0x171   : > { %3363 = vst [vmem:[#allocation18_spill] sm:$0xff] %v2203_v18  ;;  %v2288_v63 = vpop.permute.xlu0 %843 }
 0x172   : > { %3396 = vst [vmem:[#allocation51_spill] sm:$0xff] %v2288_v63 }
 0x174   : > { %1854 = vset.pattern.permute.xlu1 %v1895_v19  ;;  %v2207_v15 = vpop.permute.xlu1 %712 }
 0x175   : > { %928 = vperm.xlu1 %1854, %v2094_v13   ;;  %3364 = vst [vmem:[#allocation19_spill] sm:$0xff] %v2207_v15  ;;  %v2292_v26 = vpop.permute.xlu0 %851 }
 0x176   : > { %3398 = vst [vmem:[#allocation53_spill] sm:$0xff] %v2292_v26 }
 0x179   : > { %1856 = vset.pattern.permute.xlu1 %v1896_v22  ;;  %v2210_v31 = vpop.permute.xlu1 %790  ;;  %v2296_v6 = vpop.permute.xlu0 %855 }
 0x17a   : > { %3365 = vst [vmem:[#allocation20_spill] sm:$0xff] %v2210_v31  ;;  %989 = vperm.xlu1 %1856, %v2094_v13   ;;  %3400 = vst [vmem:[#allocation55_spill] sm:$0xff] %v2296_v6 }
 0x17d   : > { %v2300_v24 = vpop.permute.xlu0 %863 }
 0x17e   : > { %1857 = vset.pattern.permute.xlu1 %v1897_v23  ;;  %v2214_v32 = vpop.permute.xlu1 %847  ;;  %3402 = vst [vmem:[#allocation57_spill] sm:$0xff] %v2300_v24 }
 0x17f   : > { %3366 = vst [vmem:[#allocation21_spill] sm:$0xff] %v2214_v32  ;;  %1038 = vperm.xlu1 %1857, %v2088_v10  }
 0x182   : > { %v2304_v28 = vpop.permute.xlu0 %912 }
 0x183   : > { %1858 = vset.pattern.permute.xlu1 %v1892_v7  ;;  %v2218_v33 = vpop.permute.xlu1 %900  ;;  %3404 = vst [vmem:[#allocation59_spill] sm:$0xff] %v2304_v28 }
 0x184   : > { %3367 = vst [vmem:[#allocation22_spill] sm:$0xff] %v2218_v33  ;;  %1099 = vperm.xlu1 %1858, %v2088_v10  }
 0x186   : > { %v2308_v9 = vpop.permute.xlu0 %920 }
 0x187   : > { %v2222_v19 = vpop.permute.xlu1 %904  ;;  %3406 = vst [vmem:[#allocation61_spill] sm:$0xff] %v2308_v9 }
 0x188   : > { %1103 = vperm.xlu1 %1858, %v2102_v14   ;;  %3368 = vst [vmem:[#allocation23_spill] sm:$0xff] %v2222_v19 }
 0x18a   : > { %v2312_v44 = vpop.permute.xlu0 %924 }
 0x18b   : > { %3408 = vst [vmem:[#allocation63_spill] sm:$0xff] %v2312_v44 }
 0x18c   : > { %1859 = vset.pattern.permute.xlu1 %v1897_v23  ;;  %v2225_v22 = vpop.permute.xlu1 %965 }
 0x18d   : > { %3369 = vst [vmem:[#allocation24_spill] sm:$0xff] %v2225_v22  ;;  %1050 = vperm.xlu1 %1859, %v2094_v13  }
 0x18f   : > { %v2316_v49 = vpop.permute.xlu0 %961 }
 0x190   : > { %3410 = vst [vmem:[#allocation65_spill] sm:$0xff] %v2316_v49 }
 0x191   : > { %1861 = vset.pattern.permute.xlu1 %v1892_v7  ;;  %v2229_v36 = vpop.permute.xlu1 %908 }
 0x192   : > { %3370 = vst [vmem:[#allocation25_spill] sm:$0xff] %v2229_v36  ;;  %1111 = vperm.xlu1 %1861, %v2094_v13  }
 0x193   : > { %v2327_v16 = vpop.permute.xlu0 %985 }
 0x194   : > { %3412 = vst [vmem:[#allocation67_spill] sm:$0xff] %v2327_v16 }
 0x196   : > { %v2232_v37 = vpop.permute.xlu1 %969 }
 0x197   : > { %3371 = vst [vmem:[#allocation26_spill] sm:$0xff] %v2232_v37 }
 0x198   : > { %v2381_v49 = vpop.permute.xlu0 %1022 }
 0x199   : > { %3417 = vst [vmem:[#allocation72_spill] sm:$0xff] %v2381_v49 }
 0x19a   : > { %v2234_v38 = vpop.permute.xlu1 %973 }
 0x19b   : > { %3372 = vst [vmem:[#allocation27_spill] sm:$0xff] %v2234_v38 }
 0x19c   : > { %v2451_v1 = vpop.permute.xlu0 %1042 }
 0x19d   : > { %3430 = vst [vmem:[#allocation82_spill] sm:$0xff] %v2451_v1 }
 0x19f   : > { %v2236_v10 = vpop.permute.xlu1 %1026 }
 0x1a0   : > { %3373 = vst [vmem:[#allocation28_spill] sm:$0xff] %v2236_v10 }
 0x1a4   : > { %v2238_v14 = vpop.permute.xlu1 %1083 }
 0x1a5   : > { %3374 = vst [vmem:[#allocation29_spill] sm:$0xff] %v2238_v14 }
 0x1a9   : > { %v2240_v20 = vpop.permute.xlu1 %1030 }
 0x1aa   : > { %3375 = vst [vmem:[#allocation30_spill] sm:$0xff] %v2240_v20 }
 0x1ad   : > { %v2242_v23 = vpop.permute.xlu1 %1034 }
 0x1ae   : > { %3376 = vst [vmem:[#allocation31_spill] sm:$0xff] %v2242_v23 }
 0x1b2   : > { %v2244_v39 = vpop.permute.xlu1 %1095 }
 0x1b3   : > { %3377 = vst [vmem:[#allocation32_spill] sm:$0xff] %v2244_v39 }
 0x1b7   : > { %v2246_v40 = vpop.permute.xlu1 %657 }
 0x1b8   : > { %3378 = vst [vmem:[#allocation33_spill] sm:$0xff] %v2246_v40 }
 0x1bb   : > { %v2248_v7 = vpop.permute.xlu1 %662 }
 0x1bc   : > { %3379 = vst [vmem:[#allocation34_spill] sm:$0xff] %v2248_v7 }
 0x1c0   : > { %v2252_v13 = vpop.permute.xlu1 %716 }
 0x1c1   : > { %3381 = vst [vmem:[#allocation36_spill] sm:$0xff] %v2252_v13 }
 0x1c5   : > { %v2256_v43 = vpop.permute.xlu1 %794 }
 0x1c6   : > { %3383 = vst [vmem:[#allocation38_spill] sm:$0xff] %v2256_v43 }
 0x1c9   : > { %v2260_v47 = vpop.permute.xlu1 %798 }
 0x1ca   : > { %3385 = vst [vmem:[#allocation40_spill] sm:$0xff] %v2260_v47 }
 0x1ce   : > { %v2270_v51 = vpop.permute.xlu1 %859 }
 0x1cf   : > { %3387 = vst [vmem:[#allocation42_spill] sm:$0xff] %v2270_v51 }
 0x1d3   : > { %v2274_v53 = vpop.permute.xlu1 %724 }
 0x1d4   : > { %3389 = vst [vmem:[#allocation44_spill] sm:$0xff] %v2274_v53 }
 0x1d8   : > { %v2278_v57 = vpop.permute.xlu1 %802 }
 0x1d9   : > { %3391 = vst [vmem:[#allocation46_spill] sm:$0xff] %v2278_v57 }
 0x1dc   : > { %v2282_v60 = vpop.permute.xlu1 %806 }
 0x1dd   : > { %3393 = vst [vmem:[#allocation48_spill] sm:$0xff] %v2282_v60 }
 0x1e1   : > { %v2286_v62 = vpop.permute.xlu1 %867 }
 0x1e2   : > { %3395 = vst [vmem:[#allocation50_spill] sm:$0xff] %v2286_v62 }
 0x1e6   : > { %v2290_v0 = vpop.permute.xlu1 %916 }
 0x1e7   : > { %3397 = vst [vmem:[#allocation52_spill] sm:$0xff] %v2290_v0 }
 0x1eb   : > { %v2294_v34 = vpop.permute.xlu1 %977 }
 0x1ec   : > { %3399 = vst [vmem:[#allocation54_spill] sm:$0xff] %v2294_v34 }
 0x1ef   : > { %v2298_v8 = vpop.permute.xlu1 %981 }
 0x1f0   : > { %3401 = vst [vmem:[#allocation56_spill] sm:$0xff] %v2298_v8 }
 0x1f4   : > { %v2302_v27 = vpop.permute.xlu1 %928 }
 0x1f5   : > { %3403 = vst [vmem:[#allocation58_spill] sm:$0xff] %v2302_v27 }
 0x1f9   : > { %v2306_v35 = vpop.permute.xlu1 %989 }
 0x1fa   : > { %3405 = vst [vmem:[#allocation60_spill] sm:$0xff] %v2306_v35 }
 0x1fe   : > { %v2310_v29 = vpop.permute.xlu1 %1038 }
 0x1ff   : > { %3407 = vst [vmem:[#allocation62_spill] sm:$0xff] %v2310_v29 }
 0x203   : > { %v2314_v48 = vpop.permute.xlu1 %1099 }
 0x204   : > { %3409 = vst [vmem:[#allocation64_spill] sm:$0xff] %v2314_v48 }
 0x207   : > { %v2318_v11 = vpop.permute.xlu1 %1103 }
 0x208   : > { %3411 = vst [vmem:[#allocation66_spill] sm:$0xff] %v2318_v11 }
 0x20c   : > { %v2337_v46 = vpop.permute.xlu1 %1050 }
 0x20d   : > { %3413 = vst [vmem:[#allocation68_spill] sm:$0xff] %v2337_v46 }
 0x211   : > { %v2424_v48 = vpop.permute.xlu1 %1111 }
 0x212   : > { %3426 = vst [vmem:[#allocation80_spill] sm:$0xff] %v2424_v48 }
 0x228   : > { %v1789_v4 = vpop.f32.mrb[0].mxu0 }
 0x229   : > { %v2330_v2 = vadd.f32 %v1789_v4, %v2323_v5  ;;  %v567_v39 = vpop.f32.mrb[1].mxu0  ;;  %v2347_v4 = vld [vmem:[%s3260_s4 + $0x1] ss:$0 sm:$0xff] }
 0x22a   : > { %v2340_v42 = vadd.f32 %v2323_v5, %v567_v39  ;;  %v1790_v36 = vpop.f32.mrb[2].mxu0 }
 0x22b   : > { %v734_v12 = vmul.f32 %v2207_v15, %v2330_v2  ;;  %v570_v14 = vpop.f32.mrb[3].mxu0  ;;  %v2353_v10 = vmul.f32 %v2335_v3, %v2330_v2  ;;  %v2357_v22 = vadd.f32 %v1790_v36, %v2323_v5 }
 0x22c   : > { %v1060_v15 = vmul.f32 %v2337_v46, %v2340_v42  ;;  %v2365_v32 = vmul.f32 %v2188_v45, %v2340_v42  ;;  %v2373_v39 = vadd.f32 %v2323_v5, %v570_v14 }
 0x22d   : > { %3414 = vst [vmem:[#allocation69_spill] sm:$0xff] %v2353_v10  ;;  %v2370_v10 = vld [vmem:[%s3260_s4 + $0x7] ss:$0 sm:$0xff]  ;;  %v2376_v36 = vmul.f32 %v2347_v4, %v734_v12  ;;  %v614_v46 = vrot.slane %v2357_v22, 7  ;;  %v735_v19 = vmul.f32 %v2252_v13, %v2357_v22  ;;  %v2386_v63 = vmul.f32 %v2335_v3, %v2357_v22 }
 0x22e   : > { %3415 = vst [vmem:[#allocation70_spill] sm:$0xff] %v2365_v32  ;;  %v1055_v14 = vmul.f32 %v2240_v20, %v2357_v22  ;;  %v2393_v12 = vmul.f32 %v2335_v3, %v2340_v42  ;;  %v2400_v45 = vmul.f32 %v2370_v10, %v1060_v15  ;;  %v733_v55 = vmul.f32 %v2203_v18, %v2373_v39 }
 0x22f   : > { %3416 = vst [vmem:[#allocation71_spill] sm:$0xff] %v2376_v36  ;;  %3418 = vst [vmem:[#allocation73_spill] sm:$0xff] %v2386_v63  ;;  %v3419_v36 = vrot.slane %v2330_v2, 7  ;;  %v2404_v63 = vmul.f32 %v2335_v3, %v2373_v39  ;;  %v2409_v31 = vmul.f32 %v2347_v4, %v735_v19  ;;  %v1053_v25 = vmul.f32 %v2381_v49, %v2373_v39  ;;  %v2432_v49 = vld [vmem:[%s3260_s4 + $0x2] ss:$0 sm:$0xff] }
 0x230   : > { %3420 = vst [vmem:[#allocation74_spill] sm:$0xff] %v2400_v45  ;;  %v1793_v20 = vpop.f32.mrb[4].mxu0  ;;  %v2422_v18 = vmul.f32 %v2370_v10, %v1055_v14  ;;  %v3428_v14 = vrot.slane %v2340_v42, 1 }
 0x231   : > { %v626_v13 = vsel %vm621_vm1, %v3419_v36, %v614_v46  ;;  %3421 = vst [vmem:[#allocation75_spill] sm:$0xff] %v2404_v63  ;;  %3422 = vst [vmem:[#allocation76_spill] sm:$0xff] %v2409_v31  ;;  %v761_v36 = vrot.slane %v2373_v39, 1  ;;  %v583_v15 = vpop.f32.mrb[5].mxu0  ;;  %v2427_v19 = vadd.f32 %v1793_v20, %v2323_v5 }
 0x232   : > { %v2416_v45 = vmul.f32 %v2292_v26, %v626_v13  ;;  %v2419_v63 = vmul.f32 %v2232_v37, %v626_v13  ;;  %3425 = vst [vmem:[#allocation79_spill] sm:$0xff] %v2422_v18  ;;  %v1794_v32 = vpop.f32.mrb[6].mxu0  ;;  %v3427_v26 = vrot.slane %v2330_v2, 1  ;;  %v2445_v20 = vadd.f32 %v2323_v5, %v583_v15 }
 0x233   : > { %v775_v31 = vsel %vm768_vm2, %v3428_v14, %v761_v36  ;;  %v674_v18 = vmul.f32 %v2272_v52, %v626_v13  ;;  %v2463_v13 = vmul.f32 %v2370_v10, %v1053_v25  ;;  %v1058_v14 = vmul.f32 %v2451_v1, %v2427_v19 }
 0x234   : > { %3423 = vst [vmem:[#allocation77_spill] sm:$0xff] %v2416_v45  ;;  %3424 = vst [vmem:[#allocation78_spill] sm:$0xff] %v2419_v63  ;;  %v2438_v37 = vsel %vm768_vm2, %v761_v36, %v3427_v26  ;;  %v586_v63 = vpop.f32.mrb[7].mxu0  ;;  %v2449_v45 = vmul.f32 %v2347_v4, %v733_v55  ;;  %v810_v59 = vmul.f32 %v2196_v54, %v775_v31  ;;  %v2460_v36 = vld [vmem:[%s3260_s4] ss:$0 sm:$0xff]  ;;  %v617_v25 = vrot.slane %v2427_v19, 7 }
 0x235   : > { %v811_v26 = vmul.f32 %v2250_v41, %v2438_v37  ;;  %v931_v34 = vmul.f32 %v2218_v33, %v775_v31  ;;  %v2468_v55 = vld [vmem:[%s3260_s4 + $0x5] ss:$0 sm:$0xff]  ;;  %v2471_v15 = vmul.f32 %v2424_v48, %v775_v31  ;;  %v2476_v52 = vadd.f32 %v1794_v32, %v2323_v5 }
 0x236   : > { %3429 = vst [vmem:[#allocation81_spill] sm:$0xff] %v2449_v45  ;;  %v2479_v33 = vmul.f32 %v2432_v49, %v810_v59  ;;  %v2484_v41 = vmul.f32 %v2284_v61, %v2427_v19  ;;  %v607_v1 = vmul.f32 %v2335_v3, %v2445_v20  ;;  %v615_v32 = vrot.slane %v2445_v20, 7 }
 0x237   : > { %3431 = vst [vmem:[#allocation83_spill] sm:$0xff] %v2471_v15  ;;  %v2488_v31 = vmul.f32 %v2432_v49, %v811_v26  ;;  %v687_v48 = vmul.f32 %v2460_v36, %v674_v18  ;;  %v2495_v59 = vmul.f32 %v2468_v55, %v931_v34  ;;  %v2498_v15 = vmul.f32 %v2370_v10, %v1058_v14 }
 0x238   : > { %v736_v61 = vmul.f32 %v2280_v58, %v2445_v20  ;;  %v764_v54 = vrot.slane %v2445_v20, 1  ;;  %v625_v26 = vsel %vm621_vm1, %v614_v46, %v615_v32  ;;  %v618_v18 = vrot.slane %v2476_v52, 7 }
 0x239   : > { %3432 = vst [vmem:[#allocation84_spill] sm:$0xff] %v2488_v31  ;;  %3433 = vst [vmem:[#allocation85_spill] sm:$0xff] %v2498_v15  ;;  %v695_v45 = vadd.f32 %v687_v48, %v607_v1  ;;  %v1056_v31 = vmul.f32 %v2242_v23, %v2445_v20  ;;  %v3435_v14 = vrot.slane %v2357_v22, 1  ;;  %v2519_v58 = vmul.f32 %v2335_v3, %v2476_v52 }
 0x23a   : > { %v2509_v34 = vmul.f32 %v2347_v4, %v736_v61  ;;  %v2523_v1 = vmul.f32 %v2184_v30, %v2476_v52  ;;  %v2528_v61 = vmul.f32 %v2296_v6, %v625_v26  ;;  %v2531_v48 = vmul.f32 %v2234_v38, %v625_v26 }
 0x23b   : > { %v2515_v15 = vsel %vm768_vm2, %v3435_v14, %v764_v54  ;;  %3437 = vst [vmem:[#allocation88_spill] sm:$0xff] %v2519_v58  ;;  %v3439_v20 = vrot.slane %v2340_v42, 7  ;;  %v767_v30 = vrot.slane %v2476_v52, 1  ;;  %v675_v6 = vmul.f32 %v2246_v40, %v625_v26 }
 0x23c   : > { %3434 = vst [vmem:[#allocation86_spill] sm:$0xff] %v2509_v34  ;;  %3436 = vst [vmem:[#allocation87_spill] sm:$0xff] %v2515_v15  ;;  %v813_v46 = vmul.f32 %v2256_v43, %v2515_v15  ;;  %v2541_v23 = vmul.f32 %v2304_v28, %v2515_v15  ;;  %v587_v43 = vadd.f32 %v2323_v5, %v586_v63  ;;  %v3443_v40 = vrot.slane %v2427_v19, 1 }
 0x23d   : > { %3438 = vst [vmem:[#allocation89_spill] sm:$0xff] %v2528_v61  ;;  %v2537_v14 = vsel %vm621_vm1, %v618_v18, %v3439_v20  ;;  %v2548_v38 = vmul.f32 %v2370_v10, %v1056_v31  ;;  %v2554_v20 = vpop.permute.xlu0 %1046  ;;  %v622_v28 = vsel %vm621_vm1, %v617_v25, %v618_v18  ;;  %v688_v5 = vmul.f32 %v2460_v36, %v675_v6 }
 0x23e   : > { %v826_v58 = vmul.f32 %v2432_v49, %v813_v46  ;;  %v2552_v34 = vmul.f32 %v2306_v35, %v2537_v14  ;;  %3442 = vst [vmem:[#allocation92_spill] sm:$0xff] %v2554_v20  ;;  %v608_v61 = vmul.f32 %v2335_v3, %v587_v43  ;;  %v616_v15 = vrot.slane %v587_v43, 7 }
 0x23f   : > { %3440 = vst [vmem:[#allocation90_spill] sm:$0xff] %v2548_v38  ;;  %v737_v63 = vmul.f32 %v2274_v53, %v587_v43  ;;  %v765_v31 = vrot.slane %v587_v43, 1  ;;  %v1057_v46 = vmul.f32 %v2310_v29, %v587_v43  ;;  %v769_v35 = vsel %vm768_vm2, %v3443_v40, %v767_v30 }
 0x240   : > { %3441 = vst [vmem:[#allocation91_spill] sm:$0xff] %v2552_v34  ;;  %v2561_v26 = vadd.f32 %v826_v58, %v695_v45  ;;  %v696_v34 = vadd.f32 %v688_v5, %v608_v61  ;;  %v623_v18 = vsel %vm621_vm1, %v616_v15, %v617_v25  ;;  %v816_v38 = vmul.f32 %v2282_v60, %v769_v35 }
 0x241   : > { %v1059_v6 = vmul.f32 %v2554_v20, %v2476_v52  ;;  %v2575_v45 = vsel %vm768_vm2, %v764_v54, %v765_v31  ;;  %v677_v43 = vmul.f32 %v2276_v56, %v623_v18  ;;  %v876_v58 = vmul.f32 %v2300_v24, %v623_v18  ;;  %v2590_v54 = vld [vmem:[%s3260_s4 + $0x3] ss:$0 sm:$0xff] }
 0x242   : > { %v609_v40 = vmul.f32 %v2335_v3, %v2427_v19  ;;  %v814_v61 = vmul.f32 %v2260_v47, %v2575_v45  ;;  %v2584_v25 = vmul.f32 %v2370_v10, %v1057_v46  ;;  %v750_v5 = vmul.f32 %v2347_v4, %v737_v63 }
 0x243   : > { %v937_v52 = vmul.f32 %v2312_v44, %v769_v35  ;;  %v2595_v29 = vmul.f32 %v2290_v0, %v2575_v45  ;;  %v2598_v3 = vmul.f32 %v2460_v36, %v677_v43  ;;  %v2601_v24 = vmul.f32 %v2432_v49, %v816_v38 }
 0x244   : > { %v889_v46 = vmul.f32 %v2590_v54, %v876_v58  ;;  %v827_v63 = vmul.f32 %v2432_v49, %v814_v61  ;;  %v2606_v47 = vmul.f32 %v2298_v8, %v623_v18  ;;  %v2609_v53 = vmul.f32 %v2318_v11, %v769_v35 }
 0x245   : > { %v624_v0 = vsel %vm621_vm1, %v615_v32, %v616_v15  ;;  %v950_v43 = vmul.f32 %v2468_v55, %v937_v52  ;;  %v670_v44 = vmul.f32 %v2268_v50, %v622_v28  ;;  %v1072_v58 = vmul.f32 %v2370_v10, %v1059_v6 }
 0x246   : > { %v897_v56 = vadd.f32 %v889_v46, %v750_v5  ;;  %v676_v38 = vmul.f32 %v2248_v7, %v624_v0  ;;  %v2616_v60 = vadd.f32 %v827_v63, %v696_v34  ;;  %v3444_v18 = vrot.slane %v2427_v19, 1  ;;  %v2635_v63 = vpop.permute.xlu0 %1107 }
 0x247   : > { %v3445_v61 = vrot.slane %v2340_v42, 1  ;;  %v683_v5 = vmul.f32 %v2460_v36, %v670_v44  ;;  %v751_v6 = vmul.f32 %v2347_v4, %v2484_v41  ;;  %v877_v46 = vmul.f32 %v2286_v62, %v622_v28  ;;  %3446 = vst [vmem:[#allocation93_spill] sm:$0xff] %v2635_v63 }
 0x248   : > { %v770_v35 = vsel %vm768_vm2, %v765_v31, %v3444_v18  ;;  %v958_v32 = vadd.f32 %v950_v43, %v897_v56  ;;  %v689_v52 = vmul.f32 %v2460_v36, %v676_v38  ;;  %v2641_v38 = vmul.f32 %v2270_v51, %v624_v0 }
 0x249   : > { %v776_v15 = vsel %vm768_vm2, %v767_v30, %v3445_v61  ;;  %v815_v19 = vmul.f32 %v2278_v57, %v770_v35  ;;  %v691_v30 = vadd.f32 %v683_v5, %v2393_v12  ;;  %v890_v41 = vmul.f32 %v2590_v54, %v877_v46  ;;  %v2653_v5 = vld [vmem:[%s3260_s4 + $0x6] ss:$0 sm:$0xff] }
 0x24a   : > { %v809_v34 = vmul.f32 %v2192_v21, %v776_v15  ;;  %v938_v31 = vmul.f32 %v2302_v27, %v776_v15  ;;  %v1080_v18 = vadd.f32 %v1072_v58, %v958_v32  ;;  %v697_v56 = vadd.f32 %v689_v52, %v609_v40  ;;  %v3463_v27 = vld [vmem:[#allocation51_spill] sm:$0xff] }
 0x24b   : > { %v828_v43 = vmul.f32 %v2432_v49, %v815_v19  ;;  %v2645_v61 = vmul.f32 %v2308_v9, %v770_v35  ;;  %v998_v58 = vmul.f32 %v2327_v16, %v622_v28  ;;  %v1120_v12 = vmul.f32 %v2635_v63, %v776_v15  ;;  %v3460_v63 = vld [vmem:[#allocation20_spill] sm:$0xff] }
 0x24c   : > { %v822_v44 = vmul.f32 %v2432_v49, %v809_v34  ;;  %v951_v57 = vmul.f32 %v2468_v55, %v938_v31  ;;  %v898_v32 = vadd.f32 %v890_v41, %v751_v6  ;;  %v3447_v52 = vrot.slane %v2330_v2, 7  ;;  %v2670_v6 = vld [vmem:[%s3260_s4 + $0x8] ss:$0 sm:$0xff]  ;;  %v3451_v31 = vld [vmem:[#allocation54_spill] sm:$0xff] }
 0x24d   : > { %v836_v40 = vadd.f32 %v828_v43, %v697_v56  ;;  %v3448_v34 = vrot.slane %v2373_v39, 7  ;;  %v3450_v28 = vrot.slane %v2340_v42, 7  ;;  %v1011_v56 = vmul.f32 %v2653_v5, %v998_v58  ;;  %v3453_v41 = vld [vmem:[#allocation11_spill] sm:$0xff]  ;;  %v3454_v42 = vld [vmem:[#allocation64_spill] sm:$0xff] }
 0x24e   : > { %v830_v8 = vadd.f32 %v822_v44, %v691_v30  ;;  %v2673_v30 = vmul.f32 %v3451_v31, %v624_v0  ;;  %v3452_v44 = vld [vmem:[#allocation10_spill] sm:$0xff]  ;;  %v744_v0 = vmul.f32 %v2347_v4, %v2523_v1  ;;  %v3456_v58 = vrot.slane %v2357_v22, 1  ;;  %v3462_v22 = vld [vmem:[#allocation75_spill] sm:$0xff] }
 0x24f   : > { %v627_v19 = vsel %vm621_vm1, %v3448_v34, %v3447_v52  ;;  %v3449_v46 = vmov %v3448_v34  ;;  %v671_v43 = vmul.f32 %v3452_v44, %v2537_v14  ;;  %v959_v52 = vadd.f32 %v951_v57, %v898_v32  ;;  %v3458_v32 = vld [vmem:[#allocation74_spill] sm:$0xff] }
 0x250   : > { %v628_v15 = vsel %vm621_vm1, %v3450_v28, %v3449_v46  ;;  %v2680_v34 = vmul.f32 %v3454_v42, %v770_v35  ;;  %v1133_v46 = vmul.f32 %v2670_v6, %v1120_v12  ;;  %v3455_v28 = vld [vmem:[#allocation12_spill] sm:$0xff]  ;;  %v1019_v51 = vadd.f32 %v1011_v56, %v836_v40  ;;  %v3459_v42 = vld [vmem:[#allocation70_spill] sm:$0xff]  ;;  %v3461_v56 = vld [vmem:[#allocation17_spill] sm:$0xff] }
 0x251   : > { %v672_v39 = vmul.f32 %v3453_v41, %v628_v15  ;;  %v673_v9 = vmul.f32 %v3455_v28, %v627_v19  ;;  %v684_v7 = vmul.f32 %v2460_v36, %v671_v43  ;;  %v3457_v31 = vrot.slane %v2330_v2, 1 }
 0x252   : > { %v2694_v35 = vadd.f32 %v3458_v32, %v959_v52  ;;  %v745_v12 = vmul.f32 %v2347_v4, %v3459_v42  ;;  %v870_v43 = vmul.f32 %v3461_v56, %v2537_v14  ;;  %v1141_v11 = vadd.f32 %v1133_v46, %v1019_v51  ;;  %v3465_v4 = vld [vmem:[#allocation23_spill] sm:$0xff]  ;;  %v3467_v56 = vld [vmem:[#allocation24_spill] sm:$0xff] }
 0x253   : > { %v773_v57 = vsel %vm768_vm2, %v3457_v31, %v3456_v58  ;;  %v685_v1 = vmul.f32 %v2460_v36, %v672_v39  ;;  %v692_v16 = vadd.f32 %v684_v7, %v3462_v22  ;;  %v871_v62 = vmul.f32 %v3463_v27, %v628_v15  ;;  %v3464_v58 = vld [vmem:[#allocation21_spill] sm:$0xff] }
 0x254   : > { %v812_v40 = vmul.f32 %v3460_v63, %v773_v57  ;;  %v686_v31 = vmul.f32 %v2460_v36, %v673_v9  ;;  %v872_v52 = vmul.f32 %v3464_v58, %v627_v19  ;;  %v883_v32 = vmul.f32 %v2590_v54, %v870_v43  ;;  %v3466_v39 = vld [vmem:[#allocation65_spill] sm:$0xff]  ;;  %v3468_v36 = vld [vmem:[#allocation28_spill] sm:$0xff] }
 0x255   : > { %v932_v42 = vmul.f32 %v3465_v4, %v2438_v37  ;;  %v2709_v21 = vadd.f32 %v1141_v11, %v1080_v18  ;;  %v831_v14 = vadd.f32 %v2479_v33, %v692_v16  ;;  %v884_v51 = vmul.f32 %v2590_v54, %v871_v62  ;;  %v3469_v18 = vld [vmem:[#allocation29_spill] sm:$0xff] }
 0x256   : > { %v992_v46 = vmul.f32 %v3466_v39, %v628_v15  ;;  %v825_v7 = vmul.f32 %v2432_v49, %v812_v40  ;;  %v891_v22 = vadd.f32 %v883_v32, %v744_v0  ;;  %v993_v9 = vmul.f32 %v3467_v56, %v627_v19  ;;  %v3470_v33 = vld [vmem:[#allocation25_spill] sm:$0xff] }
 0x257   : > { %v1054_v44 = vmul.f32 %v3468_v36, %v2330_v2  ;;  %v892_v43 = vadd.f32 %v884_v51, %v745_v12  ;;  %v945_v50 = vmul.f32 %v2468_v55, %v932_v42  ;;  %v1114_v16 = vmul.f32 %v3469_v18, %v2438_v37  ;;  %v3471_v0 = vld [vmem:[#allocation37_spill] sm:$0xff] }
 0x258   : > { %v1005_v11 = vmul.f32 %v2653_v5, %v992_v46  ;;  %v933_v62 = vmul.f32 %v3470_v33, %v773_v57  ;;  %v952_v15 = vadd.f32 %v2495_v59, %v891_v22  ;;  %v1006_v49 = vmul.f32 %v2653_v5, %v993_v9  ;;  %v3472_v37 = vld [vmem:[#allocation69_spill] sm:$0xff] }
 0x259   : > { %v1115_v40 = vmul.f32 %v3471_v0, %v773_v57  ;;  %v953_v19 = vadd.f32 %v945_v50, %v892_v43  ;;  %v1067_v2 = vmul.f32 %v2370_v10, %v1054_v44  ;;  %v1127_v12 = vmul.f32 %v2670_v6, %v1114_v16  ;;  %v3473_v59 = vld [vmem:[#allocation73_spill] sm:$0xff]  ;;  %v3474_v50 = vld [vmem:[#allocation84_spill] sm:$0xff] }
 0x25a   : > { %v1013_v32 = vadd.f32 %v1005_v11, %v830_v8  ;;  %v1014_v42 = vadd.f32 %v1006_v49, %v831_v14  ;;  %v1074_v51 = vadd.f32 %v2463_v13, %v952_v15  ;;  %v693_v20 = vadd.f32 %v685_v1, %v3472_v37  ;;  %v3475_v43 = vld [vmem:[#allocation77_spill] sm:$0xff]  ;;  %v3477_v15 = vld [vmem:[#allocation71_spill] sm:$0xff]  ;;  %v3478_v49 = vld [vmem:[#allocation78_spill] sm:$0xff] }
 0x25b   : > { %v1128_v46 = vmul.f32 %v2670_v6, %v1115_v40  ;;  %v1075_v18 = vadd.f32 %v1067_v2, %v953_v19  ;;  %v694_v22 = vadd.f32 %v686_v31, %v3473_v59  ;;  %v885_v9 = vmul.f32 %v2590_v54, %v872_v52  ;;  %v3476_v11 = vld [vmem:[#allocation81_spill] sm:$0xff]  ;;  %v2743_v31 = vld [vmem:[%s3261_s5] ss:$0 sm:$0xff]  ;;  %v3479_v19 = vld [vmem:[#allocation87_spill] sm:$0xff] }
 0x25c   : > { %v1135_v56 = vadd.f32 %v1127_v12, %v1013_v32  ;;  %v832_v8 = vadd.f32 %v3474_v50, %v693_v20  ;;  %v886_v10 = vmul.f32 %v2590_v54, %v3475_v43  ;;  %v946_v44 = vmul.f32 %v2468_v55, %v933_v62  ;;  %v3480_v32 = vld [vmem:[#allocation39_spill] sm:$0xff]  ;;  %v3481_v2 = vld [vmem:[#allocation32_spill] sm:$0xff]  ;;  %v3483_v50 = vld [vmem:[#allocation90_spill] sm:$0xff] }
 0x25d   : > { %v1136_v57 = vadd.f32 %v1128_v46, %v1014_v42  ;;  %v833_v13 = vadd.f32 %v825_v7, %v694_v22  ;;  %v893_v16 = vadd.f32 %v885_v9, %v3476_v11  ;;  %v947_v1 = vmul.f32 %v2468_v55, %v2541_v23  ;;  %v3482_v59 = vld [vmem:[#allocation79_spill] sm:$0xff] }
 0x25e   : > { %v1143_v14 = vadd.f32 %v1135_v56, %v1074_v51  ;;  %v894_v20 = vadd.f32 %v886_v10, %v3477_v15  ;;  %v1007_v40 = vmul.f32 %v2653_v5, %v3478_v49  ;;  %v1008_v56 = vmul.f32 %v2653_v5, %v2531_v48  ;;  %v3484_v10 = vld [vmem:[#allocation89_spill] sm:$0xff]  ;;  %v3486_v15 = vld [vmem:[#allocation86_spill] sm:$0xff] }
 0x25f   : > { %v1144_v52 = vadd.f32 %v1136_v57, %v1075_v18  ;;  %v954_v62 = vadd.f32 %v946_v44, %v893_v16  ;;  %v1116_v23 = vmul.f32 %v3480_v32, %v3479_v19  ;;  %v1117_v12 = vmul.f32 %v3481_v2, %v2575_v45 }
 0x260   : > { %v1158_v7 = vadd.f32 %v2743_v31, %v1143_v14  ;;  %v955_v18 = vadd.f32 %v947_v1, %v894_v20  ;;  %v1015_v51 = vadd.f32 %v1007_v40, %v832_v8  ;;  %v1016_v46 = vadd.f32 %v1008_v56, %v833_v13  ;;  %v3485_v1 = vld [vmem:[#allocation76_spill] sm:$0xff] }
 0x261   : > { %v1159_v42 = vadd.f32 %v2743_v31, %v1144_v52  ;;  %v1076_v22 = vadd.f32 %v3482_v59, %v954_v62  ;;  %v1129_v9 = vmul.f32 %v2670_v6, %v1116_v23  ;;  %v1130_v48 = vmul.f32 %v2670_v6, %v1117_v12  ;;  %v3487_v23 = vld [vmem:[#allocation88_spill] sm:$0xff]  ;;  %v3488_v12 = vld [vmem:[#allocation85_spill] sm:$0xff] }
 0x262   : > { %v1166_v37 = vmax.f32 %v1158_v7, 0.0  ;;  %v1077_v43 = vadd.f32 %v3483_v50, %v955_v18  ;;  %v887_v44 = vmul.f32 %v2590_v54, %v3484_v10  ;;  %v888_v45 = vmul.f32 %v2590_v54, %v2641_v38 }
 0x263   : > { %v1167_v57 = vmax.f32 %v1159_v42, 0.0  ;;  %v1137_v14 = vadd.f32 %v1129_v9, %v1015_v51  ;;  %v1138_v11 = vadd.f32 %v1130_v48, %v1016_v46  ;;  %v948_v8 = vmul.f32 %v2468_v55, %v2595_v29  ;;  %v3489_v51 = vld [vmem:[#allocation91_spill] sm:$0xff] }
 0x264   : > { %v949_v13 = vmul.f32 %v2468_v55, %v2645_v61  ;;  %v895_v52 = vadd.f32 %v887_v44, %v3485_v1  ;;  %v896_v20 = vadd.f32 %v888_v45, %v3486_v15  ;;  %v1009_v49 = vmul.f32 %v2653_v5, %v2673_v30  ;;  %v3490_v9 = vld [vmem:[#allocation83_spill] sm:$0xff]  ;;  %v2815_v1 = vld [vmem:[%s3264_s8 + $0x1] ss:$0 sm:$0xff] }
 0x265   : > { %v1174_v16 = vpack.c.bf16 %v1167_v57, %v1166_v37  ;;  %v1145_v40 = vadd.f32 %v1137_v14, %v1076_v22  ;;  %v1146_v56 = vadd.f32 %v1138_v11, %v1077_v43  ;;  %v1010_v54 = vmul.f32 %v2653_v5, %v2606_v47 }
 0x266   : > { %v1131_v38 = vmul.f32 %v2670_v6, %v2680_v34  ;;  %v956_v29 = vadd.f32 %v948_v8, %v895_v52  ;;  %v957_v55 = vadd.f32 %v949_v13, %v896_v20  ;;  %v1017_v61 = vadd.f32 %v1009_v49, %v2561_v26 }
 0x267   : > { %1799 = vmatprep.mubr.msk.bf16.mxu1 %vm380_vm0, %v1174_v16  ;;  %v1132_v7 = vmul.f32 %v2670_v6, %v2609_v53  ;;  %v1160_v62 = vadd.f32 %v2743_v31, %v1145_v40  ;;  %v1161_v30 = vadd.f32 %v2743_v31, %v1146_v56  ;;  %v1018_v19 = vadd.f32 %v1010_v54, %v2616_v60  ;;  %v3491_v40 = vld [vmem:[#allocation19_spill] sm:$0xff]  ;;  %v2827_v54 = vld [vmem:[%s3264_s8 + $0x7] ss:$0 sm:$0xff] }
 0x268   : > { %v698_v47 = vadd.f32 %v2598_v3, %v3487_v23  ;;  %v1078_v34 = vadd.f32 %v2584_v25, %v956_v29  ;;  %v1079_v42 = vadd.f32 %v3488_v12, %v957_v55  ;;  %v1139_v18 = vadd.f32 %v1131_v38, %v1017_v61  ;;  %v3493_v23 = vld [vmem:[#allocation68_spill] sm:$0xff] }
 0x269   : > { %v1012_v26 = vmul.f32 %v2653_v5, %v3489_v51  ;;  %v1168_v46 = vmax.f32 %v1160_v62, 0.0  ;;  %v1169_v37 = vmax.f32 %v1161_v30, 0.0  ;;  %v1140_v53 = vadd.f32 %v1132_v7, %v1018_v19  ;;  %v3492_v7 = vld [vmem:[#allocation14_spill] sm:$0xff] }
 0x26a   : > { %v837_v59 = vadd.f32 %v2601_v24, %v698_v47  ;;  %v1147_v22 = vadd.f32 %v1139_v18, %v1078_v34  ;;  %v1134_v60 = vmul.f32 %v2670_v6, %v3490_v9  ;;  %v1164_v50 = vadd.f32 %v2743_v31, %v2709_v21  ;;  %v2804_v21 = vld [vmem:[%s3263_s7] ss:$0 sm:$0xff] }
 0x26b   : > { %v1175_v48 = vpack.c.bf16 %v1169_v37, %v1168_v46  ;;  %v1148_v57 = vadd.f32 %v1140_v53, %v1079_v42  ;;  %v3494_v37 = vld [vmem:[#allocation36_spill] sm:$0xff] }
 0x26c   : > { %v1020_v3 = vadd.f32 %v1012_v26, %v837_v59  ;;  %v1162_v25 = vadd.f32 %v2743_v31, %v1147_v22  ;;  %v1172_v45 = vmax.f32 %v1164_v50, 0.0  ;;  %v3495_v22 = vld [vmem:[#allocation30_spill] sm:$0xff] }
 0x26d   : > { %1800 = vmatmul.mubr.msk.bf16.vlgmr.msra.gmra.mrb[0].mxu1 %vm380_vm0, %v1175_v48  ;;  %v1163_v5 = vadd.f32 %v2743_v31, %v1148_v57  ;;  %v2882_v50 = vld [vmem:[%s3264_s8 + $0x6] ss:$0 sm:$0xff] }
 0x26e   : > { %v1142_v43 = vadd.f32 %v1134_v60, %v1020_v3  ;;  %v1170_v10 = vmax.f32 %v1162_v25, 0.0  ;;  %v2877_v25 = vld [vmem:[%s3264_s8 + $0x3] ss:$0 sm:$0xff] }
 0x26f   : > { %v1171_v44 = vmax.f32 %v1163_v5, 0.0  ;;  %v3496_v5 = vld [vmem:[#allocation18_spill] sm:$0xff] }
 0x270   : > { %v1150_v24 = vadd.f32 %v1142_v43, %v2694_v35  ;;  %v2809_v35 = vld [vmem:[%s3264_s8 + $0x4] ss:$0 sm:$0xff] }
 0x271   : > { %v1176_v14 = vpack.c.bf16 %v1171_v44, %v1170_v10 }
 0x272   : > { %v1165_v6 = vadd.f32 %v2743_v31, %v1150_v24  ;;  %v2892_v24 = vld [vmem:[%s3264_s8 + $0x2] ss:$0 sm:$0xff] }
 0x273   : > { %1803 = vmatprep.mubr.msk.bf16.mxu1 %vm380_vm0, %v1176_v14 }
 0x274   : > { %v1173_v11 = vmax.f32 %v1165_v6, 0.0  ;;  %v3498_v6 = vld [vmem:[#allocation26_spill] sm:$0xff] }
 0x276   : > { %v1177_v8 = vpack.c.bf16 %v1173_v11, %v1172_v45  ;;  %v3497_v45 = vld [vmem:[#allocation53_spill] sm:$0xff] }
 0x278   : > { %1804 = vmatmul.mubr.msk.bf16.gmra.mrb[4].mxu1 %vm380_vm0, %v1177_v8 }
 0x340   : > { %v1801_v13 = vpop.f32.mrb[0].mxu1 }
 0x341   : > { %v1256_v16 = vadd.f32 %v1801_v13, %v2804_v21  ;;  %v1247_v31 = vpop.f32.mrb[1].mxu1  ;;  %v2902_v13 = vld [vmem:[%s3264_s8 + $0x8] ss:$0 sm:$0xff] }
 0x342   : > { %v2818_v52 = vadd.f32 %v2804_v21, %v1247_v31  ;;  %v1802_v15 = vpop.f32.mrb[2].mxu1 }
 0x343   : > { %v2821_v20 = vmul.f32 %v2809_v35, %v1256_v16  ;;  %v1293_v49 = vrot.slane %v1256_v16, 7  ;;  %v1339_v56 = vmul.f32 %v1256_v16, %v3491_v40  ;;  %v1250_v38 = vpop.f32.mrb[3].mxu1  ;;  %v1367_v29 = vrot.slane %v1256_v16, 1 }
 0x344   : > { %v1498_v55 = vmul.f32 %v1256_v16, %v3468_v36  ;;  %v2832_v61 = vmul.f32 %v2809_v35, %v2818_v52  ;;  %v1337_v62 = vmul.f32 %v2818_v52, %v3492_v7  ;;  %v3341_v19 = vrot.slane %v2818_v52, 7 }
 0x345   : > { %v2837_v30 = vmul.f32 %v2815_v1, %v1339_v56  ;;  %v1504_v47 = vmul.f32 %v2818_v52, %v3493_v23  ;;  %v2843_v34 = vadd.f32 %v1802_v15, %v2804_v21  ;;  %v3340_v42 = vrot.slane %v2818_v52, 1 }
 0x346   : > { %v2846_v36 = vmul.f32 %v2827_v54, %v1498_v55  ;;  %v1350_v12 = vmul.f32 %v2815_v1, %v1337_v62  ;;  %v1251_v18 = vadd.f32 %v2804_v21, %v1250_v38  ;;  %v2912_v38 = vld [vmem:[%s3264_s8] ss:$0 sm:$0xff] }
 0x347   : > { %v2852_v51 = vmul.f32 %v2827_v54, %v1504_v47  ;;  %v1286_v26 = vmul.f32 %v2809_v35, %v2843_v34  ;;  %v1294_v46 = vrot.slane %v2843_v34, 7  ;;  %v1340_v53 = vmul.f32 %v2843_v34, %v3494_v37 }
 0x348   : > { %v3342_v59 = vrot.slane %v2843_v34, 1  ;;  %v1499_v9 = vmul.f32 %v2843_v34, %v3495_v22  ;;  %v2863_v60 = vmul.f32 %v2809_v35, %v1251_v18  ;;  %v1292_v48 = vrot.slane %v1251_v18, 7 }
 0x349   : > { %v2869_v57 = vsel %vm621_vm1, %v1293_v49, %v1294_v46  ;;  %v2872_v3 = vmul.f32 %v2815_v1, %v1340_v53  ;;  %v1338_v43 = vmul.f32 %v1251_v18, %v3496_v5  ;;  %v1366_v10 = vrot.slane %v1251_v18, 1 }
 0x34a   : > { %v1377_v44 = vsel %vm768_vm2, %v1367_v29, %v3342_v59  ;;  %v1413_v14 = vmul.f32 %v2869_v57, %v3497_v45  ;;  %v1470_v11 = vmul.f32 %v2869_v57, %v3498_v6  ;;  %v1512_v8 = vmul.f32 %v2827_v54, %v1499_v9  ;;  %v3500_v45 = vld [vmem:[#allocation35_spill] sm:$0xff]  ;;  %v2948_v6 = vld [vmem:[%s3264_s8 + $0x5] ss:$0 sm:$0xff] }
 0x34b   : > { %v1805_v16 = vpop.f32.mrb[4].mxu1  ;;  %v1384_v31 = vmul.f32 %v1377_v44, %v3460_v63  ;;  %v1441_v15 = vmul.f32 %v1377_v44, %v3470_v33  ;;  %v1527_v40 = vmul.f32 %v1377_v44, %v3471_v0  ;;  %v1304_v56 = vsel %vm621_vm1, %v1292_v48, %v1293_v49  ;;  %v3499_v44 = vld [vmem:[#allocation16_spill] sm:$0xff] }
 0x34c   : > { %v1263_v55 = vpop.f32.mrb[5].mxu1  ;;  %v1426_v7 = vmul.f32 %v2877_v25, %v1413_v14  ;;  %v2916_v62 = vmul.f32 %v2882_v50, %v1470_v11  ;;  %v1305_v63 = vsel %vm621_vm1, %v3341_v19, %v1292_v48  ;;  %v1310_v33 = vmul.f32 %v1304_v56, %v3455_v28  ;;  %v3503_v19 = vld [vmem:[#allocation72_spill] sm:$0xff] }
 0x34d   : > { %v2923_v0 = vpop.f32.mrb[6].mxu1  ;;  %v1397_v49 = vmul.f32 %v2892_v24, %v1384_v31  ;;  %v2927_v23 = vmul.f32 %v2902_v13, %v1527_v40  ;;  %v1309_v47 = vmul.f32 %v1305_v63, %v3453_v41  ;;  %v1351_v37 = vmul.f32 %v2815_v1, %v1338_v43  ;;  %v3501_v31 = vld [vmem:[#allocation22_spill] sm:$0xff] }
 0x34e   : > { %v2931_v53 = vpop.f32.mrb[7].mxu1  ;;  %v1323_v22 = vmul.f32 %v2912_v38, %v1310_v33  ;;  %v1378_v9 = vsel %vm768_vm2, %v1366_v10, %v1367_v29  ;;  %v1379_v28 = vsel %vm768_vm2, %v3340_v42, %v1366_v10  ;;  %v1411_v48 = vmul.f32 %v1305_v63, %v3463_v27  ;;  %v3502_v42 = vld [vmem:[#allocation24_spill] sm:$0xff] }
 0x34f   : > { %v1322_v5 = vmul.f32 %v2912_v38, %v1309_v47  ;;  %v1382_v41 = vmul.f32 %v1379_v28, %v3499_v44  ;;  %v1383_v43 = vmul.f32 %v1378_v9, %v3500_v45  ;;  %v1412_v14 = vmul.f32 %v1304_v56, %v3464_v58 }
 0x350   : > { %v1331_v29 = vadd.f32 %v1323_v22, %v1286_v26  ;;  %v1424_v11 = vmul.f32 %v2877_v25, %v1411_v48  ;;  %v1439_v10 = vmul.f32 %v1379_v28, %v3501_v31  ;;  %v1440_v27 = vmul.f32 %v1378_v9, %v3465_v4 }
 0x351   : > { %v1330_v40 = vadd.f32 %v1322_v5, %v2821_v20  ;;  %v2955_v33 = vmul.f32 %v2892_v24, %v1382_v41  ;;  %v1396_v47 = vmul.f32 %v2892_v24, %v1383_v43  ;;  %v1425_v58 = vmul.f32 %v2877_v25, %v1412_v14  ;;  %v3504_v43 = vld [vmem:[#allocation29_spill] sm:$0xff]  ;;  %v3505_v14 = vld [vmem:[#allocation80_spill] sm:$0xff] }
 0x352   : > { %v1432_v44 = vadd.f32 %v1424_v11, %v1350_v12  ;;  %v1453_v45 = vmul.f32 %v2948_v6, %v1440_v27  ;;  %v1454_v26 = vmul.f32 %v2948_v6, %v1441_v15  ;;  %v1468_v22 = vmul.f32 %v1305_v63, %v3466_v39 }
 0x353   : > { %v1404_v48 = vadd.f32 %v1396_v47, %v1330_v40  ;;  %v1433_v31 = vadd.f32 %v1425_v58, %v1351_v37  ;;  %v1469_v4 = vmul.f32 %v1304_v56, %v3502_v42  ;;  %v1497_v20 = vmul.f32 %v1251_v18, %v3503_v19  ;;  %v3509_v58 = vld [vmem:[#allocation43_spill] sm:$0xff] }
 0x354   : > { %v1461_v5 = vadd.f32 %v1453_v45, %v1432_v44  ;;  %v2965_v41 = vmul.f32 %v2882_v50, %v1468_v22  ;;  %v1526_v59 = vmul.f32 %v1378_v9, %v3504_v43  ;;  %v1533_v12 = vmul.f32 %v1379_v28, %v3505_v14  ;;  %v3507_v9 = vld [vmem:[#allocation49_spill] sm:$0xff]  ;;  %v3510_v45 = vld [vmem:[#allocation47_spill] sm:$0xff] }
 0x355   : > { %v1462_v11 = vadd.f32 %v1454_v26, %v1433_v31  ;;  %v2970_v27 = vmul.f32 %v2882_v50, %v1469_v4  ;;  %v2973_v39 = vmul.f32 %v2827_v54, %v1497_v20  ;;  %v2976_v15 = vadd.f32 %v1805_v16, %v2804_v21 }
 0x356   : > { %v2979_v19 = vadd.f32 %v2846_v36, %v1461_v5  ;;  %v2982_v42 = vmul.f32 %v2902_v13, %v1526_v59  ;;  %v2985_v18 = vmul.f32 %v2902_v13, %v1533_v12  ;;  %v2988_v56 = vadd.f32 %v2804_v21, %v1263_v55  ;;  %v3508_v59 = vld [vmem:[#allocation82_spill] sm:$0xff] }
 0x357   : > { %v1520_v63 = vadd.f32 %v1512_v8, %v1462_v11  ;;  %v2992_v37 = vmul.f32 %v2809_v35, %v2976_v15  ;;  %v3346_v16 = vrot.slane %v2976_v15, 7  ;;  %v1343_v36 = vmul.f32 %v2976_v15, %v3507_v9  ;;  %v3512_v11 = vld [vmem:[#allocation55_spill] sm:$0xff] }
 0x358   : > { %3506 = vst [vmem:[#allocation11_spill] sm:$0xff] %v2985_v18  ;;  %v3344_v28 = vrot.slane %v2976_v15, 1  ;;  %v1502_v40 = vmul.f32 %v2976_v15, %v3508_v59  ;;  %v1287_v47 = vmul.f32 %v2809_v35, %v2988_v56  ;;  %v3345_v55 = vrot.slane %v2988_v56, 7  ;;  %v3533_v18 = vld [vmem:[#allocation60_spill] sm:$0xff] }
 0x359   : > { %v3004_v8 = vmul.f32 %v2815_v1, %v1343_v36  ;;  %v1311_v44 = vmul.f32 %v2869_v57, %v3509_v58  ;;  %v1341_v26 = vmul.f32 %v2988_v56, %v3510_v45  ;;  %v3343_v22 = vrot.slane %v2988_v56, 1 }
 0x35a   : > { %v3012_v31 = vmul.f32 %v2827_v54, %v1502_v40  ;;  %v3020_v4 = vsel %vm621_vm1, %v1294_v46, %v3345_v55  ;;  %v1405_v20 = vadd.f32 %v1397_v49, %v1331_v29  ;;  %v1434_v5 = vadd.f32 %v1426_v7, %v2837_v30  ;;  %v3513_v46 = vld [vmem:[#allocation38_spill] sm:$0xff]  ;;  %v3514_v49 = vld [vmem:[#allocation59_spill] sm:$0xff] }
 0x35b   : > { %v1324_v57 = vmul.f32 %v2912_v38, %v1311_v44  ;;  %v3025_v43 = vmul.f32 %v2815_v1, %v1341_v26  ;;  %v3511_v14 = vrot.slane %v2843_v34, 1  ;;  %v1414_v9 = vmul.f32 %v3020_v4, %v3512_v11  ;;  %v3515_v30 = vld [vmem:[#allocation27_spill] sm:$0xff] }
 0x35c   : > { %v1471_v7 = vmul.f32 %v3020_v4, %v3515_v30  ;;  %v1491_v59 = vadd.f32 %v2916_v62, %v1404_v48  ;;  %v3516_v34 = vld [vmem:[#allocation31_spill] sm:$0xff] }
 0x35d   : > { %v1376_v12 = vsel %vm768_vm2, %v3511_v14, %v3343_v22  ;;  %v1332_v40 = vadd.f32 %v1324_v57, %v1287_v47  ;;  %v3041_v58 = vmul.f32 %v2877_v25, %v1414_v9  ;;  %v1500_v44 = vmul.f32 %v2988_v56, %v3516_v34  ;;  %v3528_v22 = vld [vmem:[#allocation50_spill] sm:$0xff]  ;;  %v3529_v55 = vld [vmem:[#allocation63_spill] sm:$0xff] }
 0x35e   : > { %v1385_v36 = vmul.f32 %v1376_v12, %v3513_v46  ;;  %v1442_v29 = vmul.f32 %v1376_v12, %v3514_v49  ;;  %v1528_v45 = vmul.f32 %v1376_v12, %v3480_v32  ;;  %v1484_v11 = vmul.f32 %v2882_v50, %v1471_v7 }
 0x35f   : > { %v1275_v46 = vadd.f32 %v2923_v0, %v2804_v21  ;;  %v1513_v62 = vmul.f32 %v2827_v54, %v1500_v44  ;;  %v1452_v47 = vmul.f32 %v2948_v6, %v1439_v10  ;;  %v3056_v57 = vadd.f32 %v2804_v21, %v2931_v53  ;;  %v3071_v21 = vld [vmem:[%s3265_s9] ss:$0 sm:$0xff]  ;;  %v3520_v53 = vld [vmem:[#allocation92_spill] sm:$0xff] }
 0x360   : > { %v1398_v26 = vmul.f32 %v2892_v24, %v1385_v36  ;;  %v1455_v14 = vmul.f32 %v2948_v6, %v1442_v29  ;;  %v1541_v48 = vmul.f32 %v2902_v13, %v1528_v45  ;;  %v3060_v9 = vadd.f32 %v1484_v11, %v1405_v20  ;;  %v3518_v29 = vld [vmem:[#allocation13_spill] sm:$0xff] }
 0x361   : > { %v3063_v36 = vmul.f32 %v2809_v35, %v1275_v46  ;;  %v1298_v0 = vrot.slane %v1275_v46, 7  ;;  %v1336_v30 = vmul.f32 %v1275_v46, %v3518_v29  ;;  %v1372_v7 = vrot.slane %v1275_v46, 1  ;;  %v3526_v29 = vld [vmem:[#allocation48_spill] sm:$0xff] }
 0x362   : > { %v3058_v32 = vadd.f32 %v1398_v26, %v1332_v40  ;;  %v1463_v12 = vadd.f32 %v1455_v14, %v1434_v5  ;;  %3517 = vst [vmem:[#allocation12_spill] sm:$0xff] %v3060_v9  ;;  %v1549_v49 = vadd.f32 %v1541_v48, %v1491_v59  ;;  %v1503_v10 = vmul.f32 %v1275_v46, %v3520_v53  ;;  %v3522_v14 = vld [vmem:[#allocation41_spill] sm:$0xff]  ;;  %v3523_v46 = vld [vmem:[#allocation10_spill] sm:$0xff]  ;;  %v3532_v9 = vld [vmem:[#allocation67_spill] sm:$0xff] }
 0x363   : > { %v3076_v20 = vmul.f32 %v2809_v35, %v3056_v57  ;;  %v1296_v5 = vrot.slane %v3056_v57, 7  ;;  %v1299_v40 = vsel %vm621_vm1, %v3346_v16, %v1298_v0  ;;  %v3521_v44 = vrot.slane %v2818_v52, 7  ;;  %v3527_v53 = vld [vmem:[#allocation17_spill] sm:$0xff] }
 0x364   : > { %v3066_v34 = vadd.f32 %v1513_v62, %v1463_v12  ;;  %v1557_v59 = vadd.f32 %v1549_v49, %v1520_v63  ;;  %v1349_v26 = vmul.f32 %v2815_v1, %v1336_v30  ;;  %v1307_v11 = vmul.f32 %v1299_v40, %v3522_v14  ;;  %v3525_v49 = vld [vmem:[#allocation15_spill] sm:$0xff] }
 0x365   : > { %v1306_v45 = vsel %vm621_vm1, %v1298_v0, %v3521_v44  ;;  %v1373_v63 = vsel %vm768_vm2, %v3344_v28, %v1372_v7  ;;  %v3524_v62 = vrot.slane %v2818_v52, 1  ;;  %v1417_v28 = vmul.f32 %v1299_v40, %v3528_v22  ;;  %v3531_v22 = vld [vmem:[#allocation3_spill] sm:$0xff] }
 0x366   : > { %3519 = vst [vmem:[#allocation74_spill] sm:$0xff] %v3066_v34  ;;  %v1308_v35 = vmul.f32 %v1306_v45, %v3523_v46  ;;  %v1572_v12 = vadd.f32 %v3071_v21, %v1557_v59  ;;  %v1388_v30 = vmul.f32 %v1373_v63, %v3526_v29  ;;  %v1410_v44 = vmul.f32 %v1306_v45, %v3527_v53 }
 0x367   : > { %v1380_v48 = vsel %vm768_vm2, %v1372_v7, %v3524_v62  ;;  %v1320_v14 = vmul.f32 %v2912_v38, %v1307_v11  ;;  %v3106_v52 = vmul.f32 %v1373_v63, %v3529_v55  ;;  %v1430_v29 = vmul.f32 %v2877_v25, %v1417_v28 }
 0x368   : > { %v1381_v0 = vmul.f32 %v1380_v48, %v3525_v49  ;;  %v1321_v46 = vmul.f32 %v2912_v38, %v1308_v35  ;;  %v1580_v16 = vmax.f32 %v1572_v12, 0.0  ;;  %v3110_v59 = vmul.f32 %v2892_v24, %v1388_v30  ;;  %v3530_v35 = vld [vmem:[#allocation58_spill] sm:$0xff] }
 0x369   : > { %v1423_v62 = vmul.f32 %v2877_v25, %v1410_v44  ;;  %v1328_v49 = vadd.f32 %v1320_v14, %v2832_v61  ;;  %v1446_v53 = vmul.f32 %v1380_v48, %v3530_v35  ;;  %v1474_v12 = vmul.f32 %v1299_v40, %v3532_v9  ;;  %v3539_v35 = vld [vmem:[#allocation34_spill] sm:$0xff] }
 0x36a   : > { %v1394_v7 = vmul.f32 %v2892_v24, %v1381_v0  ;;  %v1329_v11 = vadd.f32 %v1321_v46, %v2863_v60  ;;  %v1588_v34 = vadd.f32 %v3531_v22, %v1580_v16  ;;  %v1475_v0 = vmul.f32 %v1306_v45, %v3533_v18  ;;  %v3540_v22 = vld [vmem:[#allocation45_spill] sm:$0xff] }
 0x36b   : > { %v1431_v55 = vadd.f32 %v1423_v62, %v1349_v26  ;;  %v1438_v28 = vadd.f32 %v1430_v29, %v3004_v8  ;;  %v1459_v30 = vmul.f32 %v2948_v6, %v1446_v53  ;;  %v3131_v9 = vmul.f32 %v2882_v50, %v1474_v12  ;;  %v3534_v8 = vld [vmem:[#allocation66_spill] sm:$0xff] }
 0x36c   : > { %v1402_v61 = vadd.f32 %v1394_v7, %v1328_v49  ;;  %v1403_v60 = vadd.f32 %v2955_v33, %v1329_v11  ;;  %v1746_v16 = vpack.c.bf16 %v1588_v34, %v1588_v34  ;;  %v3134_v18 = vmul.f32 %v2882_v50, %v1475_v0  ;;  %v3535_v34 = vld [vmem:[#allocation93_spill] sm:$0xff] }
 0x36d   : > { %v1460_v26 = vadd.f32 %v1452_v47, %v1431_v55  ;;  %v1467_v40 = vadd.f32 %v1459_v30, %v1438_v28  ;;  %v3139_v14 = vmul.f32 %v2827_v54, %v1503_v10  ;;  %v1531_v47 = vmul.f32 %v1373_v63, %v3534_v8  ;;  %v3538_v11 = vld [vmem:[#allocation33_spill] sm:$0xff]  ;;  %v3541_v55 = vld [vmem:[#allocation44_spill] sm:$0xff] }
 0x36e   : > { %v1489_v45 = vadd.f32 %v2965_v41, %v1402_v61  ;;  %v1490_v44 = vadd.f32 %v2970_v27, %v1403_v60  ;;  %1629 = vst.msk [vmem:[%s3125_s22 + $0x8] sm:$0xf] %vm1626_vm3, %v1746_v16  ;;  %v1532_v46 = vmul.f32 %v1380_v48, %v3535_v34  ;;  %v3536_v7 = vrot.slane %v2976_v15, 7  ;;  %v3542_v60 = vld [vmem:[#allocation42_spill] sm:$0xff] }
 0x36f   : > { %v1518_v33 = vadd.f32 %v2973_v39, %v1460_v26  ;;  %v3151_v41 = vadd.f32 %v2852_v51, %v1467_v40  ;;  %v3537_v49 = vrot.slane %v2988_v56, 7  ;;  %v3160_v63 = vmul.f32 %v2902_v13, %v1531_v47 }
 0x370   : > { %v1300_v62 = vsel %vm621_vm1, %v1296_v5, %v3536_v7  ;;  %v1547_v27 = vadd.f32 %v2982_v42, %v1489_v45  ;;  %v1548_v10 = vadd.f32 %v2927_v23, %v1490_v44  ;;  %v1545_v48 = vmul.f32 %v2902_v13, %v1532_v46  ;;  %v3545_v46 = vld [vmem:[#allocation40_spill] sm:$0xff]  ;;  %v3546_v7 = vld [vmem:[#allocation46_spill] sm:$0xff] }
 0x371   : > { %v1301_v39 = vsel %vm621_vm1, %v3537_v49, %v1296_v5  ;;  %v1312_v29 = vmul.f32 %v3020_v4, %v3538_v11  ;;  %v1314_v23 = vmul.f32 %v1300_v62, %v3540_v22  ;;  %v1342_v12 = vmul.f32 %v3056_v57, %v3541_v55  ;;  %v3548_v49 = vld [vmem:[#allocation2_spill] sm:$0xff]  ;;  %v3549_v11 = vld [vmem:[#allocation4_spill] sm:$0xff]  ;;  %v3551_v55 = vld [vmem:[#allocation61_spill] sm:$0xff] }
 0x372   : > { %v1313_v51 = vmul.f32 %v1301_v39, %v3539_v35  ;;  %v1555_v53 = vadd.f32 %v1547_v27, %v1518_v33  ;;  %v1556_v42 = vadd.f32 %v1548_v10, %v2979_v19  ;;  %v1370_v61 = vrot.slane %v3056_v57, 1  ;;  %v3547_v27 = vld [vmem:[#allocation57_spill] sm:$0xff] }
 0x373   : > { %v1325_v5 = vmul.f32 %v2912_v38, %v1312_v29  ;;  %v1415_v28 = vmul.f32 %v1301_v39, %v3542_v60  ;;  %v1327_v16 = vmul.f32 %v2912_v38, %v1314_v23  ;;  %v1355_v19 = vmul.f32 %v2815_v1, %v1342_v12  ;;  %v3553_v60 = vld [vmem:[#allocation56_spill] sm:$0xff] }
 0x374   : > { %v1326_v0 = vmul.f32 %v2912_v38, %v1313_v51  ;;  %v1570_v4 = vadd.f32 %v3071_v21, %v1555_v53  ;;  %v1571_v30 = vadd.f32 %v3071_v21, %v1556_v42  ;;  %v3543_v45 = vrot.slane %v2976_v15, 1  ;;  %v3550_v42 = vld [vmem:[#allocation52_spill] sm:$0xff] }
 0x375   : > { %v1333_v26 = vadd.f32 %v1325_v5, %v3076_v20  ;;  %v3544_v33 = vrot.slane %v2988_v56, 1  ;;  %v1335_v38 = vadd.f32 %v1327_v16, %v3063_v36  ;;  %v1428_v15 = vmul.f32 %v2877_v25, %v1415_v28 }
 0x376   : > { %v1334_v40 = vadd.f32 %v1326_v0, %v2992_v37  ;;  %v1374_v44 = vsel %vm768_vm2, %v1370_v61, %v3543_v45  ;;  %v1578_v47 = vmax.f32 %v1570_v4, 0.0  ;;  %v1579_v34 = vmax.f32 %v1571_v30, 0.0 }
 0x377   : > { %v1375_v8 = vsel %vm768_vm2, %v3544_v33, %v1370_v61  ;;  %v1387_v20 = vmul.f32 %v1374_v44, %v3546_v7  ;;  %v1416_v37 = vmul.f32 %v1300_v62, %v3547_v27  ;;  %v1435_v10 = vadd.f32 %v3041_v58, %v2872_v3 }
 0x378   : > { %v1386_v1 = vmul.f32 %v1375_v8, %v3545_v46  ;;  %v1586_v56 = vadd.f32 %v3548_v49, %v1578_v47  ;;  %v1587_v17 = vadd.f32 %v3549_v11, %v1579_v34  ;;  %v1409_v36 = vadd.f32 %v3110_v59, %v1335_v38  ;;  %v3555_v47 = vld [vmem:[#allocation64_spill] sm:$0xff] }
 0x379   : > { %v1400_v35 = vmul.f32 %v2892_v24, %v1387_v20  ;;  %v1429_v51 = vmul.f32 %v2877_v25, %v1416_v37  ;;  %v1436_v53 = vadd.f32 %v1428_v15, %v3025_v43  ;;  %v1443_v22 = vmul.f32 %v1375_v8, %v3550_v42 }
 0x37a   : > { %v1399_v29 = vmul.f32 %v2892_v24, %v1386_v1  ;;  %v1744_v23 = vpack.c.bf16 %v1586_v56, %v1586_v56  ;;  %v1745_v3 = vpack.c.bf16 %v1587_v17, %v1587_v17  ;;  %v1444_v12 = vmul.f32 %v1374_v44, %v3551_v55  ;;  %v3552_v24 = vld [vmem:[#allocation54_spill] sm:$0xff]  ;;  %v3559_v17 = vld [vmem:[#allocation8_spill] sm:$0xff] }
 0x37b   : > { %v1408_v5 = vadd.f32 %v1400_v35, %v1334_v40  ;;  %v1437_v0 = vadd.f32 %v1429_v51, %v1355_v19  ;;  %v1456_v61 = vmul.f32 %v2948_v6, %v1443_v22  ;;  %v1458_v59 = vmul.f32 %v2948_v6, %v3106_v52  ;;  %v3560_v51 = vld [vmem:[#allocation9_spill] sm:$0xff]  ;;  %v3563_v55 = vld [vmem:[#allocation6_spill] sm:$0xff] }
 0x37c   : > { %v1407_v58 = vadd.f32 %v1399_v29, %v1333_v26  ;;  %1627 = vst.msk [vmem:[%s3125_s22] sm:$0xf] %vm1626_vm3, %v1744_v23  ;;  %1628 = vst.msk [vmem:[%s3125_s22 + $0x4] sm:$0xf] %vm1626_vm3, %v1745_v3  ;;  %v1457_v25 = vmul.f32 %v2948_v6, %v1444_v12  ;;  %v1472_v43 = vmul.f32 %v1301_v39, %v3552_v24  ;;  %v3554_v26 = vld [vmem:[#allocation62_spill] sm:$0xff]  ;;  %v3561_v22 = vld [vmem:[#allocation5_spill] sm:$0xff] }
 0x37d   : > { %v1473_v28 = vmul.f32 %v1300_v62, %v3553_v60  ;;  %v1496_v4 = vadd.f32 %v3134_v18, %v1409_v36  ;;  %v1464_v30 = vadd.f32 %v1456_v61, %v1435_v10  ;;  %v1466_v16 = vadd.f32 %v1458_v59, %v1437_v0  ;;  %v3562_v3 = vld [vmem:[#allocation7_spill] sm:$0xff] }
 0x37e   : > { %v1495_v19 = vadd.f32 %v3131_v9, %v1408_v5  ;;  %v1501_v40 = vmul.f32 %v3056_v57, %v3554_v26  ;;  %v1465_v52 = vadd.f32 %v1457_v25, %v1436_v53  ;;  %v1485_v45 = vmul.f32 %v2882_v50, %v1472_v43 }
 0x37f   : > { %v1486_v33 = vmul.f32 %v2882_v50, %v1473_v28  ;;  %v1529_v6 = vmul.f32 %v1375_v8, %v3481_v2  ;;  %v1524_v62 = vadd.f32 %v3139_v14, %v1466_v16  ;;  %v1530_v18 = vmul.f32 %v1374_v44, %v3555_v47  ;;  %v3556_v50 = vld [vmem:[#allocation11_spill] sm:$0xff]  ;;  %v3557_v8 = vld [vmem:[#allocation12_spill] sm:$0xff]  ;;  %v3558_v44 = vld [vmem:[#allocation74_spill] sm:$0xff] }
 0x380   : > { %v1514_v39 = vmul.f32 %v2827_v54, %v1501_v40  ;;  %v1553_v34 = vadd.f32 %v1545_v48, %v1495_v19  ;;  %v1493_v38 = vadd.f32 %v1485_v45, %v3058_v32  ;;  %v1523_v46 = vadd.f32 %v3012_v31, %v1465_v52 }
 0x381   : > { %v1494_v9 = vadd.f32 %v1486_v33, %v1407_v58  ;;  %v1542_v57 = vmul.f32 %v2902_v13, %v1529_v6  ;;  %v1543_v7 = vmul.f32 %v2902_v13, %v1530_v18  ;;  %v1554_v20 = vadd.f32 %v3556_v50, %v1496_v4 }
 0x382   : > { %v1522_v1 = vadd.f32 %v1514_v39, %v1464_v30  ;;  %v1561_v2 = vadd.f32 %v1553_v34, %v1524_v62 }
 0x383   : > { %v1550_v54 = vadd.f32 %v1542_v57, %v3557_v8  ;;  %v1552_v14 = vadd.f32 %v3160_v63, %v1494_v9  ;;  %v1551_v27 = vadd.f32 %v1543_v7, %v1493_v38  ;;  %v1562_v48 = vadd.f32 %v1554_v20, %v3151_v41 }
 0x384   : > { %v1576_v32 = vadd.f32 %v3071_v21, %v1561_v2 }
 0x385   : > { %v1558_v37 = vadd.f32 %v1550_v54, %v3558_v44  ;;  %v1560_v31 = vadd.f32 %v1552_v14, %v1523_v46  ;;  %v1559_v15 = vadd.f32 %v1551_v27, %v1522_v1  ;;  %v1577_v10 = vadd.f32 %v3071_v21, %v1562_v48 }
 0x386   : > { %v1584_v13 = vmax.f32 %v1576_v32, 0.0 }
 0x387   : > { %v1573_v49 = vadd.f32 %v3071_v21, %v1558_v37  ;;  %v1575_v56 = vadd.f32 %v3071_v21, %v1560_v31  ;;  %v1574_v11 = vadd.f32 %v3071_v21, %v1559_v15  ;;  %v1585_v63 = vmax.f32 %v1577_v10, 0.0 }
 0x388   : > { %v1592_v41 = vadd.f32 %v3559_v17, %v1584_v13 }
 0x389   : > { %v1581_v29 = vmax.f32 %v1573_v49, 0.0  ;;  %v1583_v36 = vmax.f32 %v1575_v56, 0.0  ;;  %v1582_v35 = vmax.f32 %v1574_v11, 0.0  ;;  %v1593_v53 = vadd.f32 %v3560_v51, %v1585_v63 }
 0x38a   : > { %v1750_v42 = vpack.c.bf16 %v1592_v41, %v1592_v41 }
 0x38b   : > { %v1589_v23 = vadd.f32 %v3561_v22, %v1581_v29  ;;  %v1591_v58 = vadd.f32 %v3562_v3, %v1583_v36  ;;  %v1590_v12 = vadd.f32 %v3563_v55, %v1582_v35  ;;  %v1751_v21 = vpack.c.bf16 %v1593_v53, %v1593_v53 }
 0x38c   : > { %1633 = vst.msk [vmem:[%s3125_s22 + $0x18] sm:$0xf] %vm1626_vm3, %v1750_v42 }
 0x38d   : > { %v1747_v5 = vpack.c.bf16 %v1589_v23, %v1589_v23  ;;  %v1749_v0 = vpack.c.bf16 %v1591_v58, %v1591_v58  ;;  %v1748_v61 = vpack.c.bf16 %v1590_v12, %v1590_v12  ;;  %1634 = vst.msk [vmem:[%s3125_s22 + $0x1c] sm:$0xf] %vm1626_vm3, %v1751_v21 }
 0x38f   : > { %1630 = vst.msk [vmem:[%s3125_s22 + $0xc] sm:$0xf] %vm1626_vm3, %v1747_v5  ;;  %1632 = vst.msk [vmem:[%s3125_s22 + $0x14] sm:$0xf] %vm1626_vm3, %v1749_v0 }
 0x390   : > { %1631 = vst.msk [vmem:[%s3125_s22 + $0x10] sm:$0xf] %vm1626_vm3, %v1748_v61 }
 0x391 PF: > { %s20_s13 = sadd.s32 1, %s1888_s13  }
 0x392   : > { %p17_p4 = scmp.ge.s32.totalorder %s20_s13, 4  }
 0x394   :  { %19 = sbr.rel (!%p17_p4) target bundleno = 1 (0x1), region = 90 }

// kernel: tpu_custom_call.1
= control target key start
LH: loop header
LB: loop body
LE: loop exit
PB: predicated region body
PF: predicated region fallthrough
CT: control target
= control target key end

     0   :  { %s1953_s13 = smov 0   ;;  %s3256_s0 = inlined_call_operand.vmem [shape: bf16[128,32], index: 0, kind: input, shape index: {}]   ;;  %s3257_s1 = inlined_call_operand.vmem [shape: f32[64,9], index: 1, kind: input, shape index: {}]   ;;  %s3258_s2 = inlined_call_operand.vmem [shape: bf16[32,32], index: 2, kind: input, shape index: {}]   ;;  %s3259_s3 = inlined_call_operand.vmem [shape: f32[1,32], index: 3, kind: input, shape index: {}]   ;;  %s3260_s4 = inlined_call_operand.vmem [shape: f32[9,32], index: 4, kind: input, shape index: {}]   ;;  %s3261_s5 = inlined_call_operand.vmem [shape: f32[1,32], index: 5, kind: input, shape index: {}]   ;;  %s3262_s6 = inlined_call_operand.vmem [shape: bf16[32,32], index: 6, kind: input, shape index: {}]   ;;  %s3263_s7 = inlined_call_operand.vmem [shape: f32[1,32], index: 7, kind: input, shape index: {}]   ;;  %s3264_s8 = inlined_call_operand.vmem [shape: f32[9,32], index: 8, kind: input, shape index: {}]   ;;  %s3265_s9 = inlined_call_operand.vmem [shape: f32[1,32], index: 9, kind: input, shape index: {}]   ;;  %s3266_s10 = inlined_call_operand.vmem [shape: bf16[128,32], index: 10, kind: output, shape index: {}]  }
   0x1 LB: > { %s1691_s14 = sadd.s32 4294967295, %s1888_s13   ;;  %p1695_p0 = scmp.ge.s32.totalorder %s1888_s13, 1  ;;  %s1888_s13 = sphi %s1953_s13, %s20_s13  }
   0x2   : > { %p313_p1 = scmp.lt.s32.totalorder %s1888_s13, 3 }
   0x4   : > { %p314_p2 = pnand %p1695_p0, %p313_p1 }
   0x6   : > { %317 = sbr.rel (%p314_p2) target bundleno = 913 (0x391), region = 60 }
   0xd   : > { %s1696_s15 = sshll.u32 %s1691_s14, 3  ;;  %vm380_vm0 = vcmask 261120   ;;  %v1890_v20 = vmov 0   ;;  %v1891_v21 = vmov 2   ;;  %v2054_v62 = vld [vmem:[%s3257_s1 + $0x8] sm:$0xff]  ;;  %v1862_v63 = vld [vmem:[%s3258_s2] sm:$0xff]  }
   0xe   : > { %p352_p3 = scmp.lt.s32.totalorder %s1696_s15, 15  ;;  %1823 = vset.pattern.permute.xlu1 %v1890_v20  ;;  %1828 = vset.pattern.permute.xlu0 %v1891_v21  ;;  %vm1626_vm3 = vcmask 257024  }
   0xf   : > { %1783 = vmatprep.subr.bf16.mxu0 %v1862_v63 }
  0x10   : > { %s3565_s15 = smov (!%p352_p3, %s1696_s15), 15  ;;  %1784 = vmatpush3.bf16.msra.mxu0 %v1862_v63 }
  0x11   : > { %s1697_s16 = sshll.u32 %s3565_s15, 2 }
  0x12   : > { %s355_s19 = scalar_lea.vmem %s3256_s0, %s1697_s16  ;;  %s3125_s22 = scalar_lea.vmem %s3266_s10, %s1697_s16 }
  0x13   : > { %v1753_v0 = vld [vmem:[%s355_s19] sm:$0xff]   ;;  %v1768_v1 = vld [vmem:[%s355_s19 + $0x8] sm:$0xff]   ;;  %v1769_v6 = vld [vmem:[%s355_s19 + $0x10] sm:$0xff]  }
  0x14   : > { %v1969_v2 = vunpack.c.l.bf16 %v1753_v0  ;;  %v1971_v3 = vunpack.c.l.bf16 %v1768_v1  ;;  %v1973_v4 = vunpack.c.h.bf16 %v1753_v0  ;;  %v1975_v5 = vunpack.c.h.bf16 %v1768_v1  ;;  %v1770_v13 = vld [vmem:[%s355_s19 + $0x18] sm:$0xff]   ;;  %v2063_v0 = vld [vmem:[%s3257_s1 + $0x10] sm:$0xff]  ;;  %v1863_v1 = vld [vmem:[%s3258_s2 + $0x8] sm:$0xff]  }
  0x15   : > { %v1985_v11 = vunpack.c.l.bf16 %v1769_v6  ;;  %v1987_v12 = vunpack.c.h.bf16 %v1769_v6  ;;  %v1993_v16 = vunpack.c.l.bf16 %v1770_v13  ;;  %v1995_v17 = vunpack.c.h.bf16 %v1770_v13  ;;  %1785 = vmatprep.subr.bf16.mxu0 %v1863_v1  ;;  %v2073_v6 = vld [vmem:[%s3257_s1 + $0x18] sm:$0xff] }
  0x16   : > { %3347 = vst [vmem:[#allocation2_spill] sm:$0xff] %v1969_v2  ;;  %3348 = vst [vmem:[#allocation3_spill] sm:$0xff] %v1971_v3  ;;  %v381_v7 = vsel %vm380_vm0, %v1969_v2, 0.0  ;;  %v387_v8 = vsel %vm380_vm0, %v1971_v3, 0.0  ;;  %v384_v9 = vsel %vm380_vm0, %v1973_v4, 0.0  ;;  %v390_v10 = vsel %vm380_vm0, %v1975_v5, 0.0  ;;  %1786 = vmatpush3.bf16.msra.mxu0 %v1863_v1 }
  0x17   : > { %3349 = vst [vmem:[#allocation4_spill] sm:$0xff] %v1973_v4  ;;  %3350 = vst [vmem:[#allocation5_spill] sm:$0xff] %v1975_v5  ;;  %382 = vadd.xlane.f32.xlu0 %v381_v7  ;;  %388 = vadd.xlane.f32.xlu1 %v387_v8  ;;  %v393_v14 = vsel %vm380_vm0, %v1985_v11, 0.0  ;;  %v396_v15 = vsel %vm380_vm0, %v1987_v12, 0.0  ;;  %v399_v18 = vsel %vm380_vm0, %v1993_v16, 0.0  ;;  %v402_v19 = vsel %vm380_vm0, %v1995_v17, 0.0 }
  0x18   : > { %3351 = vst [vmem:[#allocation6_spill] sm:$0xff] %v1985_v11  ;;  %3352 = vst [vmem:[#allocation7_spill] sm:$0xff] %v1987_v12  ;;  %v1892_v7 = vmov 8   ;;  %v486_v8 = vld [vmem:[%s3257_s1] sm:$0xff]  ;;  %v2094_v13 = vld [vmem:[%s3257_s1 + $0x38] sm:$0xff] }
  0x19   : > { %3353 = vst [vmem:[#allocation8_spill] sm:$0xff] %v1993_v16  ;;  %3354 = vst [vmem:[#allocation9_spill] sm:$0xff] %v1995_v17 }
  0x1b   : > { %385 = vadd.xlane.f32.xlu0 %v384_v9  ;;  %391 = vadd.xlane.f32.xlu1 %v390_v10  ;;  %v1893_v9 = vmov 1   ;;  %v2088_v10 = vld [vmem:[%s3257_s1 + $0x20] sm:$0xff] }
  0x1f   : > { %394 = vadd.xlane.f32.xlu0 %v393_v14  ;;  %397 = vadd.xlane.f32.xlu1 %v396_v15  ;;  %v2102_v14 = vld [vmem:[%s3257_s1 + $0x28] sm:$0xff]  ;;  %v1894_v15 = vmov 3  }
  0x23   : > { %400 = vadd.xlane.f32.xlu0 %v399_v18  ;;  %403 = vadd.xlane.f32.xlu1 %v402_v19  ;;  %v2120_v18 = vld [vmem:[%s3257_s1 + $0x30] sm:$0xff]  ;;  %v1895_v19 = vmov 5  }
  0xa4   : > { %v383_v22 = vpop.xlane.xlu0 %382  ;;  %v389_v23 = vpop.xlane.xlu1 %388 }
  0xa5   : > { %v406_v24 = vmul.f32 0.03125, %v383_v22  ;;  %v408_v25 = vmul.f32 0.03125, %v389_v23  ;;  %v1896_v22 = vmov 6   ;;  %v1897_v23 = vmov 7  }
  0xa7   : > { %v2004_v26 = vsub.f32 %v1969_v2, %v406_v24  ;;  %v2007_v27 = vsub.f32 %v1971_v3, %v408_v25  ;;  %v2335_v3 = vld [vmem:[%s3260_s4 + $0x4] ss:$0 sm:$0xff] }
  0xa8   : > { %v386_v28 = vpop.xlane.xlu0 %385  ;;  %v392_v29 = vpop.xlane.xlu1 %391 }
  0xa9   : > { %v407_v30 = vmul.f32 0.03125, %v386_v28  ;;  %v409_v31 = vmul.f32 0.03125, %v392_v29  ;;  %v422_v32 = vmul.f32 %v2004_v26, %v2004_v26  ;;  %v424_v33 = vmul.f32 %v2007_v27, %v2007_v27 }
  0xab   : > { %v2014_v34 = vsub.f32 %v1973_v4, %v407_v30  ;;  %v2017_v35 = vsub.f32 %v1975_v5, %v409_v31  ;;  %v430_v36 = vsel %vm380_vm0, %v422_v32, 0.0  ;;  %v436_v39 = vsel %vm380_vm0, %v424_v33, 0.0  ;;  %v2323_v5 = vld [vmem:[%s3259_s3] ss:$0 sm:$0xff] }
  0xac   : > { %431 = vadd.xlane.f32.xlu0 %v430_v36  ;;  %v395_v37 = vpop.xlane.xlu0 %394  ;;  %v398_v38 = vpop.xlane.xlu1 %397 }
  0xad   : > { %v410_v40 = vmul.f32 0.03125, %v395_v37  ;;  %v411_v41 = vmul.f32 0.03125, %v398_v38  ;;  %v423_v42 = vmul.f32 %v2014_v34, %v2014_v34  ;;  %v425_v43 = vmul.f32 %v2017_v35, %v2017_v35 }
  0xaf   : > { %v2026_v44 = vsub.f32 %v1985_v11, %v410_v40  ;;  %v2029_v45 = vsub.f32 %v1987_v12, %v411_v41  ;;  %v433_v46 = vsel %vm380_vm0, %v423_v42, 0.0  ;;  %v439_v49 = vsel %vm380_vm0, %v425_v43, 0.0 }
  0xb0   : > { %437 = vadd.xlane.f32.xlu0 %v436_v39  ;;  %434 = vadd.xlane.f32.xlu1 %v433_v46  ;;  %v401_v47 = vpop.xlane.xlu0 %400  ;;  %v404_v48 = vpop.xlane.xlu1 %403  ;;  %v619_v12 = vlaneseq }
  0xb1   : > { %v412_v50 = vmul.f32 0.03125, %v401_v47  ;;  %v413_v51 = vmul.f32 0.03125, %v404_v48  ;;  %v426_v52 = vmul.f32 %v2026_v44, %v2026_v44  ;;  %v427_v53 = vmul.f32 %v2029_v45, %v2029_v45 }
  0xb3   : > { %v2038_v54 = vsub.f32 %v1993_v16, %v412_v50  ;;  %v2041_v55 = vsub.f32 %v1995_v17, %v413_v51  ;;  %v442_v56 = vsel %vm380_vm0, %v426_v52, 0.0  ;;  %v445_v57 = vsel %vm380_vm0, %v427_v53, 0.0 }
  0xb4   : > { %440 = vadd.xlane.f32.xlu1 %v439_v49  ;;  %443 = vadd.xlane.f32.xlu0 %v442_v56  ;;  %v2325_v17 = vshrl.u32 %v619_v12, 7 }
  0xb5   : > { %v428_v58 = vmul.f32 %v2038_v54, %v2038_v54  ;;  %v429_v59 = vmul.f32 %v2041_v55, %v2041_v55 }
  0xb6   : > { %vm621_vm1 = vcmp.lt.s32.totalorder %v2325_v17, 1  ;;  %vm768_vm2 = vcmp.lt.s32.totalorder %v2325_v17, 7 }
  0xb7   : > { %v448_v60 = vsel %vm380_vm0, %v428_v58, 0.0  ;;  %v451_v61 = vsel %vm380_vm0, %v429_v59, 0.0 }
  0xb8   : > { %446 = vadd.xlane.f32.xlu1 %v445_v57  ;;  %449 = vadd.xlane.f32.xlu0 %v448_v60 }
  0xbc   : > { %452 = vadd.xlane.f32.xlu1 %v451_v61 }
  0xcd   : > { %637 = vperm.xlu1 %1823, %v2054_v62  }
  0xce   : > { %786 = vperm.xlu0 %1828, %v2063_v0  }
  0xd1   : > { %642 = vperm.xlu1 %1823, %v2063_v0  }
  0xd2   : > { %1837 = vset.pattern.permute.xlu0 %v1892_v7 }
  0xd3   : > { %1087 = vperm.xlu0 %1837, %v2054_v62  }
  0xd5   : > { %647 = vperm.xlu1 %1823, %v2073_v6  }
  0xd7   : > { %1091 = vperm.xlu0 %1837, %v2063_v0  }
  0xd9   : > { %1824 = vset.pattern.permute.xlu1 %v1893_v9 }
  0xda   : > { %700 = vperm.xlu1 %1824, %v486_v8  }
  0xdb   : > { %1839 = vset.pattern.permute.xlu0 %v1890_v20 }
  0xdc   : > { %632 = vperm.xlu0 %1839, %v486_v8  }
  0xde   : > { %704 = vperm.xlu1 %1824, %v2054_v62  }
  0xe0   : > { %652 = vperm.xlu0 %1839, %v2088_v10  }
  0xe2   : > { %1825 = vset.pattern.permute.xlu1 %v1891_v21 }
  0xe3   : > { %778 = vperm.xlu1 %1825, %v486_v8  }
  0xe4   : > { %667 = vperm.xlu0 %1839, %v2094_v13  }
  0xe7   : > { %782 = vperm.xlu1 %1825, %v2054_v62  }
  0xe8   : > { %1843 = vset.pattern.permute.xlu0 %v1893_v9 }
  0xe9   : > { %720 = vperm.xlu0 %1843, %v2102_v14  }
  0xeb   : > { %1826 = vset.pattern.permute.xlu1 %v1894_v15 }
  0xec   : > { %839 = vperm.xlu1 %1826, %v486_v8  }
  0xed   : > { %728 = vperm.xlu0 %1843, %v2094_v13  }
  0xf0   : > { %1827 = vset.pattern.permute.xlu1 %v1893_v9 }
  0xf1   : > { %708 = vperm.xlu1 %1827, %v2063_v0   ;;  %1847 = vset.pattern.permute.xlu0 %v1894_v15 }
  0xf2   : > { %843 = vperm.xlu0 %1847, %v2054_v62  }
  0xf5   : > { %712 = vperm.xlu1 %1827, %v2073_v6  }
  0xf6   : > { %851 = vperm.xlu0 %1847, %v2073_v6  }
  0xf9   : > { %1829 = vset.pattern.permute.xlu1 %v1891_v21 }
  0xfa   : > { %790 = vperm.xlu1 %1829, %v2073_v6   ;;  %855 = vperm.xlu0 %1847, %v2088_v10  }
  0xfe   : > { %1830 = vset.pattern.permute.xlu1 %v1894_v15  ;;  %863 = vperm.xlu0 %1847, %v2120_v18  }
  0xff   : > { %847 = vperm.xlu1 %1830, %v2063_v0  }
 0x102   : > { %1849 = vset.pattern.permute.xlu0 %v1895_v19 }
 0x103   : > { %1831 = vset.pattern.permute.xlu1 %v1895_v19  ;;  %912 = vperm.xlu0 %1849, %v2073_v6  }
 0x104   : > { %900 = vperm.xlu1 %1831, %v486_v8  }
 0x107   : > { %920 = vperm.xlu0 %1849, %v2102_v14  }
 0x108   : > { %904 = vperm.xlu1 %1831, %v2054_v62  }
 0x10b   : > { %924 = vperm.xlu0 %1849, %v2120_v18  }
 0x10c   : > { %1832 = vset.pattern.permute.xlu1 %v1896_v22 }
 0x10d   : > { %965 = vperm.xlu1 %1832, %v2054_v62  }
 0x10f   : > { %1853 = vset.pattern.permute.xlu0 %v1896_v22 }
 0x110   : > { %961 = vperm.xlu0 %1853, %v486_v8  }
 0x111   : > { %1833 = vset.pattern.permute.xlu1 %v1895_v19 }
 0x112   : > { %908 = vperm.xlu1 %1833, %v2063_v0  }
 0x114   : > { %985 = vperm.xlu0 %1853, %v2120_v18  }
 0x116   : > { %1834 = vset.pattern.permute.xlu1 %v1896_v22 }
 0x117   : > { %969 = vperm.xlu1 %1834, %v2063_v0  }
 0x118   : > { %1855 = vset.pattern.permute.xlu0 %v1897_v23 }
 0x119   : > { %1022 = vperm.xlu0 %1855, %v486_v8  }
 0x11b   : > { %973 = vperm.xlu1 %1834, %v2073_v6  }
 0x11d   : > { %1042 = vperm.xlu0 %1855, %v2102_v14  }
 0x11f   : > { %1835 = vset.pattern.permute.xlu1 %v1897_v23 }
 0x120   : > { %1026 = vperm.xlu1 %1835, %v2054_v62  }
 0x121   : > { %1046 = vperm.xlu0 %1855, %v2120_v18  }
 0x124   : > { %1836 = vset.pattern.permute.xlu1 %v1892_v7 }
 0x125   : > { %1083 = vperm.xlu1 %1836, %v486_v8   ;;  %1860 = vset.pattern.permute.xlu0 %v1892_v7 }
 0x126   : > { %1107 = vperm.xlu0 %1860, %v2120_v18  }
 0x129   : > { %1838 = vset.pattern.permute.xlu1 %v1897_v23 }
 0x12a   : > { %1030 = vperm.xlu1 %1838, %v2063_v0  }
 0x12e   : > { %1034 = vperm.xlu1 %1838, %v2073_v6  }
 0x132   : > { %1840 = vset.pattern.permute.xlu1 %v1892_v7 }
 0x133   : > { %1095 = vperm.xlu1 %1840, %v2073_v6  }
 0x137   : > { %1841 = vset.pattern.permute.xlu1 %v1890_v20 }
 0x138   : > { %657 = vperm.xlu1 %1841, %v2102_v14  }
 0x139   : > { %v432_v24 = vpop.xlane.xlu0 %431 }
 0x13a   : > { %v454_v25 = vmul.f32 0.03125, %v432_v24 }
 0x13c   : > { %v462_v28 = vadd.f32 1e-05, %v454_v25  ;;  %662 = vperm.xlu1 %1841, %v2120_v18  }
 0x13d   : > { %v435_v29 = vpop.xlane.xlu1 %434  ;;  %v438_v30 = vpop.xlane.xlu0 %437 }
 0x13e   : > { %v455_v31 = vmul.f32 0.03125, %v435_v29  ;;  %v456_v32 = vmul.f32 0.03125, %v438_v30  ;;  %1866 = vrsqrt.f32 %v462_v28 }
 0x140   : > { %v463_v33 = vadd.f32 1e-05, %v455_v31  ;;  %v464_v36 = vadd.f32 1e-05, %v456_v32  ;;  %1842 = vset.pattern.permute.xlu1 %v1893_v9 }
 0x141   : > { %v441_v37 = vpop.xlane.xlu1 %440  ;;  %v444_v38 = vpop.xlane.xlu0 %443  ;;  %716 = vperm.xlu1 %1842, %v2088_v10  }
 0x142   : > { %1868 = vrsqrt.f32 %v463_v33  ;;  %v457_v20 = vmul.f32 0.03125, %v441_v37  ;;  %v458_v39 = vmul.f32 0.03125, %v444_v38 }
 0x143   : > { %1870 = vrsqrt.f32 %v464_v36 }
 0x144   : > { %v465_v40 = vadd.f32 1e-05, %v457_v20  ;;  %v466_v41 = vadd.f32 1e-05, %v458_v39 }
 0x145   : > { %v447_v42 = vpop.xlane.xlu1 %446  ;;  %v450_v43 = vpop.xlane.xlu0 %449  ;;  %1844 = vset.pattern.permute.xlu1 %v1891_v21 }
 0x146   : > { %1872 = vrsqrt.f32 %v465_v40  ;;  %v459_v46 = vmul.f32 0.03125, %v447_v42  ;;  %v460_v47 = vmul.f32 0.03125, %v450_v43  ;;  %794 = vperm.xlu1 %1844, %v2088_v10  }
 0x147   : > { %1874 = vrsqrt.f32 %v466_v41 }
 0x148   : > { %v467_v48 = vadd.f32 1e-05, %v459_v46  ;;  %v468_v49 = vadd.f32 1e-05, %v460_v47  ;;  %v1867_v51 = vpop.eup %1866 }
 0x149   : > { %v453_v50 = vpop.xlane.xlu1 %452  ;;  %v478_v57 = vmul.f32 %v1867_v51, %v2004_v26 }
 0x14a   : > { %1876 = vrsqrt.f32 %v467_v48  ;;  %v461_v52 = vmul.f32 0.03125, %v453_v50  ;;  %798 = vperm.xlu1 %1844, %v2102_v14   ;;  %v1864_v48 = vld [vmem:[%s3262_s6] sm:$0xff]  }
 0x14b   : > { %1878 = vrsqrt.f32 %v468_v49  ;;  %v1865_v49 = vld [vmem:[%s3262_s6 + $0x8] sm:$0xff]   ;;  %1795 = vmatprep.subr.bf16.mxu1 %v1864_v48 }
 0x14c   : > { %v1869_v53 = vpop.eup %1868  ;;  %v469_v56 = vadd.f32 1e-05, %v461_v52  ;;  %1796 = vmatpush3.bf16.msra.mxu1 %v1864_v48 }
 0x14d   : > { %v479_v58 = vmul.f32 %v1869_v53, %v2014_v34  ;;  %v2163_v59 = vpop.permute.xlu1 %637  ;;  %v1871_v60 = vpop.eup %1870  ;;  %1797 = vmatprep.subr.bf16.mxu1 %v1865_v49 }
 0x14e   : > { %3355 = vst [vmem:[#allocation10_spill] sm:$0xff] %v2163_v59  ;;  %1880 = vrsqrt.f32 %v469_v56  ;;  %1845 = vset.pattern.permute.xlu1 %v1894_v15  ;;  %v480_v63 = vmul.f32 %v1871_v60, %v2007_v27  ;;  %v2250_v41 = vpop.permute.xlu0 %786 }
 0x14f   : > { %v494_v61 = vpack.c.bf16 %v479_v58, %v478_v57  ;;  %859 = vperm.xlu1 %1845, %v2102_v14   ;;  %3380 = vst [vmem:[#allocation35_spill] sm:$0xff] %v2250_v41 }
 0x150   : > { %v1873_v62 = vpop.eup %1872  ;;  %1798 = vmatpush3.bf16.msra.mxu1 %v1865_v49 }
 0x151   : > { %1787 = vmatprep.mubr.msk.bf16.mxu0 %vm380_vm0, %v494_v61  ;;  %v481_v0 = vmul.f32 %v1873_v62, %v2017_v35  ;;  %v2170_v1 = vpop.permute.xlu1 %642  ;;  %v1875_v26 = vpop.eup %1874 }
 0x152   : > { %3356 = vst [vmem:[#allocation11_spill] sm:$0xff] %v2170_v1  ;;  %v482_v8 = vmul.f32 %v1875_v26, %v2026_v44  ;;  %v2254_v42 = vpop.permute.xlu0 %1087 }
 0x153   : > { %v495_v34 = vpack.c.bf16 %v481_v0, %v480_v63  ;;  %1846 = vset.pattern.permute.xlu1 %v1893_v9  ;;  %3382 = vst [vmem:[#allocation37_spill] sm:$0xff] %v2254_v42 }
 0x154   : > { %v1877_v6 = vpop.eup %1876  ;;  %724 = vperm.xlu1 %1846, %v2120_v18  }
 0x155   : > { %1788 = vmatmul.mubr.msk.bf16.vlgmr.msra.gmra.mrb[0].mxu0 %vm380_vm0, %v495_v34  ;;  %v483_v24 = vmul.f32 %v1877_v6, %v2029_v45  ;;  %v2177_v25 = vpop.permute.xlu1 %647  ;;  %v1879_v27 = vpop.eup %1878 }
 0x156   : > { %3357 = vst [vmem:[#allocation12_spill] sm:$0xff] %v2177_v25  ;;  %v484_v9 = vmul.f32 %v1879_v27, %v2038_v54  ;;  %v2258_v46 = vpop.permute.xlu0 %1091 }
 0x157   : > { %v496_v28 = vpack.c.bf16 %v483_v24, %v482_v8  ;;  %3384 = vst [vmem:[#allocation39_spill] sm:$0xff] %v2258_v46 }
 0x158   : > { %v1881_v35 = vpop.eup %1880  ;;  %1848 = vset.pattern.permute.xlu1 %v1891_v21 }
 0x159   : > { %1791 = vmatprep.mubr.msk.bf16.mxu0 %vm380_vm0, %v496_v28  ;;  %v485_v29 = vmul.f32 %v1881_v35, %v2041_v55  ;;  %802 = vperm.xlu1 %1848, %v2120_v18   ;;  %v2184_v30 = vpop.permute.xlu1 %700 }
 0x15a   : > { %3358 = vst [vmem:[#allocation13_spill] sm:$0xff] %v2184_v30 }
 0x15b   : > { %v497_v44 = vpack.c.bf16 %v485_v29, %v484_v9  ;;  %v2268_v50 = vpop.permute.xlu0 %632 }
 0x15c   : > { %3386 = vst [vmem:[#allocation41_spill] sm:$0xff] %v2268_v50 }
 0x15d   : > { %1792 = vmatmul.mubr.msk.bf16.gmra.mrb[4].mxu0 %vm380_vm0, %v497_v44  ;;  %806 = vperm.xlu1 %1848, %v2094_v13   ;;  %v2188_v45 = vpop.permute.xlu1 %704 }
 0x15e   : > { %3359 = vst [vmem:[#allocation14_spill] sm:$0xff] %v2188_v45 }
 0x15f   : > { %v2272_v52 = vpop.permute.xlu0 %652 }
 0x160   : > { %3388 = vst [vmem:[#allocation43_spill] sm:$0xff] %v2272_v52 }
 0x161   : > { %1850 = vset.pattern.permute.xlu1 %v1894_v15 }
 0x162   : > { %867 = vperm.xlu1 %1850, %v2094_v13   ;;  %v2192_v21 = vpop.permute.xlu1 %778 }
 0x163   : > { %3360 = vst [vmem:[#allocation15_spill] sm:$0xff] %v2192_v21  ;;  %v2276_v56 = vpop.permute.xlu0 %667 }
 0x164   : > { %3390 = vst [vmem:[#allocation45_spill] sm:$0xff] %v2276_v56 }
 0x166   : > { %1851 = vset.pattern.permute.xlu1 %v1895_v19  ;;  %v2196_v54 = vpop.permute.xlu1 %782 }
 0x167   : > { %916 = vperm.xlu1 %1851, %v2088_v10   ;;  %3361 = vst [vmem:[#allocation16_spill] sm:$0xff] %v2196_v54 }
 0x168   : > { %v2280_v58 = vpop.permute.xlu0 %720 }
 0x169   : > { %3392 = vst [vmem:[#allocation47_spill] sm:$0xff] %v2280_v58 }
 0x16b   : > { %1852 = vset.pattern.permute.xlu1 %v1896_v22  ;;  %v2199_v55 = vpop.permute.xlu1 %839 }
 0x16c   : > { %3362 = vst [vmem:[#allocation17_spill] sm:$0xff] %v2199_v55  ;;  %977 = vperm.xlu1 %1852, %v2088_v10   ;;  %v2284_v61 = vpop.permute.xlu0 %728 }
 0x16d   : > { %3394 = vst [vmem:[#allocation49_spill] sm:$0xff] %v2284_v61 }
 0x170   : > { %981 = vperm.xlu1 %1852, %v2102_v14   ;;  %v2203_v18 = vpop.permute.xlu1 %708 }
 0x171   : > { %3363 = vst [vmem:[#allocation18_spill] sm:$0xff] %v2203_v18  ;;  %v2288_v63 = vpop.permute.xlu0 %843 }
 0x172   : > { %3396 = vst [vmem:[#allocation51_spill] sm:$0xff] %v2288_v63 }
 0x174   : > { %1854 = vset.pattern.permute.xlu1 %v1895_v19  ;;  %v2207_v15 = vpop.permute.xlu1 %712 }
 0x175   : > { %928 = vperm.xlu1 %1854, %v2094_v13   ;;  %3364 = vst [vmem:[#allocation19_spill] sm:$0xff] %v2207_v15  ;;  %v2292_v26 = vpop.permute.xlu0 %851 }
 0x176   : > { %3398 = vst [vmem:[#allocation53_spill] sm:$0xff] %v2292_v26 }
 0x179   : > { %1856 = vset.pattern.permute.xlu1 %v1896_v22  ;;  %v2210_v31 = vpop.permute.xlu1 %790  ;;  %v2296_v6 = vpop.permute.xlu0 %855 }
 0x17a   : > { %3365 = vst [vmem:[#allocation20_spill] sm:$0xff] %v2210_v31  ;;  %989 = vperm.xlu1 %1856, %v2094_v13   ;;  %3400 = vst [vmem:[#allocation55_spill] sm:$0xff] %v2296_v6 }
 0x17d   : > { %v2300_v24 = vpop.permute.xlu0 %863 }
 0x17e   : > { %1857 = vset.pattern.permute.xlu1 %v1897_v23  ;;  %v2214_v32 = vpop.permute.xlu1 %847  ;;  %3402 = vst [vmem:[#allocation57_spill] sm:$0xff] %v2300_v24 }
 0x17f   : > { %3366 = vst [vmem:[#allocation21_spill] sm:$0xff] %v2214_v32  ;;  %1038 = vperm.xlu1 %1857, %v2088_v10  }
 0x182   : > { %v2304_v28 = vpop.permute.xlu0 %912 }
 0x183   : > { %1858 = vset.pattern.permute.xlu1 %v1892_v7  ;;  %v2218_v33 = vpop.permute.xlu1 %900  ;;  %3404 = vst [vmem:[#allocation59_spill] sm:$0xff] %v2304_v28 }
 0x184   : > { %3367 = vst [vmem:[#allocation22_spill] sm:$0xff] %v2218_v33  ;;  %1099 = vperm.xlu1 %1858, %v2088_v10  }
 0x186   : > { %v2308_v9 = vpop.permute.xlu0 %920 }
 0x187   : > { %v2222_v19 = vpop.permute.xlu1 %904  ;;  %3406 = vst [vmem:[#allocation61_spill] sm:$0xff] %v2308_v9 }
 0x188   : > { %1103 = vperm.xlu1 %1858, %v2102_v14   ;;  %3368 = vst [vmem:[#allocation23_spill] sm:$0xff] %v2222_v19 }
 0x18a   : > { %v2312_v44 = vpop.permute.xlu0 %924 }
 0x18b   : > { %3408 = vst [vmem:[#allocation63_spill] sm:$0xff] %v2312_v44 }
 0x18c   : > { %1859 = vset.pattern.permute.xlu1 %v1897_v23  ;;  %v2225_v22 = vpop.permute.xlu1 %965 }
 0x18d   : > { %3369 = vst [vmem:[#allocation24_spill] sm:$0xff] %v2225_v22  ;;  %1050 = vperm.xlu1 %1859, %v2094_v13  }
 0x18f   : > { %v2316_v49 = vpop.permute.xlu0 %961 }
 0x190   : > { %3410 = vst [vmem:[#allocation65_spill] sm:$0xff] %v2316_v49 }
 0x191   : > { %1861 = vset.pattern.permute.xlu1 %v1892_v7  ;;  %v2229_v36 = vpop.permute.xlu1 %908 }
 0x192   : > { %3370 = vst [vmem:[#allocation25_spill] sm:$0xff] %v2229_v36  ;;  %1111 = vperm.xlu1 %1861, %v2094_v13  }
 0x193   : > { %v2327_v16 = vpop.permute.xlu0 %985 }
 0x194   : > { %3412 = vst [vmem:[#allocation67_spill] sm:$0xff] %v2327_v16 }
 0x196   : > { %v2232_v37 = vpop.permute.xlu1 %969 }
 0x197   : > { %3371 = vst [vmem:[#allocation26_spill] sm:$0xff] %v2232_v37 }
 0x198   : > { %v2381_v49 = vpop.permute.xlu0 %1022 }
 0x199   : > { %3417 = vst [vmem:[#allocation72_spill] sm:$0xff] %v2381_v49 }
 0x19a   : > { %v2234_v38 = vpop.permute.xlu1 %973 }
 0x19b   : > { %3372 = vst [vmem:[#allocation27_spill] sm:$0xff] %v2234_v38 }
 0x19c   : > { %v2451_v1 = vpop.permute.xlu0 %1042 }
 0x19d   : > { %3430 = vst [vmem:[#allocation82_spill] sm:$0xff] %v2451_v1 }
 0x19f   : > { %v2236_v10 = vpop.permute.xlu1 %1026 }
 0x1a0   : > { %3373 = vst [vmem:[#allocation28_spill] sm:$0xff] %v2236_v10 }
 0x1a4   : > { %v2238_v14 = vpop.permute.xlu1 %1083 }
 0x1a5   : > { %3374 = vst [vmem:[#allocation29_spill] sm:$0xff] %v2238_v14 }
 0x1a9   : > { %v2240_v20 = vpop.permute.xlu1 %1030 }
 0x1aa   : > { %3375 = vst [vmem:[#allocation30_spill] sm:$0xff] %v2240_v20 }
 0x1ad   : > { %v2242_v23 = vpop.permute.xlu1 %1034 }
 0x1ae   : > { %3376 = vst [vmem:[#allocation31_spill] sm:$0xff] %v2242_v23 }
 0x1b2   : > { %v2244_v39 = vpop.permute.xlu1 %1095 }
 0x1b3   : > { %3377 = vst [vmem:[#allocation32_spill] sm:$0xff] %v2244_v39 }
 0x1b7   : > { %v2246_v40 = vpop.permute.xlu1 %657 }
 0x1b8   : > { %3378 = vst [vmem:[#allocation33_spill] sm:$0xff] %v2246_v40 }
 0x1bb   : > { %v2248_v7 = vpop.permute.xlu1 %662 }
 0x1bc   : > { %3379 = vst [vmem:[#allocation34_spill] sm:$0xff] %v2248_v7 }
 0x1c0   : > { %v2252_v13 = vpop.permute.xlu1 %716 }
 0x1c1   : > { %3381 = vst [vmem:[#allocation36_spill] sm:$0xff] %v2252_v13 }
 0x1c5   : > { %v2256_v43 = vpop.permute.xlu1 %794 }
 0x1c6   : > { %3383 = vst [vmem:[#allocation38_spill] sm:$0xff] %v2256_v43 }
 0x1c9   : > { %v2260_v47 = vpop.permute.xlu1 %798 }
 0x1ca   : > { %3385 = vst [vmem:[#allocation40_spill] sm:$0xff] %v2260_v47 }
 0x1ce   : > { %v2270_v51 = vpop.permute.xlu1 %859 }
 0x1cf   : > { %3387 = vst [vmem:[#allocation42_spill] sm:$0xff] %v2270_v51 }
 0x1d3   : > { %v2274_v53 = vpop.permute.xlu1 %724 }
 0x1d4   : > { %3389 = vst [vmem:[#allocation44_spill] sm:$0xff] %v2274_v53 }
 0x1d8   : > { %v2278_v57 = vpop.permute.xlu1 %802 }
 0x1d9   : > { %3391 = vst [vmem:[#allocation46_spill] sm:$0xff] %v2278_v57 }
 0x1dc   : > { %v2282_v60 = vpop.permute.xlu1 %806 }
 0x1dd   : > { %3393 = vst [vmem:[#allocation48_spill] sm:$0xff] %v2282_v60 }
 0x1e1   : > { %v2286_v62 = vpop.permute.xlu1 %867 }
 0x1e2   : > { %3395 = vst [vmem:[#allocation50_spill] sm:$0xff] %v2286_v62 }
 0x1e6   : > { %v2290_v0 = vpop.permute.xlu1 %916 }
 0x1e7   : > { %3397 = vst [vmem:[#allocation52_spill] sm:$0xff] %v2290_v0 }
 0x1eb   : > { %v2294_v34 = vpop.permute.xlu1 %977 }
 0x1ec   : > { %3399 = vst [vmem:[#allocation54_spill] sm:$0xff] %v2294_v34 }
 0x1ef   : > { %v2298_v8 = vpop.permute.xlu1 %981 }
 0x1f0   : > { %3401 = vst [vmem:[#allocation56_spill] sm:$0xff] %v2298_v8 }
 0x1f4   : > { %v2302_v27 = vpop.permute.xlu1 %928 }
 0x1f5   : > { %3403 = vst [vmem:[#allocation58_spill] sm:$0xff] %v2302_v27 }
 0x1f9   : > { %v2306_v35 = vpop.permute.xlu1 %989 }
 0x1fa   : > { %3405 = vst [vmem:[#allocation60_spill] sm:$0xff] %v2306_v35 }
 0x1fe   : > { %v2310_v29 = vpop.permute.xlu1 %1038 }
 0x1ff   : > { %3407 = vst [vmem:[#allocation62_spill] sm:$0xff] %v2310_v29 }
 0x203   : > { %v2314_v48 = vpop.permute.xlu1 %1099 }
 0x204   : > { %3409 = vst [vmem:[#allocation64_spill] sm:$0xff] %v2314_v48 }
 0x207   : > { %v2318_v11 = vpop.permute.xlu1 %1103 }
 0x208   : > { %3411 = vst [vmem:[#allocation66_spill] sm:$0xff] %v2318_v11 }
 0x20c   : > { %v2337_v46 = vpop.permute.xlu1 %1050 }
 0x20d   : > { %3413 = vst [vmem:[#allocation68_spill] sm:$0xff] %v2337_v46 }
 0x211   : > { %v2424_v48 = vpop.permute.xlu1 %1111 }
 0x212   : > { %3426 = vst [vmem:[#allocation80_spill] sm:$0xff] %v2424_v48 }
 0x228   : > { %v1789_v4 = vpop.f32.mrb[0].mxu0 }
 0x229   : > { %v2330_v2 = vadd.f32 %v1789_v4, %v2323_v5  ;;  %v567_v39 = vpop.f32.mrb[1].mxu0  ;;  %v2347_v4 = vld [vmem:[%s3260_s4 + $0x1] ss:$0 sm:$0xff] }
 0x22a   : > { %v2340_v42 = vadd.f32 %v2323_v5, %v567_v39  ;;  %v1790_v36 = vpop.f32.mrb[2].mxu0 }
 0x22b   : > { %v734_v12 = vmul.f32 %v2207_v15, %v2330_v2  ;;  %v570_v14 = vpop.f32.mrb[3].mxu0  ;;  %v2353_v10 = vmul.f32 %v2335_v3, %v2330_v2  ;;  %v2357_v22 = vadd.f32 %v1790_v36, %v2323_v5 }
 0x22c   : > { %v1060_v15 = vmul.f32 %v2337_v46, %v2340_v42  ;;  %v2365_v32 = vmul.f32 %v2188_v45, %v2340_v42  ;;  %v2373_v39 = vadd.f32 %v2323_v5, %v570_v14 }
 0x22d   : > { %3414 = vst [vmem:[#allocation69_spill] sm:$0xff] %v2353_v10  ;;  %v2370_v10 = vld [vmem:[%s3260_s4 + $0x7] ss:$0 sm:$0xff]  ;;  %v2376_v36 = vmul.f32 %v2347_v4, %v734_v12  ;;  %v614_v46 = vrot.slane %v2357_v22, 7  ;;  %v735_v19 = vmul.f32 %v2252_v13, %v2357_v22  ;;  %v2386_v63 = vmul.f32 %v2335_v3, %v2357_v22 }
 0x22e   : > { %3415 = vst [vmem:[#allocation70_spill] sm:$0xff] %v2365_v32  ;;  %v1055_v14 = vmul.f32 %v2240_v20, %v2357_v22  ;;  %v2393_v12 = vmul.f32 %v2335_v3, %v2340_v42  ;;  %v2400_v45 = vmul.f32 %v2370_v10, %v1060_v15  ;;  %v733_v55 = vmul.f32 %v2203_v18, %v2373_v39 }
 0x22f   : > { %3416 = vst [vmem:[#allocation71_spill] sm:$0xff] %v2376_v36  ;;  %3418 = vst [vmem:[#allocation73_spill] sm:$0xff] %v2386_v63  ;;  %v3419_v36 = vrot.slane %v2330_v2, 7  ;;  %v2404_v63 = vmul.f32 %v2335_v3, %v2373_v39  ;;  %v2409_v31 = vmul.f32 %v2347_v4, %v735_v19  ;;  %v1053_v25 = vmul.f32 %v2381_v49, %v2373_v39  ;;  %v2432_v49 = vld [vmem:[%s3260_s4 + $0x2] ss:$0 sm:$0xff] }
 0x230   : > { %3420 = vst [vmem:[#allocation74_spill] sm:$0xff] %v2400_v45  ;;  %v1793_v20 = vpop.f32.mrb[4].mxu0  ;;  %v2422_v18 = vmul.f32 %v2370_v10, %v1055_v14  ;;  %v3428_v14 = vrot.slane %v2340_v42, 1 }
 0x231   : > { %v626_v13 = vsel %vm621_vm1, %v3419_v36, %v614_v46  ;;  %3421 = vst [vmem:[#allocation75_spill] sm:$0xff] %v2404_v63  ;;  %3422 = vst [vmem:[#allocation76_spill] sm:$0xff] %v2409_v31  ;;  %v761_v36 = vrot.slane %v2373_v39, 1  ;;  %v583_v15 = vpop.f32.mrb[5].mxu0  ;;  %v2427_v19 = vadd.f32 %v1793_v20, %v2323_v5 }
 0x232   : > { %v2416_v45 = vmul.f32 %v2292_v26, %v626_v13  ;;  %v2419_v63 = vmul.f32 %v2232_v37, %v626_v13  ;;  %3425 = vst [vmem:[#allocation79_spill] sm:$0xff] %v2422_v18  ;;  %v1794_v32 = vpop.f32.mrb[6].mxu0  ;;  %v3427_v26 = vrot.slane %v2330_v2, 1  ;;  %v2445_v20 = vadd.f32 %v2323_v5, %v583_v15 }
 0x233   : > { %v775_v31 = vsel %vm768_vm2, %v3428_v14, %v761_v36  ;;  %v674_v18 = vmul.f32 %v2272_v52, %v626_v13  ;;  %v2463_v13 = vmul.f32 %v2370_v10, %v1053_v25  ;;  %v1058_v14 = vmul.f32 %v2451_v1, %v2427_v19 }
 0x234   : > { %3423 = vst [vmem:[#allocation77_spill] sm:$0xff] %v2416_v45  ;;  %3424 = vst [vmem:[#allocation78_spill] sm:$0xff] %v2419_v63  ;;  %v2438_v37 = vsel %vm768_vm2, %v761_v36, %v3427_v26  ;;  %v586_v63 = vpop.f32.mrb[7].mxu0  ;;  %v2449_v45 = vmul.f32 %v2347_v4, %v733_v55  ;;  %v810_v59 = vmul.f32 %v2196_v54, %v775_v31  ;;  %v2460_v36 = vld [vmem:[%s3260_s4] ss:$0 sm:$0xff]  ;;  %v617_v25 = vrot.slane %v2427_v19, 7 }
 0x235   : > { %v811_v26 = vmul.f32 %v2250_v41, %v2438_v37  ;;  %v931_v34 = vmul.f32 %v2218_v33, %v775_v31  ;;  %v2468_v55 = vld [vmem:[%s3260_s4 + $0x5] ss:$0 sm:$0xff]  ;;  %v2471_v15 = vmul.f32 %v2424_v48, %v775_v31  ;;  %v2476_v52 = vadd.f32 %v1794_v32, %v2323_v5 }
 0x236   : > { %3429 = vst [vmem:[#allocation81_spill] sm:$0xff] %v2449_v45  ;;  %v2479_v33 = vmul.f32 %v2432_v49, %v810_v59  ;;  %v2484_v41 = vmul.f32 %v2284_v61, %v2427_v19  ;;  %v607_v1 = vmul.f32 %v2335_v3, %v2445_v20  ;;  %v615_v32 = vrot.slane %v2445_v20, 7 }
 0x237   : > { %3431 = vst [vmem:[#allocation83_spill] sm:$0xff] %v2471_v15  ;;  %v2488_v31 = vmul.f32 %v2432_v49, %v811_v26  ;;  %v687_v48 = vmul.f32 %v2460_v36, %v674_v18  ;;  %v2495_v59 = vmul.f32 %v2468_v55, %v931_v34  ;;  %v2498_v15 = vmul.f32 %v2370_v10, %v1058_v14 }
 0x238   : > { %v736_v61 = vmul.f32 %v2280_v58, %v2445_v20  ;;  %v764_v54 = vrot.slane %v2445_v20, 1  ;;  %v625_v26 = vsel %vm621_vm1, %v614_v46, %v615_v32  ;;  %v618_v18 = vrot.slane %v2476_v52, 7 }
 0x239   : > { %3432 = vst [vmem:[#allocation84_spill] sm:$0xff] %v2488_v31  ;;  %3433 = vst [vmem:[#allocation85_spill] sm:$0xff] %v2498_v15  ;;  %v695_v45 = vadd.f32 %v687_v48, %v607_v1  ;;  %v1056_v31 = vmul.f32 %v2242_v23, %v2445_v20  ;;  %v3435_v14 = vrot.slane %v2357_v22, 1  ;;  %v2519_v58 = vmul.f32 %v2335_v3, %v2476_v52 }
 0x23a   : > { %v2509_v34 = vmul.f32 %v2347_v4, %v736_v61  ;;  %v2523_v1 = vmul.f32 %v2184_v30, %v2476_v52  ;;  %v2528_v61 = vmul.f32 %v2296_v6, %v625_v26  ;;  %v2531_v48 = vmul.f32 %v2234_v38, %v625_v26 }
 0x23b   : > { %v2515_v15 = vsel %vm768_vm2, %v3435_v14, %v764_v54  ;;  %3437 = vst [vmem:[#allocation88_spill] sm:$0xff] %v2519_v58  ;;  %v3439_v20 = vrot.slane %v2340_v42, 7  ;;  %v767_v30 = vrot.slane %v2476_v52, 1  ;;  %v675_v6 = vmul.f32 %v2246_v40, %v625_v26 }
 0x23c   : > { %3434 = vst [vmem:[#allocation86_spill] sm:$0xff] %v2509_v34  ;;  %3436 = vst [vmem:[#allocation87_spill] sm:$0xff] %v2515_v15  ;;  %v813_v46 = vmul.f32 %v2256_v43, %v2515_v15  ;;  %v2541_v23 = vmul.f32 %v2304_v28, %v2515_v15  ;;  %v587_v43 = vadd.f32 %v2323_v5, %v586_v63  ;;  %v3443_v40 = vrot.slane %v2427_v19, 1 }
 0x23d   : > { %3438 = vst [vmem:[#allocation89_spill] sm:$0xff] %v2528_v61  ;;  %v2537_v14 = vsel %vm621_vm1, %v618_v18, %v3439_v20  ;;  %v2548_v38 = vmul.f32 %v2370_v10, %v1056_v31  ;;  %v2554_v20 = vpop.permute.xlu0 %1046  ;;  %v622_v28 = vsel %vm621_vm1, %v617_v25, %v618_v18  ;;  %v688_v5 = vmul.f32 %v2460_v36, %v675_v6 }
 0x23e   : > { %v826_v58 = vmul.f32 %v2432_v49, %v813_v46  ;;  %v2552_v34 = vmul.f32 %v2306_v35, %v2537_v14  ;;  %3442 = vst [vmem:[#allocation92_spill] sm:$0xff] %v2554_v20  ;;  %v608_v61 = vmul.f32 %v2335_v3, %v587_v43  ;;  %v616_v15 = vrot.slane %v587_v43, 7 }
 0x23f   : > { %3440 = vst [vmem:[#allocation90_spill] sm:$0xff] %v2548_v38  ;;  %v737_v63 = vmul.f32 %v2274_v53, %v587_v43  ;;  %v765_v31 = vrot.slane %v587_v43, 1  ;;  %v1057_v46 = vmul.f32 %v2310_v29, %v587_v43  ;;  %v769_v35 = vsel %vm768_vm2, %v3443_v40, %v767_v30 }
 0x240   : > { %3441 = vst [vmem:[#allocation91_spill] sm:$0xff] %v2552_v34  ;;  %v2561_v26 = vadd.f32 %v826_v58, %v695_v45  ;;  %v696_v34 = vadd.f32 %v688_v5, %v608_v61  ;;  %v623_v18 = vsel %vm621_vm1, %v616_v15, %v617_v25  ;;  %v816_v38 = vmul.f32 %v2282_v60, %v769_v35 }
 0x241   : > { %v1059_v6 = vmul.f32 %v2554_v20, %v2476_v52  ;;  %v2575_v45 = vsel %vm768_vm2, %v764_v54, %v765_v31  ;;  %v677_v43 = vmul.f32 %v2276_v56, %v623_v18  ;;  %v876_v58 = vmul.f32 %v2300_v24, %v623_v18  ;;  %v2590_v54 = vld [vmem:[%s3260_s4 + $0x3] ss:$0 sm:$0xff] }
 0x242   : > { %v609_v40 = vmul.f32 %v2335_v3, %v2427_v19  ;;  %v814_v61 = vmul.f32 %v2260_v47, %v2575_v45  ;;  %v2584_v25 = vmul.f32 %v2370_v10, %v1057_v46  ;;  %v750_v5 = vmul.f32 %v2347_v4, %v737_v63 }
 0x243   : > { %v937_v52 = vmul.f32 %v2312_v44, %v769_v35  ;;  %v2595_v29 = vmul.f32 %v2290_v0, %v2575_v45  ;;  %v2598_v3 = vmul.f32 %v2460_v36, %v677_v43  ;;  %v2601_v24 = vmul.f32 %v2432_v49, %v816_v38 }
 0x244   : > { %v889_v46 = vmul.f32 %v2590_v54, %v876_v58  ;;  %v827_v63 = vmul.f32 %v2432_v49, %v814_v61  ;;  %v2606_v47 = vmul.f32 %v2298_v8, %v623_v18  ;;  %v2609_v53 = vmul.f32 %v2318_v11, %v769_v35 }
 0x245   : > { %v624_v0 = vsel %vm621_vm1, %v615_v32, %v616_v15  ;;  %v950_v43 = vmul.f32 %v2468_v55, %v937_v52  ;;  %v670_v44 = vmul.f32 %v2268_v50, %v622_v28  ;;  %v1072_v58 = vmul.f32 %v2370_v10, %v1059_v6 }
 0x246   : > { %v897_v56 = vadd.f32 %v889_v46, %v750_v5  ;;  %v676_v38 = vmul.f32 %v2248_v7, %v624_v0  ;;  %v2616_v60 = vadd.f32 %v827_v63, %v696_v34  ;;  %v3444_v18 = vrot.slane %v2427_v19, 1  ;;  %v2635_v63 = vpop.permute.xlu0 %1107 }
 0x247   : > { %v3445_v61 = vrot.slane %v2340_v42, 1  ;;  %v683_v5 = vmul.f32 %v2460_v36, %v670_v44  ;;  %v751_v6 = vmul.f32 %v2347_v4, %v2484_v41  ;;  %v877_v46 = vmul.f32 %v2286_v62, %v622_v28  ;;  %3446 = vst [vmem:[#allocation93_spill] sm:$0xff] %v2635_v63 }
 0x248   : > { %v770_v35 = vsel %vm768_vm2, %v765_v31, %v3444_v18  ;;  %v958_v32 = vadd.f32 %v950_v43, %v897_v56  ;;  %v689_v52 = vmul.f32 %v2460_v36, %v676_v38  ;;  %v2641_v38 = vmul.f32 %v2270_v51, %v624_v0 }
 0x249   : > { %v776_v15 = vsel %vm768_vm2, %v767_v30, %v3445_v61  ;;  %v815_v19 = vmul.f32 %v2278_v57, %v770_v35  ;;  %v691_v30 = vadd.f32 %v683_v5, %v2393_v12  ;;  %v890_v41 = vmul.f32 %v2590_v54, %v877_v46  ;;  %v2653_v5 = vld [vmem:[%s3260_s4 + $0x6] ss:$0 sm:$0xff] }
 0x24a   : > { %v809_v34 = vmul.f32 %v2192_v21, %v776_v15  ;;  %v938_v31 = vmul.f32 %v2302_v27, %v776_v15  ;;  %v1080_v18 = vadd.f32 %v1072_v58, %v958_v32  ;;  %v697_v56 = vadd.f32 %v689_v52, %v609_v40  ;;  %v3463_v27 = vld [vmem:[#allocation51_spill] sm:$0xff] }
 0x24b   : > { %v828_v43 = vmul.f32 %v2432_v49, %v815_v19  ;;  %v2645_v61 = vmul.f32 %v2308_v9, %v770_v35  ;;  %v998_v58 = vmul.f32 %v2327_v16, %v622_v28  ;;  %v1120_v12 = vmul.f32 %v2635_v63, %v776_v15  ;;  %v3460_v63 = vld [vmem:[#allocation20_spill] sm:$0xff] }
 0x24c   : > { %v822_v44 = vmul.f32 %v2432_v49, %v809_v34  ;;  %v951_v57 = vmul.f32 %v2468_v55, %v938_v31  ;;  %v898_v32 = vadd.f32 %v890_v41, %v751_v6  ;;  %v3447_v52 = vrot.slane %v2330_v2, 7  ;;  %v2670_v6 = vld [vmem:[%s3260_s4 + $0x8] ss:$0 sm:$0xff]  ;;  %v3451_v31 = vld [vmem:[#allocation54_spill] sm:$0xff] }
 0x24d   : > { %v836_v40 = vadd.f32 %v828_v43, %v697_v56  ;;  %v3448_v34 = vrot.slane %v2373_v39, 7  ;;  %v3450_v28 = vrot.slane %v2340_v42, 7  ;;  %v1011_v56 = vmul.f32 %v2653_v5, %v998_v58  ;;  %v3453_v41 = vld [vmem:[#allocation11_spill] sm:$0xff]  ;;  %v3454_v42 = vld [vmem:[#allocation64_spill] sm:$0xff] }
 0x24e   : > { %v830_v8 = vadd.f32 %v822_v44, %v691_v30  ;;  %v2673_v30 = vmul.f32 %v3451_v31, %v624_v0  ;;  %v3452_v44 = vld [vmem:[#allocation10_spill] sm:$0xff]  ;;  %v744_v0 = vmul.f32 %v2347_v4, %v2523_v1  ;;  %v3456_v58 = vrot.slane %v2357_v22, 1  ;;  %v3462_v22 = vld [vmem:[#allocation75_spill] sm:$0xff] }
 0x24f   : > { %v627_v19 = vsel %vm621_vm1, %v3448_v34, %v3447_v52  ;;  %v3449_v46 = vmov %v3448_v34  ;;  %v671_v43 = vmul.f32 %v3452_v44, %v2537_v14  ;;  %v959_v52 = vadd.f32 %v951_v57, %v898_v32  ;;  %v3458_v32 = vld [vmem:[#allocation74_spill] sm:$0xff] }
 0x250   : > { %v628_v15 = vsel %vm621_vm1, %v3450_v28, %v3449_v46  ;;  %v2680_v34 = vmul.f32 %v3454_v42, %v770_v35  ;;  %v1133_v46 = vmul.f32 %v2670_v6, %v1120_v12  ;;  %v3455_v28 = vld [vmem:[#allocation12_spill] sm:$0xff]  ;;  %v1019_v51 = vadd.f32 %v1011_v56, %v836_v40  ;;  %v3459_v42 = vld [vmem:[#allocation70_spill] sm:$0xff]  ;;  %v3461_v56 = vld [vmem:[#allocation17_spill] sm:$0xff] }
 0x251   : > { %v672_v39 = vmul.f32 %v3453_v41, %v628_v15  ;;  %v673_v9 = vmul.f32 %v3455_v28, %v627_v19  ;;  %v684_v7 = vmul.f32 %v2460_v36, %v671_v43  ;;  %v3457_v31 = vrot.slane %v2330_v2, 1 }
 0x252   : > { %v2694_v35 = vadd.f32 %v3458_v32, %v959_v52  ;;  %v745_v12 = vmul.f32 %v2347_v4, %v3459_v42  ;;  %v870_v43 = vmul.f32 %v3461_v56, %v2537_v14  ;;  %v1141_v11 = vadd.f32 %v1133_v46, %v1019_v51  ;;  %v3465_v4 = vld [vmem:[#allocation23_spill] sm:$0xff]  ;;  %v3467_v56 = vld [vmem:[#allocation24_spill] sm:$0xff] }
 0x253   : > { %v773_v57 = vsel %vm768_vm2, %v3457_v31, %v3456_v58  ;;  %v685_v1 = vmul.f32 %v2460_v36, %v672_v39  ;;  %v692_v16 = vadd.f32 %v684_v7, %v3462_v22  ;;  %v871_v62 = vmul.f32 %v3463_v27, %v628_v15  ;;  %v3464_v58 = vld [vmem:[#allocation21_spill] sm:$0xff] }
 0x254   : > { %v812_v40 = vmul.f32 %v3460_v63, %v773_v57  ;;  %v686_v31 = vmul.f32 %v2460_v36, %v673_v9  ;;  %v872_v52 = vmul.f32 %v3464_v58, %v627_v19  ;;  %v883_v32 = vmul.f32 %v2590_v54, %v870_v43  ;;  %v3466_v39 = vld [vmem:[#allocation65_spill] sm:$0xff]  ;;  %v3468_v36 = vld [vmem:[#allocation28_spill] sm:$0xff] }
 0x255   : > { %v932_v42 = vmul.f32 %v3465_v4, %v2438_v37  ;;  %v2709_v21 = vadd.f32 %v1141_v11, %v1080_v18  ;;  %v831_v14 = vadd.f32 %v2479_v33, %v692_v16  ;;  %v884_v51 = vmul.f32 %v2590_v54, %v871_v62  ;;  %v3469_v18 = vld [vmem:[#allocation29_spill] sm:$0xff] }
 0x256   : > { %v992_v46 = vmul.f32 %v3466_v39, %v628_v15  ;;  %v825_v7 = vmul.f32 %v2432_v49, %v812_v40  ;;  %v891_v22 = vadd.f32 %v883_v32, %v744_v0  ;;  %v993_v9 = vmul.f32 %v3467_v56, %v627_v19  ;;  %v3470_v33 = vld [vmem:[#allocation25_spill] sm:$0xff] }
 0x257   : > { %v1054_v44 = vmul.f32 %v3468_v36, %v2330_v2  ;;  %v892_v43 = vadd.f32 %v884_v51, %v745_v12  ;;  %v945_v50 = vmul.f32 %v2468_v55, %v932_v42  ;;  %v1114_v16 = vmul.f32 %v3469_v18, %v2438_v37  ;;  %v3471_v0 = vld [vmem:[#allocation37_spill] sm:$0xff] }
 0x258   : > { %v1005_v11 = vmul.f32 %v2653_v5, %v992_v46  ;;  %v933_v62 = vmul.f32 %v3470_v33, %v773_v57  ;;  %v952_v15 = vadd.f32 %v2495_v59, %v891_v22  ;;  %v1006_v49 = vmul.f32 %v2653_v5, %v993_v9  ;;  %v3472_v37 = vld [vmem:[#allocation69_spill] sm:$0xff] }
 0x259   : > { %v1115_v40 = vmul.f32 %v3471_v0, %v773_v57  ;;  %v953_v19 = vadd.f32 %v945_v50, %v892_v43  ;;  %v1067_v2 = vmul.f32 %v2370_v10, %v1054_v44  ;;  %v1127_v12 = vmul.f32 %v2670_v6, %v1114_v16  ;;  %v3473_v59 = vld [vmem:[#allocation73_spill] sm:$0xff]  ;;  %v3474_v50 = vld [vmem:[#allocation84_spill] sm:$0xff] }
 0x25a   : > { %v1013_v32 = vadd.f32 %v1005_v11, %v830_v8  ;;  %v1014_v42 = vadd.f32 %v1006_v49, %v831_v14  ;;  %v1074_v51 = vadd.f32 %v2463_v13, %v952_v15  ;;  %v693_v20 = vadd.f32 %v685_v1, %v3472_v37  ;;  %v3475_v43 = vld [vmem:[#allocation77_spill] sm:$0xff]  ;;  %v3477_v15 = vld [vmem:[#allocation71_spill] sm:$0xff]  ;;  %v3478_v49 = vld [vmem:[#allocation78_spill] sm:$0xff] }
 0x25b   : > { %v1128_v46 = vmul.f32 %v2670_v6, %v1115_v40  ;;  %v1075_v18 = vadd.f32 %v1067_v2, %v953_v19  ;;  %v694_v22 = vadd.f32 %v686_v31, %v3473_v59  ;;  %v885_v9 = vmul.f32 %v2590_v54, %v872_v52  ;;  %v3476_v11 = vld [vmem:[#allocation81_spill] sm:$0xff]  ;;  %v2743_v31 = vld [vmem:[%s3261_s5] ss:$0 sm:$0xff]  ;;  %v3479_v19 = vld [vmem:[#allocation87_spill] sm:$0xff] }
 0x25c   : > { %v1135_v56 = vadd.f32 %v1127_v12, %v1013_v32  ;;  %v832_v8 = vadd.f32 %v3474_v50, %v693_v20  ;;  %v886_v10 = vmul.f32 %v2590_v54, %v3475_v43  ;;  %v946_v44 = vmul.f32 %v2468_v55, %v933_v62  ;;  %v3480_v32 = vld [vmem:[#allocation39_spill] sm:$0xff]  ;;  %v3481_v2 = vld [vmem:[#allocation32_spill] sm:$0xff]  ;;  %v3483_v50 = vld [vmem:[#allocation90_spill] sm:$0xff] }
 0x25d   : > { %v1136_v57 = vadd.f32 %v1128_v46, %v1014_v42  ;;  %v833_v13 = vadd.f32 %v825_v7, %v694_v22  ;;  %v893_v16 = vadd.f32 %v885_v9, %v3476_v11  ;;  %v947_v1 = vmul.f32 %v2468_v55, %v2541_v23  ;;  %v3482_v59 = vld [vmem:[#allocation79_spill] sm:$0xff] }
 0x25e   : > { %v1143_v14 = vadd.f32 %v1135_v56, %v1074_v51  ;;  %v894_v20 = vadd.f32 %v886_v10, %v3477_v15  ;;  %v1007_v40 = vmul.f32 %v2653_v5, %v3478_v49  ;;  %v1008_v56 = vmul.f32 %v2653_v5, %v2531_v48  ;;  %v3484_v10 = vld [vmem:[#allocation89_spill] sm:$0xff]  ;;  %v3486_v15 = vld [vmem:[#allocation86_spill] sm:$0xff] }
 0x25f   : > { %v1144_v52 = vadd.f32 %v1136_v57, %v1075_v18  ;;  %v954_v62 = vadd.f32 %v946_v44, %v893_v16  ;;  %v1116_v23 = vmul.f32 %v3480_v32, %v3479_v19  ;;  %v1117_v12 = vmul.f32 %v3481_v2, %v2575_v45 }
 0x260   : > { %v1158_v7 = vadd.f32 %v2743_v31, %v1143_v14  ;;  %v955_v18 = vadd.f32 %v947_v1, %v894_v20  ;;  %v1015_v51 = vadd.f32 %v1007_v40, %v832_v8  ;;  %v1016_v46 = vadd.f32 %v1008_v56, %v833_v13  ;;  %v3485_v1 = vld [vmem:[#allocation76_spill] sm:$0xff] }
 0x261   : > { %v1159_v42 = vadd.f32 %v2743_v31, %v1144_v52  ;;  %v1076_v22 = vadd.f32 %v3482_v59, %v954_v62  ;;  %v1129_v9 = vmul.f32 %v2670_v6, %v1116_v23  ;;  %v1130_v48 = vmul.f32 %v2670_v6, %v1117_v12  ;;  %v3487_v23 = vld [vmem:[#allocation88_spill] sm:$0xff]  ;;  %v3488_v12 = vld [vmem:[#allocation85_spill] sm:$0xff] }
 0x262   : > { %v1166_v37 = vmax.f32 %v1158_v7, 0.0  ;;  %v1077_v43 = vadd.f32 %v3483_v50, %v955_v18  ;;  %v887_v44 = vmul.f32 %v2590_v54, %v3484_v10  ;;  %v888_v45 = vmul.f32 %v2590_v54, %v2641_v38 }
 0x263   : > { %v1167_v57 = vmax.f32 %v1159_v42, 0.0  ;;  %v1137_v14 = vadd.f32 %v1129_v9, %v1015_v51  ;;  %v1138_v11 = vadd.f32 %v1130_v48, %v1016_v46  ;;  %v948_v8 = vmul.f32 %v2468_v55, %v2595_v29  ;;  %v3489_v51 = vld [vmem:[#allocation91_spill] sm:$0xff] }
 0x264   : > { %v949_v13 = vmul.f32 %v2468_v55, %v2645_v61  ;;  %v895_v52 = vadd.f32 %v887_v44, %v3485_v1  ;;  %v896_v20 = vadd.f32 %v888_v45, %v3486_v15  ;;  %v1009_v49 = vmul.f32 %v2653_v5, %v2673_v30  ;;  %v3490_v9 = vld [vmem:[#allocation83_spill] sm:$0xff]  ;;  %v2815_v1 = vld [vmem:[%s3264_s8 + $0x1] ss:$0 sm:$0xff] }
 0x265   : > { %v1174_v16 = vpack.c.bf16 %v1167_v57, %v1166_v37  ;;  %v1145_v40 = vadd.f32 %v1137_v14, %v1076_v22  ;;  %v1146_v56 = vadd.f32 %v1138_v11, %v1077_v43  ;;  %v1010_v54 = vmul.f32 %v2653_v5, %v2606_v47 }
 0x266   : > { %v1131_v38 = vmul.f32 %v2670_v6, %v2680_v34  ;;  %v956_v29 = vadd.f32 %v948_v8, %v895_v52  ;;  %v957_v55 = vadd.f32 %v949_v13, %v896_v20  ;;  %v1017_v61 = vadd.f32 %v1009_v49, %v2561_v26 }
 0x267   : > { %1799 = vmatprep.mubr.msk.bf16.mxu1 %vm380_vm0, %v1174_v16  ;;  %v1132_v7 = vmul.f32 %v2670_v6, %v2609_v53  ;;  %v1160_v62 = vadd.f32 %v2743_v31, %v1145_v40  ;;  %v1161_v30 = vadd.f32 %v2743_v31, %v1146_v56  ;;  %v1018_v19 = vadd.f32 %v1010_v54, %v2616_v60  ;;  %v3491_v40 = vld [vmem:[#allocation19_spill] sm:$0xff]  ;;  %v2827_v54 = vld [vmem:[%s3264_s8 + $0x7] ss:$0 sm:$0xff] }
 0x268   : > { %v698_v47 = vadd.f32 %v2598_v3, %v3487_v23  ;;  %v1078_v34 = vadd.f32 %v2584_v25, %v956_v29  ;;  %v1079_v42 = vadd.f32 %v3488_v12, %v957_v55  ;;  %v1139_v18 = vadd.f32 %v1131_v38, %v1017_v61  ;;  %v3493_v23 = vld [vmem:[#allocation68_spill] sm:$0xff] }
 0x269   : > { %v1012_v26 = vmul.f32 %v2653_v5, %v3489_v51  ;;  %v1168_v46 = vmax.f32 %v1160_v62, 0.0  ;;  %v1169_v37 = vmax.f32 %v1161_v30, 0.0  ;;  %v1140_v53 = vadd.f32 %v1132_v7, %v1018_v19  ;;  %v3492_v7 = vld [vmem:[#allocation14_spill] sm:$0xff] }
 0x26a   : > { %v837_v59 = vadd.f32 %v2601_v24, %v698_v47  ;;  %v1147_v22 = vadd.f32 %v1139_v18, %v1078_v34  ;;  %v1134_v60 = vmul.f32 %v2670_v6, %v3490_v9  ;;  %v1164_v50 = vadd.f32 %v2743_v31, %v2709_v21  ;;  %v2804_v21 = vld [vmem:[%s3263_s7] ss:$0 sm:$0xff] }
 0x26b   : > { %v1175_v48 = vpack.c.bf16 %v1169_v37, %v1168_v46  ;;  %v1148_v57 = vadd.f32 %v1140_v53, %v1079_v42  ;;  %v3494_v37 = vld [vmem:[#allocation36_spill] sm:$0xff] }
 0x26c   : > { %v1020_v3 = vadd.f32 %v1012_v26, %v837_v59  ;;  %v1162_v25 = vadd.f32 %v2743_v31, %v1147_v22  ;;  %v1172_v45 = vmax.f32 %v1164_v50, 0.0  ;;  %v3495_v22 = vld [vmem:[#allocation30_spill] sm:$0xff] }
 0x26d   : > { %1800 = vmatmul.mubr.msk.bf16.vlgmr.msra.gmra.mrb[0].mxu1 %vm380_vm0, %v1175_v48  ;;  %v1163_v5 = vadd.f32 %v2743_v31, %v1148_v57  ;;  %v2882_v50 = vld [vmem:[%s3264_s8 + $0x6] ss:$0 sm:$0xff] }
 0x26e   : > { %v1142_v43 = vadd.f32 %v1134_v60, %v1020_v3  ;;  %v1170_v10 = vmax.f32 %v1162_v25, 0.0  ;;  %v2877_v25 = vld [vmem:[%s3264_s8 + $0x3] ss:$0 sm:$0xff] }
 0x26f   : > { %v1171_v44 = vmax.f32 %v1163_v5, 0.0  ;;  %v3496_v5 = vld [vmem:[#allocation18_spill] sm:$0xff] }
 0x270   : > { %v1150_v24 = vadd.f32 %v1142_v43, %v2694_v35  ;;  %v2809_v35 = vld [vmem:[%s3264_s8 + $0x4] ss:$0 sm:$0xff] }
 0x271   : > { %v1176_v14 = vpack.c.bf16 %v1171_v44, %v1170_v10 }
 0x272   : > { %v1165_v6 = vadd.f32 %v2743_v31, %v1150_v24  ;;  %v2892_v24 = vld [vmem:[%s3264_s8 + $0x2] ss:$0 sm:$0xff] }
 0x273   : > { %1803 = vmatprep.mubr.msk.bf16.mxu1 %vm380_vm0, %v1176_v14 }
 0x274   : > { %v1173_v11 = vmax.f32 %v1165_v6, 0.0  ;;  %v3498_v6 = vld [vmem:[#allocation26_spill] sm:$0xff] }
 0x276   : > { %v1177_v8 = vpack.c.bf16 %v1173_v11, %v1172_v45  ;;  %v3497_v45 = vld [vmem:[#allocation53_spill] sm:$0xff] }
 0x278   : > { %1804 = vmatmul.mubr.msk.bf16.gmra.mrb[4].mxu1 %vm380_vm0, %v1177_v8 }
 0x340   : > { %v1801_v13 = vpop.f32.mrb[0].mxu1 }
 0x341   : > { %v1256_v16 = vadd.f32 %v1801_v13, %v2804_v21  ;;  %v1247_v31 = vpop.f32.mrb[1].mxu1  ;;  %v2902_v13 = vld [vmem:[%s3264_s8 + $0x8] ss:$0 sm:$0xff] }
 0x342   : > { %v2818_v52 = vadd.f32 %v2804_v21, %v1247_v31  ;;  %v1802_v15 = vpop.f32.mrb[2].mxu1 }
 0x343   : > { %v2821_v20 = vmul.f32 %v2809_v35, %v1256_v16  ;;  %v1293_v49 = vrot.slane %v1256_v16, 7  ;;  %v1339_v56 = vmul.f32 %v1256_v16, %v3491_v40  ;;  %v1250_v38 = vpop.f32.mrb[3].mxu1  ;;  %v1367_v29 = vrot.slane %v1256_v16, 1 }
 0x344   : > { %v1498_v55 = vmul.f32 %v1256_v16, %v3468_v36  ;;  %v2832_v61 = vmul.f32 %v2809_v35, %v2818_v52  ;;  %v1337_v62 = vmul.f32 %v2818_v52, %v3492_v7  ;;  %v3341_v19 = vrot.slane %v2818_v52, 7 }
 0x345   : > { %v2837_v30 = vmul.f32 %v2815_v1, %v1339_v56  ;;  %v1504_v47 = vmul.f32 %v2818_v52, %v3493_v23  ;;  %v2843_v34 = vadd.f32 %v1802_v15, %v2804_v21  ;;  %v3340_v42 = vrot.slane %v2818_v52, 1 }
 0x346   : > { %v2846_v36 = vmul.f32 %v2827_v54, %v1498_v55  ;;  %v1350_v12 = vmul.f32 %v2815_v1, %v1337_v62  ;;  %v1251_v18 = vadd.f32 %v2804_v21, %v1250_v38  ;;  %v2912_v38 = vld [vmem:[%s3264_s8] ss:$0 sm:$0xff] }
 0x347   : > { %v2852_v51 = vmul.f32 %v2827_v54, %v1504_v47  ;;  %v1286_v26 = vmul.f32 %v2809_v35, %v2843_v34  ;;  %v1294_v46 = vrot.slane %v2843_v34, 7  ;;  %v1340_v53 = vmul.f32 %v2843_v34, %v3494_v37 }
 0x348   : > { %v3342_v59 = vrot.slane %v2843_v34, 1  ;;  %v1499_v9 = vmul.f32 %v2843_v34, %v3495_v22  ;;  %v2863_v60 = vmul.f32 %v2809_v35, %v1251_v18  ;;  %v1292_v48 = vrot.slane %v1251_v18, 7 }
 0x349   : > { %v2869_v57 = vsel %vm621_vm1, %v1293_v49, %v1294_v46  ;;  %v2872_v3 = vmul.f32 %v2815_v1, %v1340_v53  ;;  %v1338_v43 = vmul.f32 %v1251_v18, %v3496_v5  ;;  %v1366_v10 = vrot.slane %v1251_v18, 1 }
 0x34a   : > { %v1377_v44 = vsel %vm768_vm2, %v1367_v29, %v3342_v59  ;;  %v1413_v14 = vmul.f32 %v2869_v57, %v3497_v45  ;;  %v1470_v11 = vmul.f32 %v2869_v57, %v3498_v6  ;;  %v1512_v8 = vmul.f32 %v2827_v54, %v1499_v9  ;;  %v3500_v45 = vld [vmem:[#allocation35_spill] sm:$0xff]  ;;  %v2948_v6 = vld [vmem:[%s3264_s8 + $0x5] ss:$0 sm:$0xff] }
 0x34b   : > { %v1805_v16 = vpop.f32.mrb[4].mxu1  ;;  %v1384_v31 = vmul.f32 %v1377_v44, %v3460_v63  ;;  %v1441_v15 = vmul.f32 %v1377_v44, %v3470_v33  ;;  %v1527_v40 = vmul.f32 %v1377_v44, %v3471_v0  ;;  %v1304_v56 = vsel %vm621_vm1, %v1292_v48, %v1293_v49  ;;  %v3499_v44 = vld [vmem:[#allocation16_spill] sm:$0xff] }
 0x34c   : > { %v1263_v55 = vpop.f32.mrb[5].mxu1  ;;  %v1426_v7 = vmul.f32 %v2877_v25, %v1413_v14  ;;  %v2916_v62 = vmul.f32 %v2882_v50, %v1470_v11  ;;  %v1305_v63 = vsel %vm621_vm1, %v3341_v19, %v1292_v48  ;;  %v1310_v33 = vmul.f32 %v1304_v56, %v3455_v28  ;;  %v3503_v19 = vld [vmem:[#allocation72_spill] sm:$0xff] }
 0x34d   : > { %v2923_v0 = vpop.f32.mrb[6].mxu1  ;;  %v1397_v49 = vmul.f32 %v2892_v24, %v1384_v31  ;;  %v2927_v23 = vmul.f32 %v2902_v13, %v1527_v40  ;;  %v1309_v47 = vmul.f32 %v1305_v63, %v3453_v41  ;;  %v1351_v37 = vmul.f32 %v2815_v1, %v1338_v43  ;;  %v3501_v31 = vld [vmem:[#allocation22_spill] sm:$0xff] }
 0x34e   : > { %v2931_v53 = vpop.f32.mrb[7].mxu1  ;;  %v1323_v22 = vmul.f32 %v2912_v38, %v1310_v33  ;;  %v1378_v9 = vsel %vm768_vm2, %v1366_v10, %v1367_v29  ;;  %v1379_v28 = vsel %vm768_vm2, %v3340_v42, %v1366_v10  ;;  %v1411_v48 = vmul.f32 %v1305_v63, %v3463_v27  ;;  %v3502_v42 = vld [vmem:[#allocation24_spill] sm:$0xff] }
 0x34f   : > { %v1322_v5 = vmul.f32 %v2912_v38, %v1309_v47  ;;  %v1382_v41 = vmul.f32 %v1379_v28, %v3499_v44  ;;  %v1383_v43 = vmul.f32 %v1378_v9, %v3500_v45  ;;  %v1412_v14 = vmul.f32 %v1304_v56, %v3464_v58 }
 0x350   : > { %v1331_v29 = vadd.f32 %v1323_v22, %v1286_v26  ;;  %v1424_v11 = vmul.f32 %v2877_v25, %v1411_v48  ;;  %v1439_v10 = vmul.f32 %v1379_v28, %v3501_v31  ;;  %v1440_v27 = vmul.f32 %v1378_v9, %v3465_v4 }
 0x351   : > { %v1330_v40 = vadd.f32 %v1322_v5, %v2821_v20  ;;  %v2955_v33 = vmul.f32 %v2892_v24, %v1382_v41  ;;  %v1396_v47 = vmul.f32 %v2892_v24, %v1383_v43  ;;  %v1425_v58 = vmul.f32 %v2877_v25, %v1412_v14  ;;  %v3504_v43 = vld [vmem:[#allocation29_spill] sm:$0xff]  ;;  %v3505_v14 = vld [vmem:[#allocation80_spill] sm:$0xff] }
 0x352   : > { %v1432_v44 = vadd.f32 %v1424_v11, %v1350_v12  ;;  %v1453_v45 = vmul.f32 %v2948_v6, %v1440_v27  ;;  %v1454_v26 = vmul.f32 %v2948_v6, %v1441_v15  ;;  %v1468_v22 = vmul.f32 %v1305_v63, %v3466_v39 }
 0x353   : > { %v1404_v48 = vadd.f32 %v1396_v47, %v1330_v40  ;;  %v1433_v31 = vadd.f32 %v1425_v58, %v1351_v37  ;;  %v1469_v4 = vmul.f32 %v1304_v56, %v3502_v42  ;;  %v1497_v20 = vmul.f32 %v1251_v18, %v3503_v19  ;;  %v3509_v58 = vld [vmem:[#allocation43_spill] sm:$0xff] }
 0x354   : > { %v1461_v5 = vadd.f32 %v1453_v45, %v1432_v44  ;;  %v2965_v41 = vmul.f32 %v2882_v50, %v1468_v22  ;;  %v1526_v59 = vmul.f32 %v1378_v9, %v3504_v43  ;;  %v1533_v12 = vmul.f32 %v1379_v28, %v3505_v14  ;;  %v3507_v9 = vld [vmem:[#allocation49_spill] sm:$0xff]  ;;  %v3510_v45 = vld [vmem:[#allocation47_spill] sm:$0xff] }
 0x355   : > { %v1462_v11 = vadd.f32 %v1454_v26, %v1433_v31  ;;  %v2970_v27 = vmul.f32 %v2882_v50, %v1469_v4  ;;  %v2973_v39 = vmul.f32 %v2827_v54, %v1497_v20  ;;  %v2976_v15 = vadd.f32 %v1805_v16, %v2804_v21 }
 0x356   : > { %v2979_v19 = vadd.f32 %v2846_v36, %v1461_v5  ;;  %v2982_v42 = vmul.f32 %v2902_v13, %v1526_v59  ;;  %v2985_v18 = vmul.f32 %v2902_v13, %v1533_v12  ;;  %v2988_v56 = vadd.f32 %v2804_v21, %v1263_v55  ;;  %v3508_v59 = vld [vmem:[#allocation82_spill] sm:$0xff] }
 0x357   : > { %v1520_v63 = vadd.f32 %v1512_v8, %v1462_v11  ;;  %v2992_v37 = vmul.f32 %v2809_v35, %v2976_v15  ;;  %v3346_v16 = vrot.slane %v2976_v15, 7  ;;  %v1343_v36 = vmul.f32 %v2976_v15, %v3507_v9  ;;  %v3512_v11 = vld [vmem:[#allocation55_spill] sm:$0xff] }
 0x358   : > { %3506 = vst [vmem:[#allocation11_spill] sm:$0xff] %v2985_v18  ;;  %v3344_v28 = vrot.slane %v2976_v15, 1  ;;  %v1502_v40 = vmul.f32 %v2976_v15, %v3508_v59  ;;  %v1287_v47 = vmul.f32 %v2809_v35, %v2988_v56  ;;  %v3345_v55 = vrot.slane %v2988_v56, 7  ;;  %v3533_v18 = vld [vmem:[#allocation60_spill] sm:$0xff] }
 0x359   : > { %v3004_v8 = vmul.f32 %v2815_v1, %v1343_v36  ;;  %v1311_v44 = vmul.f32 %v2869_v57, %v3509_v58  ;;  %v1341_v26 = vmul.f32 %v2988_v56, %v3510_v45  ;;  %v3343_v22 = vrot.slane %v2988_v56, 1 }
 0x35a   : > { %v3012_v31 = vmul.f32 %v2827_v54, %v1502_v40  ;;  %v3020_v4 = vsel %vm621_vm1, %v1294_v46, %v3345_v55  ;;  %v1405_v20 = vadd.f32 %v1397_v49, %v1331_v29  ;;  %v1434_v5 = vadd.f32 %v1426_v7, %v2837_v30  ;;  %v3513_v46 = vld [vmem:[#allocation38_spill] sm:$0xff]  ;;  %v3514_v49 = vld [vmem:[#allocation59_spill] sm:$0xff] }
 0x35b   : > { %v1324_v57 = vmul.f32 %v2912_v38, %v1311_v44  ;;  %v3025_v43 = vmul.f32 %v2815_v1, %v1341_v26  ;;  %v3511_v14 = vrot.slane %v2843_v34, 1  ;;  %v1414_v9 = vmul.f32 %v3020_v4, %v3512_v11  ;;  %v3515_v30 = vld [vmem:[#allocation27_spill] sm:$0xff] }
 0x35c   : > { %v1471_v7 = vmul.f32 %v3020_v4, %v3515_v30  ;;  %v1491_v59 = vadd.f32 %v2916_v62, %v1404_v48  ;;  %v3516_v34 = vld [vmem:[#allocation31_spill] sm:$0xff] }
 0x35d   : > { %v1376_v12 = vsel %vm768_vm2, %v3511_v14, %v3343_v22  ;;  %v1332_v40 = vadd.f32 %v1324_v57, %v1287_v47  ;;  %v3041_v58 = vmul.f32 %v2877_v25, %v1414_v9  ;;  %v1500_v44 = vmul.f32 %v2988_v56, %v3516_v34  ;;  %v3528_v22 = vld [vmem:[#allocation50_spill] sm:$0xff]  ;;  %v3529_v55 = vld [vmem:[#allocation63_spill] sm:$0xff] }
 0x35e   : > { %v1385_v36 = vmul.f32 %v1376_v12, %v3513_v46  ;;  %v1442_v29 = vmul.f32 %v1376_v12, %v3514_v49  ;;  %v1528_v45 = vmul.f32 %v1376_v12, %v3480_v32  ;;  %v1484_v11 = vmul.f32 %v2882_v50, %v1471_v7 }
 0x35f   : > { %v1275_v46 = vadd.f32 %v2923_v0, %v2804_v21  ;;  %v1513_v62 = vmul.f32 %v2827_v54, %v1500_v44  ;;  %v1452_v47 = vmul.f32 %v2948_v6, %v1439_v10  ;;  %v3056_v57 = vadd.f32 %v2804_v21, %v2931_v53  ;;  %v3071_v21 = vld [vmem:[%s3265_s9] ss:$0 sm:$0xff]  ;;  %v3520_v53 = vld [vmem:[#allocation92_spill] sm:$0xff] }
 0x360   : > { %v1398_v26 = vmul.f32 %v2892_v24, %v1385_v36  ;;  %v1455_v14 = vmul.f32 %v2948_v6, %v1442_v29  ;;  %v1541_v48 = vmul.f32 %v2902_v13, %v1528_v45  ;;  %v3060_v9 = vadd.f32 %v1484_v11, %v1405_v20  ;;  %v3518_v29 = vld [vmem:[#allocation13_spill] sm:$0xff] }
 0x361   : > { %v3063_v36 = vmul.f32 %v2809_v35, %v1275_v46  ;;  %v1298_v0 = vrot.slane %v1275_v46, 7  ;;  %v1336_v30 = vmul.f32 %v1275_v46, %v3518_v29  ;;  %v1372_v7 = vrot.slane %v1275_v46, 1  ;;  %v3526_v29 = vld [vmem:[#allocation48_spill] sm:$0xff] }
 0x362   : > { %v3058_v32 = vadd.f32 %v1398_v26, %v1332_v40  ;;  %v1463_v12 = vadd.f32 %v1455_v14, %v1434_v5  ;;  %3517 = vst [vmem:[#allocation12_spill] sm:$0xff] %v3060_v9  ;;  %v1549_v49 = vadd.f32 %v1541_v48, %v1491_v59  ;;  %v1503_v10 = vmul.f32 %v1275_v46, %v3520_v53  ;;  %v3522_v14 = vld [vmem:[#allocation41_spill] sm:$0xff]  ;;  %v3523_v46 = vld [vmem:[#allocation10_spill] sm:$0xff]  ;;  %v3532_v9 = vld [vmem:[#allocation67_spill] sm:$0xff] }
 0x363   : > { %v3076_v20 = vmul.f32 %v2809_v35, %v3056_v57  ;;  %v1296_v5 = vrot.slane %v3056_v57, 7  ;;  %v1299_v40 = vsel %vm621_vm1, %v3346_v16, %v1298_v0  ;;  %v3521_v44 = vrot.slane %v2818_v52, 7  ;;  %v3527_v53 = vld [vmem:[#allocation17_spill] sm:$0xff] }
 0x364   : > { %v3066_v34 = vadd.f32 %v1513_v62, %v1463_v12  ;;  %v1557_v59 = vadd.f32 %v1549_v49, %v1520_v63  ;;  %v1349_v26 = vmul.f32 %v2815_v1, %v1336_v30  ;;  %v1307_v11 = vmul.f32 %v1299_v40, %v3522_v14  ;;  %v3525_v49 = vld [vmem:[#allocation15_spill] sm:$0xff] }
 0x365   : > { %v1306_v45 = vsel %vm621_vm1, %v1298_v0, %v3521_v44  ;;  %v1373_v63 = vsel %vm768_vm2, %v3344_v28, %v1372_v7  ;;  %v3524_v62 = vrot.slane %v2818_v52, 1  ;;  %v1417_v28 = vmul.f32 %v1299_v40, %v3528_v22  ;;  %v3531_v22 = vld [vmem:[#allocation3_spill] sm:$0xff] }
 0x366   : > { %3519 = vst [vmem:[#allocation74_spill] sm:$0xff] %v3066_v34  ;;  %v1308_v35 = vmul.f32 %v1306_v45, %v3523_v46  ;;  %v1572_v12 = vadd.f32 %v3071_v21, %v1557_v59  ;;  %v1388_v30 = vmul.f32 %v1373_v63, %v3526_v29  ;;  %v1410_v44 = vmul.f32 %v1306_v45, %v3527_v53 }
 0x367   : > { %v1380_v48 = vsel %vm768_vm2, %v1372_v7, %v3524_v62  ;;  %v1320_v14 = vmul.f32 %v2912_v38, %v1307_v11  ;;  %v3106_v52 = vmul.f32 %v1373_v63, %v3529_v55  ;;  %v1430_v29 = vmul.f32 %v2877_v25, %v1417_v28 }
 0x368   : > { %v1381_v0 = vmul.f32 %v1380_v48, %v3525_v49  ;;  %v1321_v46 = vmul.f32 %v2912_v38, %v1308_v35  ;;  %v1580_v16 = vmax.f32 %v1572_v12, 0.0  ;;  %v3110_v59 = vmul.f32 %v2892_v24, %v1388_v30  ;;  %v3530_v35 = vld [vmem:[#allocation58_spill] sm:$0xff] }
 0x369   : > { %v1423_v62 = vmul.f32 %v2877_v25, %v1410_v44  ;;  %v1328_v49 = vadd.f32 %v1320_v14, %v2832_v61  ;;  %v1446_v53 = vmul.f32 %v1380_v48, %v3530_v35  ;;  %v1474_v12 = vmul.f32 %v1299_v40, %v3532_v9  ;;  %v3539_v35 = vld [vmem:[#allocation34_spill] sm:$0xff] }
 0x36a   : > { %v1394_v7 = vmul.f32 %v2892_v24, %v1381_v0  ;;  %v1329_v11 = vadd.f32 %v1321_v46, %v2863_v60  ;;  %v1588_v34 = vadd.f32 %v3531_v22, %v1580_v16  ;;  %v1475_v0 = vmul.f32 %v1306_v45, %v3533_v18  ;;  %v3540_v22 = vld [vmem:[#allocation45_spill] sm:$0xff] }
 0x36b   : > { %v1431_v55 = vadd.f32 %v1423_v62, %v1349_v26  ;;  %v1438_v28 = vadd.f32 %v1430_v29, %v3004_v8  ;;  %v1459_v30 = vmul.f32 %v2948_v6, %v1446_v53  ;;  %v3131_v9 = vmul.f32 %v2882_v50, %v1474_v12  ;;  %v3534_v8 = vld [vmem:[#allocation66_spill] sm:$0xff] }
 0x36c   : > { %v1402_v61 = vadd.f32 %v1394_v7, %v1328_v49  ;;  %v1403_v60 = vadd.f32 %v2955_v33, %v1329_v11  ;;  %v1746_v16 = vpack.c.bf16 %v1588_v34, %v1588_v34  ;;  %v3134_v18 = vmul.f32 %v2882_v50, %v1475_v0  ;;  %v3535_v34 = vld [vmem:[#allocation93_spill] sm:$0xff] }
 0x36d   : > { %v1460_v26 = vadd.f32 %v1452_v47, %v1431_v55  ;;  %v1467_v40 = vadd.f32 %v1459_v30, %v1438_v28  ;;  %v3139_v14 = vmul.f32 %v2827_v54, %v1503_v10  ;;  %v1531_v47 = vmul.f32 %v1373_v63, %v3534_v8  ;;  %v3538_v11 = vld [vmem:[#allocation33_spill] sm:$0xff]  ;;  %v3541_v55 = vld [vmem:[#allocation44_spill] sm:$0xff] }
 0x36e   : > { %v1489_v45 = vadd.f32 %v2965_v41, %v1402_v61  ;;  %v1490_v44 = vadd.f32 %v2970_v27, %v1403_v60  ;;  %1629 = vst.msk [vmem:[%s3125_s22 + $0x8] sm:$0xf] %vm1626_vm3, %v1746_v16  ;;  %v1532_v46 = vmul.f32 %v1380_v48, %v3535_v34  ;;  %v3536_v7 = vrot.slane %v2976_v15, 7  ;;  %v3542_v60 = vld [vmem:[#allocation42_spill] sm:$0xff] }
 0x36f   : > { %v1518_v33 = vadd.f32 %v2973_v39, %v1460_v26  ;;  %v3151_v41 = vadd.f32 %v2852_v51, %v1467_v40  ;;  %v3537_v49 = vrot.slane %v2988_v56, 7  ;;  %v3160_v63 = vmul.f32 %v2902_v13, %v1531_v47 }
 0x370   : > { %v1300_v62 = vsel %vm621_vm1, %v1296_v5, %v3536_v7  ;;  %v1547_v27 = vadd.f32 %v2982_v42, %v1489_v45  ;;  %v1548_v10 = vadd.f32 %v2927_v23, %v1490_v44  ;;  %v1545_v48 = vmul.f32 %v2902_v13, %v1532_v46  ;;  %v3545_v46 = vld [vmem:[#allocation40_spill] sm:$0xff]  ;;  %v3546_v7 = vld [vmem:[#allocation46_spill] sm:$0xff] }
 0x371   : > { %v1301_v39 = vsel %vm621_vm1, %v3537_v49, %v1296_v5  ;;  %v1312_v29 = vmul.f32 %v3020_v4, %v3538_v11  ;;  %v1314_v23 = vmul.f32 %v1300_v62, %v3540_v22  ;;  %v1342_v12 = vmul.f32 %v3056_v57, %v3541_v55  ;;  %v3548_v49 = vld [vmem:[#allocation2_spill] sm:$0xff]  ;;  %v3549_v11 = vld [vmem:[#allocation4_spill] sm:$0xff]  ;;  %v3551_v55 = vld [vmem:[#allocation61_spill] sm:$0xff] }
 0x372   : > { %v1313_v51 = vmul.f32 %v1301_v39, %v3539_v35  ;;  %v1555_v53 = vadd.f32 %v1547_v27, %v1518_v33  ;;  %v1556_v42 = vadd.f32 %v1548_v10, %v2979_v19  ;;  %v1370_v61 = vrot.slane %v3056_v57, 1  ;;  %v3547_v27 = vld [vmem:[#allocation57_spill] sm:$0xff] }
 0x373   : > { %v1325_v5 = vmul.f32 %v2912_v38, %v1312_v29  ;;  %v1415_v28 = vmul.f32 %v1301_v39, %v3542_v60  ;;  %v1327_v16 = vmul.f32 %v2912_v38, %v1314_v23  ;;  %v1355_v19 = vmul.f32 %v2815_v1, %v1342_v12  ;;  %v3553_v60 = vld [vmem:[#allocation56_spill] sm:$0xff] }
 0x374   : > { %v1326_v0 = vmul.f32 %v2912_v38, %v1313_v51  ;;  %v1570_v4 = vadd.f32 %v3071_v21, %v1555_v53  ;;  %v1571_v30 = vadd.f32 %v3071_v21, %v1556_v42  ;;  %v3543_v45 = vrot.slane %v2976_v15, 1  ;;  %v3550_v42 = vld [vmem:[#allocation52_spill] sm:$0xff] }
 0x375   : > { %v1333_v26 = vadd.f32 %v1325_v5, %v3076_v20  ;;  %v3544_v33 = vrot.slane %v2988_v56, 1  ;;  %v1335_v38 = vadd.f32 %v1327_v16, %v3063_v36  ;;  %v1428_v15 = vmul.f32 %v2877_v25, %v1415_v28 }
 0x376   : > { %v1334_v40 = vadd.f32 %v1326_v0, %v2992_v37  ;;  %v1374_v44 = vsel %vm768_vm2, %v1370_v61, %v3543_v45  ;;  %v1578_v47 = vmax.f32 %v1570_v4, 0.0  ;;  %v1579_v34 = vmax.f32 %v1571_v30, 0.0 }
 0x377   : > { %v1375_v8 = vsel %vm768_vm2, %v3544_v33, %v1370_v61  ;;  %v1387_v20 = vmul.f32 %v1374_v44, %v3546_v7  ;;  %v1416_v37 = vmul.f32 %v1300_v62, %v3547_v27  ;;  %v1435_v10 = vadd.f32 %v3041_v58, %v2872_v3 }
 0x378   : > { %v1386_v1 = vmul.f32 %v1375_v8, %v3545_v46  ;;  %v1586_v56 = vadd.f32 %v3548_v49, %v1578_v47  ;;  %v1587_v17 = vadd.f32 %v3549_v11, %v1579_v34  ;;  %v1409_v36 = vadd.f32 %v3110_v59, %v1335_v38  ;;  %v3555_v47 = vld [vmem:[#allocation64_spill] sm:$0xff] }
 0x379   : > { %v1400_v35 = vmul.f32 %v2892_v24, %v1387_v20  ;;  %v1429_v51 = vmul.f32 %v2877_v25, %v1416_v37  ;;  %v1436_v53 = vadd.f32 %v1428_v15, %v3025_v43  ;;  %v1443_v22 = vmul.f32 %v1375_v8, %v3550_v42 }
 0x37a   : > { %v1399_v29 = vmul.f32 %v2892_v24, %v1386_v1  ;;  %v1744_v23 = vpack.c.bf16 %v1586_v56, %v1586_v56  ;;  %v1745_v3 = vpack.c.bf16 %v1587_v17, %v1587_v17  ;;  %v1444_v12 = vmul.f32 %v1374_v44, %v3551_v55  ;;  %v3552_v24 = vld [vmem:[#allocation54_spill] sm:$0xff]  ;;  %v3559_v17 = vld [vmem:[#allocation8_spill] sm:$0xff] }
 0x37b   : > { %v1408_v5 = vadd.f32 %v1400_v35, %v1334_v40  ;;  %v1437_v0 = vadd.f32 %v1429_v51, %v1355_v19  ;;  %v1456_v61 = vmul.f32 %v2948_v6, %v1443_v22  ;;  %v1458_v59 = vmul.f32 %v2948_v6, %v3106_v52  ;;  %v3560_v51 = vld [vmem:[#allocation9_spill] sm:$0xff]  ;;  %v3563_v55 = vld [vmem:[#allocation6_spill] sm:$0xff] }
 0x37c   : > { %v1407_v58 = vadd.f32 %v1399_v29, %v1333_v26  ;;  %1627 = vst.msk [vmem:[%s3125_s22] sm:$0xf] %vm1626_vm3, %v1744_v23  ;;  %1628 = vst.msk [vmem:[%s3125_s22 + $0x4] sm:$0xf] %vm1626_vm3, %v1745_v3  ;;  %v1457_v25 = vmul.f32 %v2948_v6, %v1444_v12  ;;  %v1472_v43 = vmul.f32 %v1301_v39, %v3552_v24  ;;  %v3554_v26 = vld [vmem:[#allocation62_spill] sm:$0xff]  ;;  %v3561_v22 = vld [vmem:[#allocation5_spill] sm:$0xff] }
 0x37d   : > { %v1473_v28 = vmul.f32 %v1300_v62, %v3553_v60  ;;  %v1496_v4 = vadd.f32 %v3134_v18, %v1409_v36  ;;  %v1464_v30 = vadd.f32 %v1456_v61, %v1435_v10  ;;  %v1466_v16 = vadd.f32 %v1458_v59, %v1437_v0  ;;  %v3562_v3 = vld [vmem:[#allocation7_spill] sm:$0xff] }
 0x37e   : > { %v1495_v19 = vadd.f32 %v3131_v9, %v1408_v5  ;;  %v1501_v40 = vmul.f32 %v3056_v57, %v3554_v26  ;;  %v1465_v52 = vadd.f32 %v1457_v25, %v1436_v53  ;;  %v1485_v45 = vmul.f32 %v2882_v50, %v1472_v43 }
 0x37f   : > { %v1486_v33 = vmul.f32 %v2882_v50, %v1473_v28  ;;  %v1529_v6 = vmul.f32 %v1375_v8, %v3481_v2  ;;  %v1524_v62 = vadd.f32 %v3139_v14, %v1466_v16  ;;  %v1530_v18 = vmul.f32 %v1374_v44, %v3555_v47  ;;  %v3556_v50 = vld [vmem:[#allocation11_spill] sm:$0xff]  ;;  %v3557_v8 = vld [vmem:[#allocation12_spill] sm:$0xff]  ;;  %v3558_v44 = vld [vmem:[#allocation74_spill] sm:$0xff] }
 0x380   : > { %v1514_v39 = vmul.f32 %v2827_v54, %v1501_v40  ;;  %v1553_v34 = vadd.f32 %v1545_v48, %v1495_v19  ;;  %v1493_v38 = vadd.f32 %v1485_v45, %v3058_v32  ;;  %v1523_v46 = vadd.f32 %v3012_v31, %v1465_v52 }
 0x381   : > { %v1494_v9 = vadd.f32 %v1486_v33, %v1407_v58  ;;  %v1542_v57 = vmul.f32 %v2902_v13, %v1529_v6  ;;  %v1543_v7 = vmul.f32 %v2902_v13, %v1530_v18  ;;  %v1554_v20 = vadd.f32 %v3556_v50, %v1496_v4 }
 0x382   : > { %v1522_v1 = vadd.f32 %v1514_v39, %v1464_v30  ;;  %v1561_v2 = vadd.f32 %v1553_v34, %v1524_v62 }
 0x383   : > { %v1550_v54 = vadd.f32 %v1542_v57, %v3557_v8  ;;  %v1552_v14 = vadd.f32 %v3160_v63, %v1494_v9  ;;  %v1551_v27 = vadd.f32 %v1543_v7, %v1493_v38  ;;  %v1562_v48 = vadd.f32 %v1554_v20, %v3151_v41 }
 0x384   : > { %v1576_v32 = vadd.f32 %v3071_v21, %v1561_v2 }
 0x385   : > { %v1558_v37 = vadd.f32 %v1550_v54, %v3558_v44  ;;  %v1560_v31 = vadd.f32 %v1552_v14, %v1523_v46  ;;  %v1559_v15 = vadd.f32 %v1551_v27, %v1522_v1  ;;  %v1577_v10 = vadd.f32 %v3071_v21, %v1562_v48 }
 0x386   : > { %v1584_v13 = vmax.f32 %v1576_v32, 0.0 }
 0x387   : > { %v1573_v49 = vadd.f32 %v3071_v21, %v1558_v37  ;;  %v1575_v56 = vadd.f32 %v3071_v21, %v1560_v31  ;;  %v1574_v11 = vadd.f32 %v3071_v21, %v1559_v15  ;;  %v1585_v63 = vmax.f32 %v1577_v10, 0.0 }
 0x388   : > { %v1592_v41 = vadd.f32 %v3559_v17, %v1584_v13 }
 0x389   : > { %v1581_v29 = vmax.f32 %v1573_v49, 0.0  ;;  %v1583_v36 = vmax.f32 %v1575_v56, 0.0  ;;  %v1582_v35 = vmax.f32 %v1574_v11, 0.0  ;;  %v1593_v53 = vadd.f32 %v3560_v51, %v1585_v63 }
 0x38a   : > { %v1750_v42 = vpack.c.bf16 %v1592_v41, %v1592_v41 }
 0x38b   : > { %v1589_v23 = vadd.f32 %v3561_v22, %v1581_v29  ;;  %v1591_v58 = vadd.f32 %v3562_v3, %v1583_v36  ;;  %v1590_v12 = vadd.f32 %v3563_v55, %v1582_v35  ;;  %v1751_v21 = vpack.c.bf16 %v1593_v53, %v1593_v53 }
 0x38c   : > { %1633 = vst.msk [vmem:[%s3125_s22 + $0x18] sm:$0xf] %vm1626_vm3, %v1750_v42 }
 0x38d   : > { %v1747_v5 = vpack.c.bf16 %v1589_v23, %v1589_v23  ;;  %v1749_v0 = vpack.c.bf16 %v1591_v58, %v1591_v58  ;;  %v1748_v61 = vpack.c.bf16 %v1590_v12, %v1590_v12  ;;  %1634 = vst.msk [vmem:[%s3125_s22 + $0x1c] sm:$0xf] %vm1626_vm3, %v1751_v21 }
 0x38f   : > { %1630 = vst.msk [vmem:[%s3125_s22 + $0xc] sm:$0xf] %vm1626_vm3, %v1747_v5  ;;  %1632 = vst.msk [vmem:[%s3125_s22 + $0x14] sm:$0xf] %vm1626_vm3, %v1749_v0 }
 0x390   : > { %1631 = vst.msk [vmem:[%s3125_s22 + $0x10] sm:$0xf] %vm1626_vm3, %v1748_v61 }
 0x391 PF: > { %s20_s13 = sadd.s32 1, %s1888_s13  }
 0x392   : > { %p17_p4 = scmp.ge.s32.totalorder %s20_s13, 4  }
 0x394   :  { %19 = sbr.rel (!%p17_p4) target bundleno = 1 (0x1), region = 90 }

</bundles_post_ra>
